<compile_context>
chip_gen: v6e
topology: v6e:2x2x1
jax: 0.10.0
libtpu: 0.0.40
codegen_flags: <defaults>
</compile_context>

<pallas_src>
import jax
import jax.numpy as jnp
from jax import lax
from jax.experimental import pallas as pl
from jax.experimental.pallas import tpu as pltpu  # noqa: F401  (no grid/compiler tweaks needed at this size)

# ----------------------------- config -----------------------------
IMAGE_SIZE = 16
PATCH_SIZE = 4
CHANNELS = 4
NUM_CLASSES = 10
DIM = 32
DEPTH = 2
HEADS = 4
MLP_DIM = 64
BATCH = 2

DIM_HEAD = DIM // HEADS
GRID_HW = IMAGE_SIZE // PATCH_SIZE
N_PATCHES = GRID_HW * GRID_HW
PATCH_DIM = CHANNELS * PATCH_SIZE * PATCH_SIZE
LN_EPS = 1e-5
BN = BATCH * N_PATCHES
ATTN_SCALE = float(DIM_HEAD) ** -0.5


# ------------------------- in-kernel helpers -----------------------
def _layernorm(x, g, b, eps=LN_EPS):
    mu = jnp.mean(x, axis=-1, keepdims=True)
    var = jnp.mean((x - mu) ** 2, axis=-1, keepdims=True)
    return (x - mu) * lax.rsqrt(var + eps) * g + b


def _gelu_tanh(x):
    # nn.GELU(approximate='tanh')
    c = 0.7978845608028654  # sqrt(2/pi)
    return 0.5 * x * (1.0 + jnp.tanh(c * (x + 0.044715 * x * x * x)))


def _bf16(x):
    return x.astype(jnp.bfloat16)


# ----------------------------- fused kernel -----------------------------
def _encoder_block(x, lrefs):
    (ln1g_ref, ln1b_ref, wqkv_ref, wout_ref,
     ln2g_ref, ln2b_ref, w1_ref, b1_ref, w2_ref, b2_ref) = lrefs

    # ---- attention (pre-norm) ----
    xn = _layernorm(x, ln1g_ref[...], ln1b_ref[...])
    qkv = jnp.dot(_bf16(xn), wqkv_ref[...],
                  preferred_element_type=jnp.float32)            # (BN, 3*DIM) f32
    wout = wout_ref[...]                                         # (DIM, DIM) bf16, read once

    attn_out = None
    for h in range(HEADS):                                       # static unroll
        s = h * DIM_HEAD
        q_h = _bf16(qkv[:, s:s + DIM_HEAD]).reshape(BATCH, N_PATCHES, DIM_HEAD)
        k_h = _bf16(qkv[:, DIM + s:DIM + s + DIM_HEAD]).reshape(
            BATCH, N_PATCHES, DIM_HEAD)
        v_h = _bf16(qkv[:, 2 * DIM + s:2 * DIM + s + DIM_HEAD])  # (BN, dh)

        dots = jnp.einsum('bid,bjd->bij', q_h, k_h,
                          preferred_element_type=jnp.float32) * ATTN_SCALE
        m = jnp.max(dots, axis=-1, keepdims=True)
        e = jnp.exp(dots - m)
        attn = e * pl.reciprocal(jnp.sum(e, axis=-1, keepdims=True), approx=True)

        # (attn @ v_h) @ Wout[h] == attn @ (v_h @ Wout[h]) : folds the per-head
        # row-slice of the output projection into the value path, so no lane
        # concatenate of width-8 head outputs is needed.
        vproj = jnp.dot(v_h, wout[s:s + DIM_HEAD, :],
                        preferred_element_type=jnp.float32)      # (BN, DIM)
        vproj = _bf16(vproj).reshape(BATCH, N_PATCHES, DIM)
        contrib = jnp.einsum('bij,bjd->bid', _bf16(attn), vproj,
                             preferred_element_type=jnp.float32)  # (B, N, DIM)
        attn_out = contrib if attn_out is None else attn_out + contrib

    x = x + attn_out.reshape(BN, DIM)

    # ---- feed-forward (pre-norm) ----
    xn2 = _layernorm(x, ln2g_ref[...], ln2b_ref[...])
    h1 = jnp.dot(_bf16(xn2), w1_ref[...],
                 preferred_element_type=jnp.float32) + b1_ref[...]
    h1 = _gelu_tanh(h1)
    h2 = jnp.dot(_bf16(h1), w2_ref[...],
                 preferred_element_type=jnp.float32) + b2_ref[...]
    return x + h2


def vit_kernel(*refs):
    # Inputs: patches, pe, emb_w, emb_b, 10 refs per encoder layer, 4 head refs.
    patches_ref, pe_ref, emb_w_ref, emb_b_ref = refs[0:4]
    layer_refs = [refs[4 + 10 * l: 4 + 10 * (l + 1)] for l in range(DEPTH)]
    hg_ref, hb_ref, hw_ref, hbias_ref = refs[4 + 10 * DEPTH: 8 + 10 * DEPTH]
    o_ref = refs[8 + 10 * DEPTH]

    # patch embedding + sincos positional embedding (pe pre-tiled to (BN, DIM))
    x = jnp.dot(patches_ref[...], emb_w_ref[...],
                preferred_element_type=jnp.float32)
    x = x + emb_b_ref[...] + pe_ref[...]

    # transformer encoder stack (statically unrolled; activations stay resident)
    for lrefs in layer_refs:
        x = _encoder_block(x, lrefs)

    # head: mean-pool over tokens -> LayerNorm -> Linear
    pooled = jnp.mean(x.reshape(BATCH, N_PATCHES, DIM), axis=1)   # (B, DIM)
    pn = _layernorm(pooled, hg_ref[...], hb_ref[...])
    o_ref[...] = jnp.dot(_bf16(pn), hw_ref[...],
                         preferred_element_type=jnp.float32) + hbias_ref[...]


# --------------------------- pallas wrapper ------------------------
def _flatten_params_bf16(params):
    c = lambda w: w.astype(jnp.bfloat16)   # matmul weights -> bf16 (MXU operands)
    args = [c(params["emb_w"]), params["emb_b"]]
    for lp in params["layers"]:
        args += [lp["ln1_g"], lp["ln1_b"], c(lp["wqkv"]), c(lp["wout"]),
                 lp["ln2_g"], lp["ln2_b"], c(lp["w1"]), lp["b1"],
                 c(lp["w2"]), lp["b2"]]
    args += [params["head_ln_g"], params["head_ln_b"],
             c(params["head_w"]), params["head_b"]]
    return args


@jax.jit
def simple_vit_forward(img, params):
    # b c (h p1) (w p2) -> (b h w) (p1 p2 c), batch folded into rows
    patches = to_patches(img).reshape(BN, PATCH_DIM).astype(jnp.bfloat16)
    pe = posemb_sincos_2d(GRID_HW, GRID_HW, DIM)
    pe = jnp.tile(pe, (BATCH, 1))                                  # (BN, DIM)
    args = [patches, pe] + _flatten_params_bf16(params)
    # No grid: one fused program, whole batch; every operand is a full-array
    # VMEM block (total well under 1 MiB — fits v5e/v6e 128 MiB and v7x 64 MiB).
    return pl.pallas_call(
        vit_kernel,
        out_shape=jax.ShapeDtypeStruct((BATCH, NUM_CLASSES), jnp.float32),
    )(*args)


# ----------------------------- JAX glue -----------------------------
def to_patches(img):
    # 'b c (h p1) (w p2) -> b h w (p1 p2 c)' then flatten (h w)
    B, C, H, W = img.shape
    p = PATCH_SIZE
    h, w = H // p, W // p
    x = img.reshape(B, C, h, p, w, p)
    x = x.transpose(0, 2, 4, 3, 5, 1)              # b h w p1 p2 c
    return x.reshape(B, h * w, p * p * C)


def posemb_sincos_2d(h, w, dim, temperature=10000.0, dtype=jnp.float32):
    y, x = jnp.meshgrid(jnp.arange(h), jnp.arange(w), indexing="ij")
    omega = jnp.arange(dim // 4) / (dim // 4 - 1)
    omega = 1.0 / (temperature ** omega)
    y = y.reshape(-1)[:, None] * omega[None, :]
    x = x.reshape(-1)[:, None] * omega[None, :]
    pe = jnp.concatenate([jnp.sin(x), jnp.cos(x), jnp.sin(y), jnp.cos(y)], axis=1)
    return pe.astype(dtype)


def init_params(key):
    keys = iter(jax.random.split(key, 8 + DEPTH * 8))

    def w(shape, scale=0.02):
        return jax.random.normal(next(keys), shape, jnp.float32) * scale

    params = {
        # weights are stored pre-transposed to (in, out) so kernels do x @ W
        "emb_w": w((PATCH_DIM, DIM)),
        "emb_b": w((1, DIM)),
        "layers": [],
        "head_ln_g": jnp.ones((1, DIM), jnp.float32),
        "head_ln_b": jnp.zeros((1, DIM), jnp.float32),
        "head_w": w((DIM, NUM_CLASSES)),
        "head_b": w((1, NUM_CLASSES)),
    }
    for _ in range(DEPTH):
        params["layers"].append(dict(
            ln1_g=jnp.ones((1, DIM), jnp.float32),
            ln1_b=jnp.zeros((1, DIM), jnp.float32),
            wqkv=w((DIM, 3 * DIM)),                # to_qkv (bias=False)
            wout=w((DIM, DIM)),                    # to_out (bias=False)
            ln2_g=jnp.ones((1, DIM), jnp.float32),
            ln2_b=jnp.zeros((1, DIM), jnp.float32),
            w1=w((DIM, MLP_DIM)),
            b1=w((1, MLP_DIM)),
            w2=w((MLP_DIM, DIM)),
            b2=w((1, DIM)),
        ))
    return params


# ------------------------- pure-JAX reference ------------------------
def reference_forward(img, params):
    hp = "highest"
    patches = to_patches(img)
    pe = posemb_sincos_2d(GRID_HW, GRID_HW, DIM, dtype=img.dtype)
    x = jnp.einsum("bnp,pd->bnd", patches, params["emb_w"],
                   precision=hp) + params["emb_b"] + pe
    for lp in params["layers"]:
        xn = _layernorm(x, lp["ln1_g"], lp["ln1_b"])
        qkv = jnp.einsum("bnd,de->bne", xn, lp["wqkv"], precision=hp)
        q, k, v = jnp.split(qkv, 3, axis=-1)
        sh = lambda t: t.reshape(BATCH, N_PATCHES, HEADS, DIM_HEAD).transpose(0, 2, 1, 3)
        q, k, v = sh(q), sh(k), sh(v)
        dots = jnp.einsum("bhnd,bhmd->bhnm", q, k, precision=hp) * (DIM_HEAD ** -0.5)
        attn = jax.nn.softmax(dots, axis=-1)
        o = jnp.einsum("bhnm,bhmd->bhnd", attn, v, precision=hp)
        o = o.transpose(0, 2, 1, 3).reshape(x.shape)
        x = jnp.einsum("bnd,de->bne", o, lp["wout"], precision=hp) + x
        xn2 = _layernorm(x, lp["ln2_g"], lp["ln2_b"])
        h1 = _gelu_tanh(jnp.einsum("bnd,dh->bnh", xn2, lp["w1"], precision=hp) + lp["b1"])
        x = jnp.einsum("bnh,hd->bnd", h1, lp["w2"], precision=hp) + lp["b2"] + x
    x = x.mean(axis=1)
    x = _layernorm(x, params["head_ln_g"], params["head_ln_b"])
    return jnp.einsum("bd,dc->bc", x, params["head_w"], precision=hp) + params["head_b"]


# ------------------------------- main --------------------------------
if __name__ == "__main__":
    key = jax.random.PRNGKey(0)
    k_img, k_par = jax.random.split(key)
    img = jax.random.normal(k_img, (BATCH, CHANNELS, IMAGE_SIZE, IMAGE_SIZE),
                            dtype=jnp.float32)
    params = init_params(k_par)

    out = simple_vit_forward(img, params)
    out = jax.block_until_ready(out)
    assert out.shape == (BATCH, NUM_CLASSES), out.shape

    ref = jax.block_until_ready(reference_forward(img, params))
    max_diff = float(jnp.max(jnp.abs(out - ref)))
    assert max_diff < 2e-2, f"mismatch vs reference: {max_diff}"

    print("KERNEL_OK")
</pallas_src>

<mosaic_0001>
module attributes {stable_mosaic.version = 11 : i64} {
  func.func @vit_kernel(%arg0: memref<32x64xbf16, #tpu.memory_space<vmem>>, %arg1: memref<32x32xf32, #tpu.memory_space<vmem>>, %arg2: memref<64x32xbf16, #tpu.memory_space<vmem>>, %arg3: memref<1x32xf32, #tpu.memory_space<vmem>>, %arg4: memref<1x32xf32, #tpu.memory_space<vmem>>, %arg5: memref<1x32xf32, #tpu.memory_space<vmem>>, %arg6: memref<32x96xbf16, #tpu.memory_space<vmem>>, %arg7: memref<32x32xbf16, #tpu.memory_space<vmem>>, %arg8: memref<1x32xf32, #tpu.memory_space<vmem>>, %arg9: memref<1x32xf32, #tpu.memory_space<vmem>>, %arg10: memref<32x64xbf16, #tpu.memory_space<vmem>>, %arg11: memref<1x64xf32, #tpu.memory_space<vmem>>, %arg12: memref<64x32xbf16, #tpu.memory_space<vmem>>, %arg13: memref<1x32xf32, #tpu.memory_space<vmem>>, %arg14: memref<1x32xf32, #tpu.memory_space<vmem>>, %arg15: memref<1x32xf32, #tpu.memory_space<vmem>>, %arg16: memref<32x96xbf16, #tpu.memory_space<vmem>>, %arg17: memref<32x32xbf16, #tpu.memory_space<vmem>>, %arg18: memref<1x32xf32, #tpu.memory_space<vmem>>, %arg19: memref<1x32xf32, #tpu.memory_space<vmem>>, %arg20: memref<32x64xbf16, #tpu.memory_space<vmem>>, %arg21: memref<1x64xf32, #tpu.memory_space<vmem>>, %arg22: memref<64x32xbf16, #tpu.memory_space<vmem>>, %arg23: memref<1x32xf32, #tpu.memory_space<vmem>>, %arg24: memref<1x32xf32, #tpu.memory_space<vmem>>, %arg25: memref<1x32xf32, #tpu.memory_space<vmem>>, %arg26: memref<32x10xbf16, #tpu.memory_space<vmem>>, %arg27: memref<1x10xf32, #tpu.memory_space<vmem>>, %arg28: memref<2x10xf32, #tpu.memory_space<vmem>>) attributes {dimension_semantics = [], scalar_prefetch = 0 : i64, scratch_operands = 0 : i64, tpu.core_type = #tpu.core_type<tc>} {
    %c0 = arith.constant 0 : index
    %c0_0 = arith.constant 0 : index
    %0 = vector.load %arg0[%c0, %c0_0] : memref<32x64xbf16, #tpu.memory_space<vmem>>, vector<32x64xbf16>
    %c0_1 = arith.constant 0 : index
    %c0_2 = arith.constant 0 : index
    %1 = vector.load %arg2[%c0_1, %c0_2] : memref<64x32xbf16, #tpu.memory_space<vmem>>, vector<64x32xbf16>
    %cst = arith.constant dense<0.000000e+00> : vector<32x32xf32>
    %2 = tpu.matmul %0, %1, %cst {dimension_numbers = #tpu.dot_dimension_numbers<[1], [0], [0], [1], [0, 0, 1, 1], [], []>} : vector<32x64xbf16>, vector<64x32xbf16>, vector<32x32xf32> -> vector<32x32xf32>
    %c0_3 = arith.constant 0 : index
    %c0_4 = arith.constant 0 : index
    %3 = vector.load %arg3[%c0_3, %c0_4] : memref<1x32xf32, #tpu.memory_space<vmem>>, vector<1x32xf32>
    %4 = vector.broadcast %3 : vector<1x32xf32> to vector<32x32xf32>
    %5 = arith.addf %2, %4 : vector<32x32xf32>
    %c0_5 = arith.constant 0 : index
    %c0_6 = arith.constant 0 : index
    %6 = vector.load %arg1[%c0_5, %c0_6] : memref<32x32xf32, #tpu.memory_space<vmem>>, vector<32x32xf32>
    %7 = arith.addf %5, %6 : vector<32x32xf32>
    %c0_7 = arith.constant 0 : index
    %c0_8 = arith.constant 0 : index
    %8 = vector.load %arg4[%c0_7, %c0_8] : memref<1x32xf32, #tpu.memory_space<vmem>>, vector<1x32xf32>
    %c0_9 = arith.constant 0 : index
    %c0_10 = arith.constant 0 : index
    %9 = vector.load %arg5[%c0_9, %c0_10] : memref<1x32xf32, #tpu.memory_space<vmem>>, vector<1x32xf32>
    %cst_11 = arith.constant dense<0.000000e+00> : vector<32xf32>
    %10 = vector.multi_reduction <add>, %7, %cst_11 [1] : vector<32x32xf32> to vector<32xf32>
    %11 = vector.shape_cast %10 : vector<32xf32> to vector<32x1xf32>
    %cst_12 = arith.constant 3.200000e+01 : f32
    %12 = vector.broadcast %cst_12 : f32 to vector<32x1xf32>
    %13 = arith.divf %11, %12 : vector<32x1xf32>
    %14 = vector.broadcast %13 : vector<32x1xf32> to vector<32x32xf32>
    %15 = arith.subf %7, %14 : vector<32x32xf32>
    %16 = arith.mulf %15, %15 : vector<32x32xf32>
    %cst_13 = arith.constant dense<0.000000e+00> : vector<32xf32>
    %17 = vector.multi_reduction <add>, %16, %cst_13 [1] : vector<32x32xf32> to vector<32xf32>
    %18 = vector.shape_cast %17 : vector<32xf32> to vector<32x1xf32>
    %cst_14 = arith.constant 3.200000e+01 : f32
    %19 = vector.broadcast %cst_14 : f32 to vector<32x1xf32>
    %20 = arith.divf %18, %19 : vector<32x1xf32>
    %21 = vector.broadcast %13 : vector<32x1xf32> to vector<32x32xf32>
    %22 = arith.subf %7, %21 : vector<32x32xf32>
    %cst_15 = arith.constant 9.99999974E-6 : f32
    %23 = vector.broadcast %cst_15 : f32 to vector<32x1xf32>
    %24 = arith.addf %20, %23 : vector<32x1xf32>
    %25 = math.rsqrt %24 : vector<32x1xf32>
    %26 = vector.broadcast %25 : vector<32x1xf32> to vector<32x32xf32>
    %27 = arith.mulf %22, %26 : vector<32x32xf32>
    %28 = vector.broadcast %8 : vector<1x32xf32> to vector<32x32xf32>
    %29 = arith.mulf %27, %28 : vector<32x32xf32>
    %30 = vector.broadcast %9 : vector<1x32xf32> to vector<32x32xf32>
    %31 = arith.addf %29, %30 : vector<32x32xf32>
    %32 = arith.truncf %31 : vector<32x32xf32> to vector<32x32xbf16>
    %c0_16 = arith.constant 0 : index
    %c0_17 = arith.constant 0 : index
    %33 = vector.load %arg6[%c0_16, %c0_17] : memref<32x96xbf16, #tpu.memory_space<vmem>>, vector<32x96xbf16>
    %cst_18 = arith.constant dense<0.000000e+00> : vector<32x96xf32>
    %34 = tpu.matmul %32, %33, %cst_18 {dimension_numbers = #tpu.dot_dimension_numbers<[1], [0], [0], [1], [0, 0, 1, 1], [], []>} : vector<32x32xbf16>, vector<32x96xbf16>, vector<32x96xf32> -> vector<32x96xf32>
    %c0_19 = arith.constant 0 : index
    %c0_20 = arith.constant 0 : index
    %35 = vector.load %arg7[%c0_19, %c0_20] : memref<32x32xbf16, #tpu.memory_space<vmem>>, vector<32x32xbf16>
    %36 = vector.extract_strided_slice %34 {offsets = [0, 0], sizes = [32, 8], strides = [1, 1]} : vector<32x96xf32> to vector<32x8xf32>
    %37 = arith.truncf %36 : vector<32x8xf32> to vector<32x8xbf16>
    %38 = vector.shape_cast %37 : vector<32x8xbf16> to vector<2x16x8xbf16>
    %39 = vector.extract_strided_slice %34 {offsets = [0, 32], sizes = [32, 8], strides = [1, 1]} : vector<32x96xf32> to vector<32x8xf32>
    %40 = arith.truncf %39 : vector<32x8xf32> to vector<32x8xbf16>
    %41 = vector.shape_cast %40 : vector<32x8xbf16> to vector<2x16x8xbf16>
    %42 = vector.extract_strided_slice %34 {offsets = [0, 64], sizes = [32, 8], strides = [1, 1]} : vector<32x96xf32> to vector<32x8xf32>
    %43 = arith.truncf %42 : vector<32x8xf32> to vector<32x8xbf16>
    "tpu.trace_start"() <{level = 10 : i32, message = "bid,bjd->bij"}> : () -> ()
    %cst_21 = arith.constant dense<0.000000e+00> : vector<2x16x16xf32>
    %44 = tpu.matmul %38, %41, %cst_21 {dimension_numbers = #tpu.dot_dimension_numbers<[2], [2], [1], [1], [0, 0, 0, 1, 1, 1], [0], [0]>} : vector<2x16x8xbf16>, vector<2x16x8xbf16>, vector<2x16x16xf32> -> vector<2x16x16xf32>
    "tpu.trace_stop"() : () -> ()
    %cst_22 = arith.constant 0.353553385 : f32
    %45 = vector.broadcast %cst_22 : f32 to vector<2x16x16xf32>
    %46 = arith.mulf %44, %45 : vector<2x16x16xf32>
    %cst_23 = arith.constant dense<0xFF800000> : vector<2x16xf32>
    %47 = vector.multi_reduction <maximumf>, %46, %cst_23 [2] : vector<2x16x16xf32> to vector<2x16xf32>
    %48 = vector.shape_cast %47 : vector<2x16xf32> to vector<2x16x1xf32>
    %49 = vector.broadcast %48 : vector<2x16x1xf32> to vector<2x16x16xf32>
    %50 = arith.subf %46, %49 : vector<2x16x16xf32>
    %51 = math.exp %50 : vector<2x16x16xf32>
    %cst_24 = arith.constant dense<0.000000e+00> : vector<2x16xf32>
    %52 = vector.multi_reduction <add>, %51, %cst_24 [2] : vector<2x16x16xf32> to vector<2x16xf32>
    %53 = vector.shape_cast %52 : vector<2x16xf32> to vector<2x16x1xf32>
    %54 = tpu.reciprocal %53 {approx = true} : vector<2x16x1xf32> -> vector<2x16x1xf32>
    %55 = vector.broadcast %54 : vector<2x16x1xf32> to vector<2x16x16xf32>
    %56 = arith.mulf %51, %55 : vector<2x16x16xf32>
    %57 = vector.extract_strided_slice %35 {offsets = [0, 0], sizes = [8, 32], strides = [1, 1]} : vector<32x32xbf16> to vector<8x32xbf16>
    %cst_25 = arith.constant dense<0.000000e+00> : vector<32x32xf32>
    %58 = tpu.matmul %43, %57, %cst_25 {dimension_numbers = #tpu.dot_dimension_numbers<[1], [0], [0], [1], [0, 0, 1, 1], [], []>} : vector<32x8xbf16>, vector<8x32xbf16>, vector<32x32xf32> -> vector<32x32xf32>
    %59 = arith.truncf %58 : vector<32x32xf32> to vector<32x32xbf16>
    %60 = vector.shape_cast %59 : vector<32x32xbf16> to vector<2x16x32xbf16>
    %61 = arith.truncf %56 : vector<2x16x16xf32> to vector<2x16x16xbf16>
    "tpu.trace_start"() <{level = 10 : i32, message = "bij,bjd->bid"}> : () -> ()
    %cst_26 = arith.constant dense<0.000000e+00> : vector<2x16x32xf32>
    %62 = tpu.matmul %61, %60, %cst_26 {dimension_numbers = #tpu.dot_dimension_numbers<[2], [1], [1], [2], [0, 0, 0, 1, 1, 2], [0], [0]>} : vector<2x16x16xbf16>, vector<2x16x32xbf16>, vector<2x16x32xf32> -> vector<2x16x32xf32>
    "tpu.trace_stop"() : () -> ()
    %63 = vector.extract_strided_slice %34 {offsets = [0, 8], sizes = [32, 8], strides = [1, 1]} : vector<32x96xf32> to vector<32x8xf32>
    %64 = arith.truncf %63 : vector<32x8xf32> to vector<32x8xbf16>
    %65 = vector.shape_cast %64 : vector<32x8xbf16> to vector<2x16x8xbf16>
    %66 = vector.extract_strided_slice %34 {offsets = [0, 40], sizes = [32, 8], strides = [1, 1]} : vector<32x96xf32> to vector<32x8xf32>
    %67 = arith.truncf %66 : vector<32x8xf32> to vector<32x8xbf16>
    %68 = vector.shape_cast %67 : vector<32x8xbf16> to vector<2x16x8xbf16>
    %69 = vector.extract_strided_slice %34 {offsets = [0, 72], sizes = [32, 8], strides = [1, 1]} : vector<32x96xf32> to vector<32x8xf32>
    %70 = arith.truncf %69 : vector<32x8xf32> to vector<32x8xbf16>
    "tpu.trace_start"() <{level = 10 : i32, message = "bid,bjd->bij"}> : () -> ()
    %cst_27 = arith.constant dense<0.000000e+00> : vector<2x16x16xf32>
    %71 = tpu.matmul %65, %68, %cst_27 {dimension_numbers = #tpu.dot_dimension_numbers<[2], [2], [1], [1], [0, 0, 0, 1, 1, 1], [0], [0]>} : vector<2x16x8xbf16>, vector<2x16x8xbf16>, vector<2x16x16xf32> -> vector<2x16x16xf32>
    "tpu.trace_stop"() : () -> ()
    %cst_28 = arith.constant 0.353553385 : f32
    %72 = vector.broadcast %cst_28 : f32 to vector<2x16x16xf32>
    %73 = arith.mulf %71, %72 : vector<2x16x16xf32>
    %cst_29 = arith.constant dense<0xFF800000> : vector<2x16xf32>
    %74 = vector.multi_reduction <maximumf>, %73, %cst_29 [2] : vector<2x16x16xf32> to vector<2x16xf32>
    %75 = vector.shape_cast %74 : vector<2x16xf32> to vector<2x16x1xf32>
    %76 = vector.broadcast %75 : vector<2x16x1xf32> to vector<2x16x16xf32>
    %77 = arith.subf %73, %76 : vector<2x16x16xf32>
    %78 = math.exp %77 : vector<2x16x16xf32>
    %cst_30 = arith.constant dense<0.000000e+00> : vector<2x16xf32>
    %79 = vector.multi_reduction <add>, %78, %cst_30 [2] : vector<2x16x16xf32> to vector<2x16xf32>
    %80 = vector.shape_cast %79 : vector<2x16xf32> to vector<2x16x1xf32>
    %81 = tpu.reciprocal %80 {approx = true} : vector<2x16x1xf32> -> vector<2x16x1xf32>
    %82 = vector.broadcast %81 : vector<2x16x1xf32> to vector<2x16x16xf32>
    %83 = arith.mulf %78, %82 : vector<2x16x16xf32>
    %84 = vector.extract_strided_slice %35 {offsets = [8, 0], sizes = [8, 32], strides = [1, 1]} : vector<32x32xbf16> to vector<8x32xbf16>
    %cst_31 = arith.constant dense<0.000000e+00> : vector<32x32xf32>
    %85 = tpu.matmul %70, %84, %cst_31 {dimension_numbers = #tpu.dot_dimension_numbers<[1], [0], [0], [1], [0, 0, 1, 1], [], []>} : vector<32x8xbf16>, vector<8x32xbf16>, vector<32x32xf32> -> vector<32x32xf32>
    %86 = arith.truncf %85 : vector<32x32xf32> to vector<32x32xbf16>
    %87 = vector.shape_cast %86 : vector<32x32xbf16> to vector<2x16x32xbf16>
    %88 = arith.truncf %83 : vector<2x16x16xf32> to vector<2x16x16xbf16>
    "tpu.trace_start"() <{level = 10 : i32, message = "bij,bjd->bid"}> : () -> ()
    %cst_32 = arith.constant dense<0.000000e+00> : vector<2x16x32xf32>
    %89 = tpu.matmul %88, %87, %cst_32 {dimension_numbers = #tpu.dot_dimension_numbers<[2], [1], [1], [2], [0, 0, 0, 1, 1, 2], [0], [0]>} : vector<2x16x16xbf16>, vector<2x16x32xbf16>, vector<2x16x32xf32> -> vector<2x16x32xf32>
    "tpu.trace_stop"() : () -> ()
    %90 = arith.addf %62, %89 : vector<2x16x32xf32>
    %91 = vector.extract_strided_slice %34 {offsets = [0, 16], sizes = [32, 8], strides = [1, 1]} : vector<32x96xf32> to vector<32x8xf32>
    %92 = arith.truncf %91 : vector<32x8xf32> to vector<32x8xbf16>
    %93 = vector.shape_cast %92 : vector<32x8xbf16> to vector<2x16x8xbf16>
    %94 = vector.extract_strided_slice %34 {offsets = [0, 48], sizes = [32, 8], strides = [1, 1]} : vector<32x96xf32> to vector<32x8xf32>
    %95 = arith.truncf %94 : vector<32x8xf32> to vector<32x8xbf16>
    %96 = vector.shape_cast %95 : vector<32x8xbf16> to vector<2x16x8xbf16>
    %97 = vector.extract_strided_slice %34 {offsets = [0, 80], sizes = [32, 8], strides = [1, 1]} : vector<32x96xf32> to vector<32x8xf32>
    %98 = arith.truncf %97 : vector<32x8xf32> to vector<32x8xbf16>
    "tpu.trace_start"() <{level = 10 : i32, message = "bid,bjd->bij"}> : () -> ()
    %cst_33 = arith.constant dense<0.000000e+00> : vector<2x16x16xf32>
    %99 = tpu.matmul %93, %96, %cst_33 {dimension_numbers = #tpu.dot_dimension_numbers<[2], [2], [1], [1], [0, 0, 0, 1, 1, 1], [0], [0]>} : vector<2x16x8xbf16>, vector<2x16x8xbf16>, vector<2x16x16xf32> -> vector<2x16x16xf32>
    "tpu.trace_stop"() : () -> ()
    %cst_34 = arith.constant 0.353553385 : f32
    %100 = vector.broadcast %cst_34 : f32 to vector<2x16x16xf32>
    %101 = arith.mulf %99, %100 : vector<2x16x16xf32>
    %cst_35 = arith.constant dense<0xFF800000> : vector<2x16xf32>
    %102 = vector.multi_reduction <maximumf>, %101, %cst_35 [2] : vector<2x16x16xf32> to vector<2x16xf32>
    %103 = vector.shape_cast %102 : vector<2x16xf32> to vector<2x16x1xf32>
    %104 = vector.broadcast %103 : vector<2x16x1xf32> to vector<2x16x16xf32>
    %105 = arith.subf %101, %104 : vector<2x16x16xf32>
    %106 = math.exp %105 : vector<2x16x16xf32>
    %cst_36 = arith.constant dense<0.000000e+00> : vector<2x16xf32>
    %107 = vector.multi_reduction <add>, %106, %cst_36 [2] : vector<2x16x16xf32> to vector<2x16xf32>
    %108 = vector.shape_cast %107 : vector<2x16xf32> to vector<2x16x1xf32>
    %109 = tpu.reciprocal %108 {approx = true} : vector<2x16x1xf32> -> vector<2x16x1xf32>
    %110 = vector.broadcast %109 : vector<2x16x1xf32> to vector<2x16x16xf32>
    %111 = arith.mulf %106, %110 : vector<2x16x16xf32>
    %112 = vector.extract_strided_slice %35 {offsets = [16, 0], sizes = [8, 32], strides = [1, 1]} : vector<32x32xbf16> to vector<8x32xbf16>
    %cst_37 = arith.constant dense<0.000000e+00> : vector<32x32xf32>
    %113 = tpu.matmul %98, %112, %cst_37 {dimension_numbers = #tpu.dot_dimension_numbers<[1], [0], [0], [1], [0, 0, 1, 1], [], []>} : vector<32x8xbf16>, vector<8x32xbf16>, vector<32x32xf32> -> vector<32x32xf32>
    %114 = arith.truncf %113 : vector<32x32xf32> to vector<32x32xbf16>
    %115 = vector.shape_cast %114 : vector<32x32xbf16> to vector<2x16x32xbf16>
    %116 = arith.truncf %111 : vector<2x16x16xf32> to vector<2x16x16xbf16>
    "tpu.trace_start"() <{level = 10 : i32, message = "bij,bjd->bid"}> : () -> ()
    %cst_38 = arith.constant dense<0.000000e+00> : vector<2x16x32xf32>
    %117 = tpu.matmul %116, %115, %cst_38 {dimension_numbers = #tpu.dot_dimension_numbers<[2], [1], [1], [2], [0, 0, 0, 1, 1, 2], [0], [0]>} : vector<2x16x16xbf16>, vector<2x16x32xbf16>, vector<2x16x32xf32> -> vector<2x16x32xf32>
    "tpu.trace_stop"() : () -> ()
    %118 = arith.addf %90, %117 : vector<2x16x32xf32>
    %119 = vector.extract_strided_slice %34 {offsets = [0, 24], sizes = [32, 8], strides = [1, 1]} : vector<32x96xf32> to vector<32x8xf32>
    %120 = arith.truncf %119 : vector<32x8xf32> to vector<32x8xbf16>
    %121 = vector.shape_cast %120 : vector<32x8xbf16> to vector<2x16x8xbf16>
    %122 = vector.extract_strided_slice %34 {offsets = [0, 56], sizes = [32, 8], strides = [1, 1]} : vector<32x96xf32> to vector<32x8xf32>
    %123 = arith.truncf %122 : vector<32x8xf32> to vector<32x8xbf16>
    %124 = vector.shape_cast %123 : vector<32x8xbf16> to vector<2x16x8xbf16>
    %125 = vector.extract_strided_slice %34 {offsets = [0, 88], sizes = [32, 8], strides = [1, 1]} : vector<32x96xf32> to vector<32x8xf32>
    %126 = arith.truncf %125 : vector<32x8xf32> to vector<32x8xbf16>
    "tpu.trace_start"() <{level = 10 : i32, message = "bid,bjd->bij"}> : () -> ()
    %cst_39 = arith.constant dense<0.000000e+00> : vector<2x16x16xf32>
    %127 = tpu.matmul %121, %124, %cst_39 {dimension_numbers = #tpu.dot_dimension_numbers<[2], [2], [1], [1], [0, 0, 0, 1, 1, 1], [0], [0]>} : vector<2x16x8xbf16>, vector<2x16x8xbf16>, vector<2x16x16xf32> -> vector<2x16x16xf32>
    "tpu.trace_stop"() : () -> ()
    %cst_40 = arith.constant 0.353553385 : f32
    %128 = vector.broadcast %cst_40 : f32 to vector<2x16x16xf32>
    %129 = arith.mulf %127, %128 : vector<2x16x16xf32>
    %cst_41 = arith.constant dense<0xFF800000> : vector<2x16xf32>
    %130 = vector.multi_reduction <maximumf>, %129, %cst_41 [2] : vector<2x16x16xf32> to vector<2x16xf32>
    %131 = vector.shape_cast %130 : vector<2x16xf32> to vector<2x16x1xf32>
    %132 = vector.broadcast %131 : vector<2x16x1xf32> to vector<2x16x16xf32>
    %133 = arith.subf %129, %132 : vector<2x16x16xf32>
    %134 = math.exp %133 : vector<2x16x16xf32>
    %cst_42 = arith.constant dense<0.000000e+00> : vector<2x16xf32>
    %135 = vector.multi_reduction <add>, %134, %cst_42 [2] : vector<2x16x16xf32> to vector<2x16xf32>
    %136 = vector.shape_cast %135 : vector<2x16xf32> to vector<2x16x1xf32>
    %137 = tpu.reciprocal %136 {approx = true} : vector<2x16x1xf32> -> vector<2x16x1xf32>
    %138 = vector.broadcast %137 : vector<2x16x1xf32> to vector<2x16x16xf32>
    %139 = arith.mulf %134, %138 : vector<2x16x16xf32>
    %140 = vector.extract_strided_slice %35 {offsets = [24, 0], sizes = [8, 32], strides = [1, 1]} : vector<32x32xbf16> to vector<8x32xbf16>
    %cst_43 = arith.constant dense<0.000000e+00> : vector<32x32xf32>
    %141 = tpu.matmul %126, %140, %cst_43 {dimension_numbers = #tpu.dot_dimension_numbers<[1], [0], [0], [1], [0, 0, 1, 1], [], []>} : vector<32x8xbf16>, vector<8x32xbf16>, vector<32x32xf32> -> vector<32x32xf32>
    %142 = arith.truncf %141 : vector<32x32xf32> to vector<32x32xbf16>
    %143 = vector.shape_cast %142 : vector<32x32xbf16> to vector<2x16x32xbf16>
    %144 = arith.truncf %139 : vector<2x16x16xf32> to vector<2x16x16xbf16>
    "tpu.trace_start"() <{level = 10 : i32, message = "bij,bjd->bid"}> : () -> ()
    %cst_44 = arith.constant dense<0.000000e+00> : vector<2x16x32xf32>
    %145 = tpu.matmul %144, %143, %cst_44 {dimension_numbers = #tpu.dot_dimension_numbers<[2], [1], [1], [2], [0, 0, 0, 1, 1, 2], [0], [0]>} : vector<2x16x16xbf16>, vector<2x16x32xbf16>, vector<2x16x32xf32> -> vector<2x16x32xf32>
    "tpu.trace_stop"() : () -> ()
    %146 = arith.addf %118, %145 : vector<2x16x32xf32>
    %147 = vector.shape_cast %146 : vector<2x16x32xf32> to vector<32x32xf32>
    %148 = arith.addf %7, %147 : vector<32x32xf32>
    %c0_45 = arith.constant 0 : index
    %c0_46 = arith.constant 0 : index
    %149 = vector.load %arg8[%c0_45, %c0_46] : memref<1x32xf32, #tpu.memory_space<vmem>>, vector<1x32xf32>
    %c0_47 = arith.constant 0 : index
    %c0_48 = arith.constant 0 : index
    %150 = vector.load %arg9[%c0_47, %c0_48] : memref<1x32xf32, #tpu.memory_space<vmem>>, vector<1x32xf32>
    %cst_49 = arith.constant dense<0.000000e+00> : vector<32xf32>
    %151 = vector.multi_reduction <add>, %148, %cst_49 [1] : vector<32x32xf32> to vector<32xf32>
    %152 = vector.shape_cast %151 : vector<32xf32> to vector<32x1xf32>
    %cst_50 = arith.constant 3.200000e+01 : f32
    %153 = vector.broadcast %cst_50 : f32 to vector<32x1xf32>
    %154 = arith.divf %152, %153 : vector<32x1xf32>
    %155 = vector.broadcast %154 : vector<32x1xf32> to vector<32x32xf32>
    %156 = arith.subf %148, %155 : vector<32x32xf32>
    %157 = arith.mulf %156, %156 : vector<32x32xf32>
    %cst_51 = arith.constant dense<0.000000e+00> : vector<32xf32>
    %158 = vector.multi_reduction <add>, %157, %cst_51 [1] : vector<32x32xf32> to vector<32xf32>
    %159 = vector.shape_cast %158 : vector<32xf32> to vector<32x1xf32>
    %cst_52 = arith.constant 3.200000e+01 : f32
    %160 = vector.broadcast %cst_52 : f32 to vector<32x1xf32>
    %161 = arith.divf %159, %160 : vector<32x1xf32>
    %162 = vector.broadcast %154 : vector<32x1xf32> to vector<32x32xf32>
    %163 = arith.subf %148, %162 : vector<32x32xf32>
    %cst_53 = arith.constant 9.99999974E-6 : f32
    %164 = vector.broadcast %cst_53 : f32 to vector<32x1xf32>
    %165 = arith.addf %161, %164 : vector<32x1xf32>
    %166 = math.rsqrt %165 : vector<32x1xf32>
    %167 = vector.broadcast %166 : vector<32x1xf32> to vector<32x32xf32>
    %168 = arith.mulf %163, %167 : vector<32x32xf32>
    %169 = vector.broadcast %149 : vector<1x32xf32> to vector<32x32xf32>
    %170 = arith.mulf %168, %169 : vector<32x32xf32>
    %171 = vector.broadcast %150 : vector<1x32xf32> to vector<32x32xf32>
    %172 = arith.addf %170, %171 : vector<32x32xf32>
    %173 = arith.truncf %172 : vector<32x32xf32> to vector<32x32xbf16>
    %c0_54 = arith.constant 0 : index
    %c0_55 = arith.constant 0 : index
    %174 = vector.load %arg10[%c0_54, %c0_55] : memref<32x64xbf16, #tpu.memory_space<vmem>>, vector<32x64xbf16>
    %cst_56 = arith.constant dense<0.000000e+00> : vector<32x64xf32>
    %175 = tpu.matmul %173, %174, %cst_56 {dimension_numbers = #tpu.dot_dimension_numbers<[1], [0], [0], [1], [0, 0, 1, 1], [], []>} : vector<32x32xbf16>, vector<32x64xbf16>, vector<32x64xf32> -> vector<32x64xf32>
    %c0_57 = arith.constant 0 : index
    %c0_58 = arith.constant 0 : index
    %176 = vector.load %arg11[%c0_57, %c0_58] : memref<1x64xf32, #tpu.memory_space<vmem>>, vector<1x64xf32>
    %177 = vector.broadcast %176 : vector<1x64xf32> to vector<32x64xf32>
    %178 = arith.addf %175, %177 : vector<32x64xf32>
    %cst_59 = arith.constant 5.000000e-01 : f32
    %179 = vector.broadcast %cst_59 : f32 to vector<32x64xf32>
    %180 = arith.mulf %179, %178 : vector<32x64xf32>
    %cst_60 = arith.constant 4.471500e-02 : f32
    %181 = vector.broadcast %cst_60 : f32 to vector<32x64xf32>
    %182 = arith.mulf %181, %178 : vector<32x64xf32>
    %183 = arith.mulf %182, %178 : vector<32x64xf32>
    %184 = arith.mulf %183, %178 : vector<32x64xf32>
    %185 = arith.addf %178, %184 : vector<32x64xf32>
    %cst_61 = arith.constant 0.797884583 : f32
    %186 = vector.broadcast %cst_61 : f32 to vector<32x64xf32>
    %187 = arith.mulf %186, %185 : vector<32x64xf32>
    %188 = math.tanh %187 : vector<32x64xf32>
    %cst_62 = arith.constant 1.000000e+00 : f32
    %189 = vector.broadcast %cst_62 : f32 to vector<32x64xf32>
    %190 = arith.addf %189, %188 : vector<32x64xf32>
    %191 = arith.mulf %180, %190 : vector<32x64xf32>
    %192 = arith.truncf %191 : vector<32x64xf32> to vector<32x64xbf16>
    %c0_63 = arith.constant 0 : index
    %c0_64 = arith.constant 0 : index
    %193 = vector.load %arg12[%c0_63, %c0_64] : memref<64x32xbf16, #tpu.memory_space<vmem>>, vector<64x32xbf16>
    %cst_65 = arith.constant dense<0.000000e+00> : vector<32x32xf32>
    %194 = tpu.matmul %192, %193, %cst_65 {dimension_numbers = #tpu.dot_dimension_numbers<[1], [0], [0], [1], [0, 0, 1, 1], [], []>} : vector<32x64xbf16>, vector<64x32xbf16>, vector<32x32xf32> -> vector<32x32xf32>
    %c0_66 = arith.constant 0 : index
    %c0_67 = arith.constant 0 : index
    %195 = vector.load %arg13[%c0_66, %c0_67] : memref<1x32xf32, #tpu.memory_space<vmem>>, vector<1x32xf32>
    %196 = vector.broadcast %195 : vector<1x32xf32> to vector<32x32xf32>
    %197 = arith.addf %194, %196 : vector<32x32xf32>
    %198 = arith.addf %148, %197 : vector<32x32xf32>
    %c0_68 = arith.constant 0 : index
    %c0_69 = arith.constant 0 : index
    %199 = vector.load %arg14[%c0_68, %c0_69] : memref<1x32xf32, #tpu.memory_space<vmem>>, vector<1x32xf32>
    %c0_70 = arith.constant 0 : index
    %c0_71 = arith.constant 0 : index
    %200 = vector.load %arg15[%c0_70, %c0_71] : memref<1x32xf32, #tpu.memory_space<vmem>>, vector<1x32xf32>
    %cst_72 = arith.constant dense<0.000000e+00> : vector<32xf32>
    %201 = vector.multi_reduction <add>, %198, %cst_72 [1] : vector<32x32xf32> to vector<32xf32>
    %202 = vector.shape_cast %201 : vector<32xf32> to vector<32x1xf32>
    %cst_73 = arith.constant 3.200000e+01 : f32
    %203 = vector.broadcast %cst_73 : f32 to vector<32x1xf32>
    %204 = arith.divf %202, %203 : vector<32x1xf32>
    %205 = vector.broadcast %204 : vector<32x1xf32> to vector<32x32xf32>
    %206 = arith.subf %198, %205 : vector<32x32xf32>
    %207 = arith.mulf %206, %206 : vector<32x32xf32>
    %cst_74 = arith.constant dense<0.000000e+00> : vector<32xf32>
    %208 = vector.multi_reduction <add>, %207, %cst_74 [1] : vector<32x32xf32> to vector<32xf32>
    %209 = vector.shape_cast %208 : vector<32xf32> to vector<32x1xf32>
    %cst_75 = arith.constant 3.200000e+01 : f32
    %210 = vector.broadcast %cst_75 : f32 to vector<32x1xf32>
    %211 = arith.divf %209, %210 : vector<32x1xf32>
    %212 = vector.broadcast %204 : vector<32x1xf32> to vector<32x32xf32>
    %213 = arith.subf %198, %212 : vector<32x32xf32>
    %cst_76 = arith.constant 9.99999974E-6 : f32
    %214 = vector.broadcast %cst_76 : f32 to vector<32x1xf32>
    %215 = arith.addf %211, %214 : vector<32x1xf32>
    %216 = math.rsqrt %215 : vector<32x1xf32>
    %217 = vector.broadcast %216 : vector<32x1xf32> to vector<32x32xf32>
    %218 = arith.mulf %213, %217 : vector<32x32xf32>
    %219 = vector.broadcast %199 : vector<1x32xf32> to vector<32x32xf32>
    %220 = arith.mulf %218, %219 : vector<32x32xf32>
    %221 = vector.broadcast %200 : vector<1x32xf32> to vector<32x32xf32>
    %222 = arith.addf %220, %221 : vector<32x32xf32>
    %223 = arith.truncf %222 : vector<32x32xf32> to vector<32x32xbf16>
    %c0_77 = arith.constant 0 : index
    %c0_78 = arith.constant 0 : index
    %224 = vector.load %arg16[%c0_77, %c0_78] : memref<32x96xbf16, #tpu.memory_space<vmem>>, vector<32x96xbf16>
    %cst_79 = arith.constant dense<0.000000e+00> : vector<32x96xf32>
    %225 = tpu.matmul %223, %224, %cst_79 {dimension_numbers = #tpu.dot_dimension_numbers<[1], [0], [0], [1], [0, 0, 1, 1], [], []>} : vector<32x32xbf16>, vector<32x96xbf16>, vector<32x96xf32> -> vector<32x96xf32>
    %c0_80 = arith.constant 0 : index
    %c0_81 = arith.constant 0 : index
    %226 = vector.load %arg17[%c0_80, %c0_81] : memref<32x32xbf16, #tpu.memory_space<vmem>>, vector<32x32xbf16>
    %227 = vector.extract_strided_slice %225 {offsets = [0, 0], sizes = [32, 8], strides = [1, 1]} : vector<32x96xf32> to vector<32x8xf32>
    %228 = arith.truncf %227 : vector<32x8xf32> to vector<32x8xbf16>
    %229 = vector.shape_cast %228 : vector<32x8xbf16> to vector<2x16x8xbf16>
    %230 = vector.extract_strided_slice %225 {offsets = [0, 32], sizes = [32, 8], strides = [1, 1]} : vector<32x96xf32> to vector<32x8xf32>
    %231 = arith.truncf %230 : vector<32x8xf32> to vector<32x8xbf16>
    %232 = vector.shape_cast %231 : vector<32x8xbf16> to vector<2x16x8xbf16>
    %233 = vector.extract_strided_slice %225 {offsets = [0, 64], sizes = [32, 8], strides = [1, 1]} : vector<32x96xf32> to vector<32x8xf32>
    %234 = arith.truncf %233 : vector<32x8xf32> to vector<32x8xbf16>
    "tpu.trace_start"() <{level = 10 : i32, message = "bid,bjd->bij"}> : () -> ()
    %cst_82 = arith.constant dense<0.000000e+00> : vector<2x16x16xf32>
    %235 = tpu.matmul %229, %232, %cst_82 {dimension_numbers = #tpu.dot_dimension_numbers<[2], [2], [1], [1], [0, 0, 0, 1, 1, 1], [0], [0]>} : vector<2x16x8xbf16>, vector<2x16x8xbf16>, vector<2x16x16xf32> -> vector<2x16x16xf32>
    "tpu.trace_stop"() : () -> ()
    %cst_83 = arith.constant 0.353553385 : f32
    %236 = vector.broadcast %cst_83 : f32 to vector<2x16x16xf32>
    %237 = arith.mulf %235, %236 : vector<2x16x16xf32>
    %cst_84 = arith.constant dense<0xFF800000> : vector<2x16xf32>
    %238 = vector.multi_reduction <maximumf>, %237, %cst_84 [2] : vector<2x16x16xf32> to vector<2x16xf32>
    %239 = vector.shape_cast %238 : vector<2x16xf32> to vector<2x16x1xf32>
    %240 = vector.broadcast %239 : vector<2x16x1xf32> to vector<2x16x16xf32>
    %241 = arith.subf %237, %240 : vector<2x16x16xf32>
    %242 = math.exp %241 : vector<2x16x16xf32>
    %cst_85 = arith.constant dense<0.000000e+00> : vector<2x16xf32>
    %243 = vector.multi_reduction <add>, %242, %cst_85 [2] : vector<2x16x16xf32> to vector<2x16xf32>
    %244 = vector.shape_cast %243 : vector<2x16xf32> to vector<2x16x1xf32>
    %245 = tpu.reciprocal %244 {approx = true} : vector<2x16x1xf32> -> vector<2x16x1xf32>
    %246 = vector.broadcast %245 : vector<2x16x1xf32> to vector<2x16x16xf32>
    %247 = arith.mulf %242, %246 : vector<2x16x16xf32>
    %248 = vector.extract_strided_slice %226 {offsets = [0, 0], sizes = [8, 32], strides = [1, 1]} : vector<32x32xbf16> to vector<8x32xbf16>
    %cst_86 = arith.constant dense<0.000000e+00> : vector<32x32xf32>
    %249 = tpu.matmul %234, %248, %cst_86 {dimension_numbers = #tpu.dot_dimension_numbers<[1], [0], [0], [1], [0, 0, 1, 1], [], []>} : vector<32x8xbf16>, vector<8x32xbf16>, vector<32x32xf32> -> vector<32x32xf32>
    %250 = arith.truncf %249 : vector<32x32xf32> to vector<32x32xbf16>
    %251 = vector.shape_cast %250 : vector<32x32xbf16> to vector<2x16x32xbf16>
    %252 = arith.truncf %247 : vector<2x16x16xf32> to vector<2x16x16xbf16>
    "tpu.trace_start"() <{level = 10 : i32, message = "bij,bjd->bid"}> : () -> ()
    %cst_87 = arith.constant dense<0.000000e+00> : vector<2x16x32xf32>
    %253 = tpu.matmul %252, %251, %cst_87 {dimension_numbers = #tpu.dot_dimension_numbers<[2], [1], [1], [2], [0, 0, 0, 1, 1, 2], [0], [0]>} : vector<2x16x16xbf16>, vector<2x16x32xbf16>, vector<2x16x32xf32> -> vector<2x16x32xf32>
    "tpu.trace_stop"() : () -> ()
    %254 = vector.extract_strided_slice %225 {offsets = [0, 8], sizes = [32, 8], strides = [1, 1]} : vector<32x96xf32> to vector<32x8xf32>
    %255 = arith.truncf %254 : vector<32x8xf32> to vector<32x8xbf16>
    %256 = vector.shape_cast %255 : vector<32x8xbf16> to vector<2x16x8xbf16>
    %257 = vector.extract_strided_slice %225 {offsets = [0, 40], sizes = [32, 8], strides = [1, 1]} : vector<32x96xf32> to vector<32x8xf32>
    %258 = arith.truncf %257 : vector<32x8xf32> to vector<32x8xbf16>
    %259 = vector.shape_cast %258 : vector<32x8xbf16> to vector<2x16x8xbf16>
    %260 = vector.extract_strided_slice %225 {offsets = [0, 72], sizes = [32, 8], strides = [1, 1]} : vector<32x96xf32> to vector<32x8xf32>
    %261 = arith.truncf %260 : vector<32x8xf32> to vector<32x8xbf16>
    "tpu.trace_start"() <{level = 10 : i32, message = "bid,bjd->bij"}> : () -> ()
    %cst_88 = arith.constant dense<0.000000e+00> : vector<2x16x16xf32>
    %262 = tpu.matmul %256, %259, %cst_88 {dimension_numbers = #tpu.dot_dimension_numbers<[2], [2], [1], [1], [0, 0, 0, 1, 1, 1], [0], [0]>} : vector<2x16x8xbf16>, vector<2x16x8xbf16>, vector<2x16x16xf32> -> vector<2x16x16xf32>
    "tpu.trace_stop"() : () -> ()
    %cst_89 = arith.constant 0.353553385 : f32
    %263 = vector.broadcast %cst_89 : f32 to vector<2x16x16xf32>
    %264 = arith.mulf %262, %263 : vector<2x16x16xf32>
    %cst_90 = arith.constant dense<0xFF800000> : vector<2x16xf32>
    %265 = vector.multi_reduction <maximumf>, %264, %cst_90 [2] : vector<2x16x16xf32> to vector<2x16xf32>
    %266 = vector.shape_cast %265 : vector<2x16xf32> to vector<2x16x1xf32>
    %267 = vector.broadcast %266 : vector<2x16x1xf32> to vector<2x16x16xf32>
    %268 = arith.subf %264, %267 : vector<2x16x16xf32>
    %269 = math.exp %268 : vector<2x16x16xf32>
    %cst_91 = arith.constant dense<0.000000e+00> : vector<2x16xf32>
    %270 = vector.multi_reduction <add>, %269, %cst_91 [2] : vector<2x16x16xf32> to vector<2x16xf32>
    %271 = vector.shape_cast %270 : vector<2x16xf32> to vector<2x16x1xf32>
    %272 = tpu.reciprocal %271 {approx = true} : vector<2x16x1xf32> -> vector<2x16x1xf32>
    %273 = vector.broadcast %272 : vector<2x16x1xf32> to vector<2x16x16xf32>
    %274 = arith.mulf %269, %273 : vector<2x16x16xf32>
    %275 = vector.extract_strided_slice %226 {offsets = [8, 0], sizes = [8, 32], strides = [1, 1]} : vector<32x32xbf16> to vector<8x32xbf16>
    %cst_92 = arith.constant dense<0.000000e+00> : vector<32x32xf32>
    %276 = tpu.matmul %261, %275, %cst_92 {dimension_numbers = #tpu.dot_dimension_numbers<[1], [0], [0], [1], [0, 0, 1, 1], [], []>} : vector<32x8xbf16>, vector<8x32xbf16>, vector<32x32xf32> -> vector<32x32xf32>
    %277 = arith.truncf %276 : vector<32x32xf32> to vector<32x32xbf16>
    %278 = vector.shape_cast %277 : vector<32x32xbf16> to vector<2x16x32xbf16>
    %279 = arith.truncf %274 : vector<2x16x16xf32> to vector<2x16x16xbf16>
    "tpu.trace_start"() <{level = 10 : i32, message = "bij,bjd->bid"}> : () -> ()
    %cst_93 = arith.constant dense<0.000000e+00> : vector<2x16x32xf32>
    %280 = tpu.matmul %279, %278, %cst_93 {dimension_numbers = #tpu.dot_dimension_numbers<[2], [1], [1], [2], [0, 0, 0, 1, 1, 2], [0], [0]>} : vector<2x16x16xbf16>, vector<2x16x32xbf16>, vector<2x16x32xf32> -> vector<2x16x32xf32>
    "tpu.trace_stop"() : () -> ()
    %281 = arith.addf %253, %280 : vector<2x16x32xf32>
    %282 = vector.extract_strided_slice %225 {offsets = [0, 16], sizes = [32, 8], strides = [1, 1]} : vector<32x96xf32> to vector<32x8xf32>
    %283 = arith.truncf %282 : vector<32x8xf32> to vector<32x8xbf16>
    %284 = vector.shape_cast %283 : vector<32x8xbf16> to vector<2x16x8xbf16>
    %285 = vector.extract_strided_slice %225 {offsets = [0, 48], sizes = [32, 8], strides = [1, 1]} : vector<32x96xf32> to vector<32x8xf32>
    %286 = arith.truncf %285 : vector<32x8xf32> to vector<32x8xbf16>
    %287 = vector.shape_cast %286 : vector<32x8xbf16> to vector<2x16x8xbf16>
    %288 = vector.extract_strided_slice %225 {offsets = [0, 80], sizes = [32, 8], strides = [1, 1]} : vector<32x96xf32> to vector<32x8xf32>
    %289 = arith.truncf %288 : vector<32x8xf32> to vector<32x8xbf16>
    "tpu.trace_start"() <{level = 10 : i32, message = "bid,bjd->bij"}> : () -> ()
    %cst_94 = arith.constant dense<0.000000e+00> : vector<2x16x16xf32>
    %290 = tpu.matmul %284, %287, %cst_94 {dimension_numbers = #tpu.dot_dimension_numbers<[2], [2], [1], [1], [0, 0, 0, 1, 1, 1], [0], [0]>} : vector<2x16x8xbf16>, vector<2x16x8xbf16>, vector<2x16x16xf32> -> vector<2x16x16xf32>
    "tpu.trace_stop"() : () -> ()
    %cst_95 = arith.constant 0.353553385 : f32
    %291 = vector.broadcast %cst_95 : f32 to vector<2x16x16xf32>
    %292 = arith.mulf %290, %291 : vector<2x16x16xf32>
    %cst_96 = arith.constant dense<0xFF800000> : vector<2x16xf32>
    %293 = vector.multi_reduction <maximumf>, %292, %cst_96 [2] : vector<2x16x16xf32> to vector<2x16xf32>
    %294 = vector.shape_cast %293 : vector<2x16xf32> to vector<2x16x1xf32>
    %295 = vector.broadcast %294 : vector<2x16x1xf32> to vector<2x16x16xf32>
    %296 = arith.subf %292, %295 : vector<2x16x16xf32>
    %297 = math.exp %296 : vector<2x16x16xf32>
    %cst_97 = arith.constant dense<0.000000e+00> : vector<2x16xf32>
    %298 = vector.multi_reduction <add>, %297, %cst_97 [2] : vector<2x16x16xf32> to vector<2x16xf32>
    %299 = vector.shape_cast %298 : vector<2x16xf32> to vector<2x16x1xf32>
    %300 = tpu.reciprocal %299 {approx = true} : vector<2x16x1xf32> -> vector<2x16x1xf32>
    %301 = vector.broadcast %300 : vector<2x16x1xf32> to vector<2x16x16xf32>
    %302 = arith.mulf %297, %301 : vector<2x16x16xf32>
    %303 = vector.extract_strided_slice %226 {offsets = [16, 0], sizes = [8, 32], strides = [1, 1]} : vector<32x32xbf16> to vector<8x32xbf16>
    %cst_98 = arith.constant dense<0.000000e+00> : vector<32x32xf32>
    %304 = tpu.matmul %289, %303, %cst_98 {dimension_numbers = #tpu.dot_dimension_numbers<[1], [0], [0], [1], [0, 0, 1, 1], [], []>} : vector<32x8xbf16>, vector<8x32xbf16>, vector<32x32xf32> -> vector<32x32xf32>
    %305 = arith.truncf %304 : vector<32x32xf32> to vector<32x32xbf16>
    %306 = vector.shape_cast %305 : vector<32x32xbf16> to vector<2x16x32xbf16>
    %307 = arith.truncf %302 : vector<2x16x16xf32> to vector<2x16x16xbf16>
    "tpu.trace_start"() <{level = 10 : i32, message = "bij,bjd->bid"}> : () -> ()
    %cst_99 = arith.constant dense<0.000000e+00> : vector<2x16x32xf32>
    %308 = tpu.matmul %307, %306, %cst_99 {dimension_numbers = #tpu.dot_dimension_numbers<[2], [1], [1], [2], [0, 0, 0, 1, 1, 2], [0], [0]>} : vector<2x16x16xbf16>, vector<2x16x32xbf16>, vector<2x16x32xf32> -> vector<2x16x32xf32>
    "tpu.trace_stop"() : () -> ()
    %309 = arith.addf %281, %308 : vector<2x16x32xf32>
    %310 = vector.extract_strided_slice %225 {offsets = [0, 24], sizes = [32, 8], strides = [1, 1]} : vector<32x96xf32> to vector<32x8xf32>
    %311 = arith.truncf %310 : vector<32x8xf32> to vector<32x8xbf16>
    %312 = vector.shape_cast %311 : vector<32x8xbf16> to vector<2x16x8xbf16>
    %313 = vector.extract_strided_slice %225 {offsets = [0, 56], sizes = [32, 8], strides = [1, 1]} : vector<32x96xf32> to vector<32x8xf32>
    %314 = arith.truncf %313 : vector<32x8xf32> to vector<32x8xbf16>
    %315 = vector.shape_cast %314 : vector<32x8xbf16> to vector<2x16x8xbf16>
    %316 = vector.extract_strided_slice %225 {offsets = [0, 88], sizes = [32, 8], strides = [1, 1]} : vector<32x96xf32> to vector<32x8xf32>
    %317 = arith.truncf %316 : vector<32x8xf32> to vector<32x8xbf16>
    "tpu.trace_start"() <{level = 10 : i32, message = "bid,bjd->bij"}> : () -> ()
    %cst_100 = arith.constant dense<0.000000e+00> : vector<2x16x16xf32>
    %318 = tpu.matmul %312, %315, %cst_100 {dimension_numbers = #tpu.dot_dimension_numbers<[2], [2], [1], [1], [0, 0, 0, 1, 1, 1], [0], [0]>} : vector<2x16x8xbf16>, vector<2x16x8xbf16>, vector<2x16x16xf32> -> vector<2x16x16xf32>
    "tpu.trace_stop"() : () -> ()
    %cst_101 = arith.constant 0.353553385 : f32
    %319 = vector.broadcast %cst_101 : f32 to vector<2x16x16xf32>
    %320 = arith.mulf %318, %319 : vector<2x16x16xf32>
    %cst_102 = arith.constant dense<0xFF800000> : vector<2x16xf32>
    %321 = vector.multi_reduction <maximumf>, %320, %cst_102 [2] : vector<2x16x16xf32> to vector<2x16xf32>
    %322 = vector.shape_cast %321 : vector<2x16xf32> to vector<2x16x1xf32>
    %323 = vector.broadcast %322 : vector<2x16x1xf32> to vector<2x16x16xf32>
    %324 = arith.subf %320, %323 : vector<2x16x16xf32>
    %325 = math.exp %324 : vector<2x16x16xf32>
    %cst_103 = arith.constant dense<0.000000e+00> : vector<2x16xf32>
    %326 = vector.multi_reduction <add>, %325, %cst_103 [2] : vector<2x16x16xf32> to vector<2x16xf32>
    %327 = vector.shape_cast %326 : vector<2x16xf32> to vector<2x16x1xf32>
    %328 = tpu.reciprocal %327 {approx = true} : vector<2x16x1xf32> -> vector<2x16x1xf32>
    %329 = vector.broadcast %328 : vector<2x16x1xf32> to vector<2x16x16xf32>
    %330 = arith.mulf %325, %329 : vector<2x16x16xf32>
    %331 = vector.extract_strided_slice %226 {offsets = [24, 0], sizes = [8, 32], strides = [1, 1]} : vector<32x32xbf16> to vector<8x32xbf16>
    %cst_104 = arith.constant dense<0.000000e+00> : vector<32x32xf32>
    %332 = tpu.matmul %317, %331, %cst_104 {dimension_numbers = #tpu.dot_dimension_numbers<[1], [0], [0], [1], [0, 0, 1, 1], [], []>} : vector<32x8xbf16>, vector<8x32xbf16>, vector<32x32xf32> -> vector<32x32xf32>
    %333 = arith.truncf %332 : vector<32x32xf32> to vector<32x32xbf16>
    %334 = vector.shape_cast %333 : vector<32x32xbf16> to vector<2x16x32xbf16>
    %335 = arith.truncf %330 : vector<2x16x16xf32> to vector<2x16x16xbf16>
    "tpu.trace_start"() <{level = 10 : i32, message = "bij,bjd->bid"}> : () -> ()
    %cst_105 = arith.constant dense<0.000000e+00> : vector<2x16x32xf32>
    %336 = tpu.matmul %335, %334, %cst_105 {dimension_numbers = #tpu.dot_dimension_numbers<[2], [1], [1], [2], [0, 0, 0, 1, 1, 2], [0], [0]>} : vector<2x16x16xbf16>, vector<2x16x32xbf16>, vector<2x16x32xf32> -> vector<2x16x32xf32>
    "tpu.trace_stop"() : () -> ()
    %337 = arith.addf %309, %336 : vector<2x16x32xf32>
    %338 = vector.shape_cast %337 : vector<2x16x32xf32> to vector<32x32xf32>
    %339 = arith.addf %198, %338 : vector<32x32xf32>
    %c0_106 = arith.constant 0 : index
    %c0_107 = arith.constant 0 : index
    %340 = vector.load %arg18[%c0_106, %c0_107] : memref<1x32xf32, #tpu.memory_space<vmem>>, vector<1x32xf32>
    %c0_108 = arith.constant 0 : index
    %c0_109 = arith.constant 0 : index
    %341 = vector.load %arg19[%c0_108, %c0_109] : memref<1x32xf32, #tpu.memory_space<vmem>>, vector<1x32xf32>
    %cst_110 = arith.constant dense<0.000000e+00> : vector<32xf32>
    %342 = vector.multi_reduction <add>, %339, %cst_110 [1] : vector<32x32xf32> to vector<32xf32>
    %343 = vector.shape_cast %342 : vector<32xf32> to vector<32x1xf32>
    %cst_111 = arith.constant 3.200000e+01 : f32
    %344 = vector.broadcast %cst_111 : f32 to vector<32x1xf32>
    %345 = arith.divf %343, %344 : vector<32x1xf32>
    %346 = vector.broadcast %345 : vector<32x1xf32> to vector<32x32xf32>
    %347 = arith.subf %339, %346 : vector<32x32xf32>
    %348 = arith.mulf %347, %347 : vector<32x32xf32>
    %cst_112 = arith.constant dense<0.000000e+00> : vector<32xf32>
    %349 = vector.multi_reduction <add>, %348, %cst_112 [1] : vector<32x32xf32> to vector<32xf32>
    %350 = vector.shape_cast %349 : vector<32xf32> to vector<32x1xf32>
    %cst_113 = arith.constant 3.200000e+01 : f32
    %351 = vector.broadcast %cst_113 : f32 to vector<32x1xf32>
    %352 = arith.divf %350, %351 : vector<32x1xf32>
    %353 = vector.broadcast %345 : vector<32x1xf32> to vector<32x32xf32>
    %354 = arith.subf %339, %353 : vector<32x32xf32>
    %cst_114 = arith.constant 9.99999974E-6 : f32
    %355 = vector.broadcast %cst_114 : f32 to vector<32x1xf32>
    %356 = arith.addf %352, %355 : vector<32x1xf32>
    %357 = math.rsqrt %356 : vector<32x1xf32>
    %358 = vector.broadcast %357 : vector<32x1xf32> to vector<32x32xf32>
    %359 = arith.mulf %354, %358 : vector<32x32xf32>
    %360 = vector.broadcast %340 : vector<1x32xf32> to vector<32x32xf32>
    %361 = arith.mulf %359, %360 : vector<32x32xf32>
    %362 = vector.broadcast %341 : vector<1x32xf32> to vector<32x32xf32>
    %363 = arith.addf %361, %362 : vector<32x32xf32>
    %364 = arith.truncf %363 : vector<32x32xf32> to vector<32x32xbf16>
    %c0_115 = arith.constant 0 : index
    %c0_116 = arith.constant 0 : index
    %365 = vector.load %arg20[%c0_115, %c0_116] : memref<32x64xbf16, #tpu.memory_space<vmem>>, vector<32x64xbf16>
    %cst_117 = arith.constant dense<0.000000e+00> : vector<32x64xf32>
    %366 = tpu.matmul %364, %365, %cst_117 {dimension_numbers = #tpu.dot_dimension_numbers<[1], [0], [0], [1], [0, 0, 1, 1], [], []>} : vector<32x32xbf16>, vector<32x64xbf16>, vector<32x64xf32> -> vector<32x64xf32>
    %c0_118 = arith.constant 0 : index
    %c0_119 = arith.constant 0 : index
    %367 = vector.load %arg21[%c0_118, %c0_119] : memref<1x64xf32, #tpu.memory_space<vmem>>, vector<1x64xf32>
    %368 = vector.broadcast %367 : vector<1x64xf32> to vector<32x64xf32>
    %369 = arith.addf %366, %368 : vector<32x64xf32>
    %cst_120 = arith.constant 5.000000e-01 : f32
    %370 = vector.broadcast %cst_120 : f32 to vector<32x64xf32>
    %371 = arith.mulf %370, %369 : vector<32x64xf32>
    %cst_121 = arith.constant 4.471500e-02 : f32
    %372 = vector.broadcast %cst_121 : f32 to vector<32x64xf32>
    %373 = arith.mulf %372, %369 : vector<32x64xf32>
    %374 = arith.mulf %373, %369 : vector<32x64xf32>
    %375 = arith.mulf %374, %369 : vector<32x64xf32>
    %376 = arith.addf %369, %375 : vector<32x64xf32>
    %cst_122 = arith.constant 0.797884583 : f32
    %377 = vector.broadcast %cst_122 : f32 to vector<32x64xf32>
    %378 = arith.mulf %377, %376 : vector<32x64xf32>
    %379 = math.tanh %378 : vector<32x64xf32>
    %cst_123 = arith.constant 1.000000e+00 : f32
    %380 = vector.broadcast %cst_123 : f32 to vector<32x64xf32>
    %381 = arith.addf %380, %379 : vector<32x64xf32>
    %382 = arith.mulf %371, %381 : vector<32x64xf32>
    %383 = arith.truncf %382 : vector<32x64xf32> to vector<32x64xbf16>
    %c0_124 = arith.constant 0 : index
    %c0_125 = arith.constant 0 : index
    %384 = vector.load %arg22[%c0_124, %c0_125] : memref<64x32xbf16, #tpu.memory_space<vmem>>, vector<64x32xbf16>
    %cst_126 = arith.constant dense<0.000000e+00> : vector<32x32xf32>
    %385 = tpu.matmul %383, %384, %cst_126 {dimension_numbers = #tpu.dot_dimension_numbers<[1], [0], [0], [1], [0, 0, 1, 1], [], []>} : vector<32x64xbf16>, vector<64x32xbf16>, vector<32x32xf32> -> vector<32x32xf32>
    %c0_127 = arith.constant 0 : index
    %c0_128 = arith.constant 0 : index
    %386 = vector.load %arg23[%c0_127, %c0_128] : memref<1x32xf32, #tpu.memory_space<vmem>>, vector<1x32xf32>
    %387 = vector.broadcast %386 : vector<1x32xf32> to vector<32x32xf32>
    %388 = arith.addf %385, %387 : vector<32x32xf32>
    %389 = arith.addf %339, %388 : vector<32x32xf32>
    %390 = vector.shape_cast %389 : vector<32x32xf32> to vector<2x16x32xf32>
    %cst_129 = arith.constant dense<0.000000e+00> : vector<2x32xf32>
    %391 = vector.multi_reduction <add>, %390, %cst_129 [1] : vector<2x16x32xf32> to vector<2x32xf32>
    %cst_130 = arith.constant 1.600000e+01 : f32
    %392 = vector.broadcast %cst_130 : f32 to vector<2x32xf32>
    %393 = arith.divf %391, %392 : vector<2x32xf32>
    %c0_131 = arith.constant 0 : index
    %c0_132 = arith.constant 0 : index
    %394 = vector.load %arg24[%c0_131, %c0_132] : memref<1x32xf32, #tpu.memory_space<vmem>>, vector<1x32xf32>
    %c0_133 = arith.constant 0 : index
    %c0_134 = arith.constant 0 : index
    %395 = vector.load %arg25[%c0_133, %c0_134] : memref<1x32xf32, #tpu.memory_space<vmem>>, vector<1x32xf32>
    %cst_135 = arith.constant dense<0.000000e+00> : vector<2xf32>
    %396 = vector.multi_reduction <add>, %393, %cst_135 [1] : vector<2x32xf32> to vector<2xf32>
    %397 = vector.shape_cast %396 : vector<2xf32> to vector<2x1xf32>
    %cst_136 = arith.constant 3.200000e+01 : f32
    %398 = vector.broadcast %cst_136 : f32 to vector<2x1xf32>
    %399 = arith.divf %397, %398 : vector<2x1xf32>
    %400 = vector.broadcast %399 : vector<2x1xf32> to vector<2x32xf32>
    %401 = arith.subf %393, %400 : vector<2x32xf32>
    %402 = arith.mulf %401, %401 : vector<2x32xf32>
    %cst_137 = arith.constant dense<0.000000e+00> : vector<2xf32>
    %403 = vector.multi_reduction <add>, %402, %cst_137 [1] : vector<2x32xf32> to vector<2xf32>
    %404 = vector.shape_cast %403 : vector<2xf32> to vector<2x1xf32>
    %cst_138 = arith.constant 3.200000e+01 : f32
    %405 = vector.broadcast %cst_138 : f32 to vector<2x1xf32>
    %406 = arith.divf %404, %405 : vector<2x1xf32>
    %407 = vector.broadcast %399 : vector<2x1xf32> to vector<2x32xf32>
    %408 = arith.subf %393, %407 : vector<2x32xf32>
    %cst_139 = arith.constant 9.99999974E-6 : f32
    %409 = vector.broadcast %cst_139 : f32 to vector<2x1xf32>
    %410 = arith.addf %406, %409 : vector<2x1xf32>
    %411 = math.rsqrt %410 : vector<2x1xf32>
    %412 = vector.broadcast %411 : vector<2x1xf32> to vector<2x32xf32>
    %413 = arith.mulf %408, %412 : vector<2x32xf32>
    %414 = vector.broadcast %394 : vector<1x32xf32> to vector<2x32xf32>
    %415 = arith.mulf %413, %414 : vector<2x32xf32>
    %416 = vector.broadcast %395 : vector<1x32xf32> to vector<2x32xf32>
    %417 = arith.addf %415, %416 : vector<2x32xf32>
    %418 = arith.truncf %417 : vector<2x32xf32> to vector<2x32xbf16>
    %c0_140 = arith.constant 0 : index
    %c0_141 = arith.constant 0 : index
    %419 = vector.load %arg26[%c0_140, %c0_141] : memref<32x10xbf16, #tpu.memory_space<vmem>>, vector<32x10xbf16>
    %cst_142 = arith.constant dense<0.000000e+00> : vector<2x10xf32>
    %420 = tpu.matmul %418, %419, %cst_142 {dimension_numbers = #tpu.dot_dimension_numbers<[1], [0], [0], [1], [0, 0, 1, 1], [], []>} : vector<2x32xbf16>, vector<32x10xbf16>, vector<2x10xf32> -> vector<2x10xf32>
    %c0_143 = arith.constant 0 : index
    %c0_144 = arith.constant 0 : index
    %421 = vector.load %arg27[%c0_143, %c0_144] : memref<1x10xf32, #tpu.memory_space<vmem>>, vector<1x10xf32>
    %422 = vector.broadcast %421 : vector<1x10xf32> to vector<2x10xf32>
    %423 = arith.addf %420, %422 : vector<2x10xf32>
    %c0_145 = arith.constant 0 : index
    %c0_146 = arith.constant 0 : index
    %424 = vector.load %arg28[%c0_145, %c0_146] : memref<2x10xf32, #tpu.memory_space<vmem>>, vector<2x10xf32>
    tpu.vector_store %arg28[%c0_145, %c0_146], %423 {strides = array<i32>} : memref<2x10xf32, #tpu.memory_space<vmem>>, vector<2x10xf32>,
    return
  }
}

</mosaic_0001>

<bundles_post_ra>
// kernel: simple_vit_forward.1
= control target key start
LH: loop header
LB: loop body
LE: loop exit
PB: predicated region body
PF: predicated region fallthrough
CT: control target
= control target key end

     0   :  { %s5394_s0 = inlined_call_operand.vmem [shape: bf16[32,64], index: 0, kind: input, shape index: {}]   ;;  %s5395_s1 = inlined_call_operand.vmem [shape: f32[32,32], index: 1, kind: input, shape index: {}]   ;;  %s5396_s2 = inlined_call_operand.vmem [shape: bf16[64,32], index: 2, kind: input, shape index: {}]   ;;  %s5397_s3 = inlined_call_operand.vmem [shape: f32[1,32], index: 3, kind: input, shape index: {}]   ;;  %s5398_s4 = inlined_call_operand.vmem [shape: f32[1,32], index: 4, kind: input, shape index: {}]   ;;  %s5399_s5 = inlined_call_operand.vmem [shape: f32[1,32], index: 5, kind: input, shape index: {}]   ;;  %s5400_s6 = inlined_call_operand.vmem [shape: bf16[32,96], index: 6, kind: input, shape index: {}]   ;;  %s5401_s7 = inlined_call_operand.vmem [shape: bf16[32,32], index: 7, kind: input, shape index: {}]   ;;  %s5402_s8 = inlined_call_operand.vmem [shape: f32[1,32], index: 8, kind: input, shape index: {}]   ;;  %s5403_s9 = inlined_call_operand.vmem [shape: f32[1,32], index: 9, kind: input, shape index: {}]   ;;  %s5404_s10 = inlined_call_operand.vmem [shape: bf16[32,64], index: 10, kind: input, shape index: {}]   ;;  %s5405_s11 = inlined_call_operand.vmem [shape: f32[1,64], index: 11, kind: input, shape index: {}]   ;;  %s5406_s12 = inlined_call_operand.vmem [shape: bf16[64,32], index: 12, kind: input, shape index: {}]   ;;  %s5407_s13 = inlined_call_operand.vmem [shape: f32[1,32], index: 13, kind: input, shape index: {}]   ;;  %s5408_s14 = inlined_call_operand.vmem [shape: f32[1,32], index: 14, kind: input, shape index: {}]   ;;  %s5409_s15 = inlined_call_operand.vmem [shape: f32[1,32], index: 15, kind: input, shape index: {}]   ;;  %s5410_s16 = inlined_call_operand.vmem [shape: bf16[32,96], index: 16, kind: input, shape index: {}]   ;;  %s5411_s17 = inlined_call_operand.vmem [shape: bf16[32,32], index: 17, kind: input, shape index: {}]   ;;  %s5412_s18 = inlined_call_operand.vmem [shape: f32[1,32], index: 18, kind: input, shape index: {}]   ;;  %s5413_s19 = inlined_call_operand.vmem [shape: f32[1,32], index: 19, kind: input, shape index: {}]   ;;  %s5414_s20 = inlined_call_operand.vmem [shape: bf16[32,64], index: 20, kind: input, shape index: {}]   ;;  %s5415_s21 = inlined_call_operand.vmem [shape: f32[1,64], index: 21, kind: input, shape index: {}]   ;;  %s5416_s22 = inlined_call_operand.vmem [shape: bf16[64,32], index: 22, kind: input, shape index: {}]   ;;  %s5417_s23 = inlined_call_operand.vmem [shape: f32[1,32], index: 23, kind: input, shape index: {}]   ;;  %s5418_s24 = inlined_call_operand.vmem [shape: f32[1,32], index: 24, kind: input, shape index: {}]   ;;  %s5419_s25 = inlined_call_operand.vmem [shape: f32[1,32], index: 25, kind: input, shape index: {}]   ;;  %s5420_s26 = inlined_call_operand.vmem [shape: bf16[32,10], index: 26, kind: input, shape index: {}]   ;;  %s5421_s27 = inlined_call_operand.vmem [shape: f32[1,10], index: 27, kind: input, shape index: {}]   ;;  %s5422_s28 = inlined_call_operand.hbm [shape: f32[2,10], index: 28, kind: output, shape index: {}]  }
   0x1   :  { %5440 = sst [smem:[#allocation5_spill]] %s5394_s0 }
   0x2   :  { %5441 = sst [smem:[#allocation6_spill]] %s5395_s1 }
   0x3   :  { %5442 = sst [smem:[#allocation7_spill]] %s5396_s2 }
   0x4   :  { %5443 = sst [smem:[#allocation8_spill]] %s5397_s3 }
   0x5   :  { %5444 = sst [smem:[#allocation9_spill]] %s5398_s4 }
   0x6   :  { %5445 = sst [smem:[#allocation10_spill]] %s5399_s5 }
   0x7   :  { %5446 = sst [smem:[#allocation11_spill]] %s5400_s6 }
   0x8   :  { %5447 = sst [smem:[#allocation12_spill]] %s5401_s7 }
   0x9   :  { %5448 = sst [smem:[#allocation13_spill]] %s5402_s8 }
   0xa   :  { %5449 = sst [smem:[#allocation14_spill]] %s5403_s9 }
   0xb   :  { %5450 = sst [smem:[#allocation15_spill]] %s5404_s10 }
   0xc   :  { %5451 = sst [smem:[#allocation16_spill]] %s5405_s11 }
   0xd   :  { %5452 = sst [smem:[#allocation17_spill]] %s5406_s12 }
   0xe   :  { %s5453_s9 = sld [smem:[#allocation7_spill]]  ;;  %vm144_vm0 = vcmask 523264  }
   0xf   :  { %s5454_s29 = sld [smem:[#allocation5_spill]] }
  0x14   :  { %v4282_v0 = vld [vmem:[%s5453_s9 + $0x18] sm:$0xff]   ;;  %v4283_v1 = vld [vmem:[%s5453_s9 + $0x10] sm:$0xff]   ;;  %v4284_v2 = vld [vmem:[%s5453_s9 + $0x8] sm:$0xff]  }
  0x15   :  { %3944 = vmatprep.subr.bf16.mxu0 %v4282_v0  ;;  %v4286_v3 = vld [vmem:[%s5454_s29] sm:$0xff]   ;;  %v4287_v5 = vld [vmem:[%s5454_s29 + $0x8] sm:$0xff]  }
  0x16   :  { %3945 = vmatpush3.bf16.msra.mxu0 %v4282_v0  ;;  %v4285_v4 = vld [vmem:[%s5453_s9] sm:$0xff]   ;;  %3952 = vmatprep.mubr.msk.bf16.mxu0 %vm144_vm0, %v4286_v3 }
  0x17   :  { %3946 = vmatprep.subr.bf16.mxu0 %v4283_v1 }
  0x1a   :  { %3947 = vmatpush3.bf16.msra.mxu0 %v4283_v1 }
  0x1b   :  { %3948 = vmatprep.subr.bf16.mxu0 %v4284_v2 }
  0x1e   :  { %3949 = vmatpush3.bf16.msra.mxu0 %v4284_v2 }
  0x1f   :  { %3950 = vmatprep.subr.bf16.mxu0 %v4285_v4 }
  0x22   :  { %3951 = vmatpush3.bf16.msra.mxu0 %v4285_v4 }
  0x25   :  { %3953 = vmatmul.mubr.msk.bf16.vlgmr.msra.gmra.mxu0 %vm144_vm0, %v4287_v5 }
  0x26   :  { %33 = vsyncpa [#allocation3], 0  ;;  %s5455_s5 = sld [smem:[#allocation8_spill]]  ;;  %vm210_vm1 = vcmask 261120   ;;  %vm4507_vm2 = vmmov 0   ;;  %s4508_s0 = smov 96  }
  0x27   :  { %s5456_s3 = sld [smem:[#allocation6_spill]]  ;;  %s4509_s11 = smov 64   ;;  %vm366_vm3 = vcmask 64512   ;;  %vm523_vm4 = vcmask 1043456   ;;  %vm468_vm5 = vcmask 130048   ;;  %vm3576_vm6 = vcmask 1041409  }
  0x28   :  { %s5457_s1 = sld [smem:[#allocation11_spill]]  ;;  %s4510_s29 = smov 88   ;;  %vm3579_vm7 = vcmask 254976   ;;  %vm3700_vm8 = vcmask 74752  }
  0x29   :  { %s5458_s30 = sld [smem:[#allocation9_spill]]  ;;  %s4511_s2 = smov 120  }
  0x2a   :  { %s5459_s10 = sld [smem:[#allocation10_spill]]  ;;  %s4512_s7 = smov 56  }
  0x2b   :  { %s5460_s4 = sld [smem:[#allocation12_spill]]  ;;  %s4513_s9 = smov 80  }
  0x2c   :  { %v3716_v6 = vld [vmem:[%s5455_s5] ss:$0 sm:$0xff]  ;;  %s5434_s12 = smov 72   ;;  %s5430_s8 = smov 104  }
  0x2d   :  { %v202_v8 = vld [vmem:[%s5456_s3 + $0x10] sm:$0xff]  ;;  %v200_v11 = vld [vmem:[%s5456_s3] sm:$0xff]  ;;  %v203_v15 = vld [vmem:[%s5456_s3 + $0x18] sm:$0xff]  ;;  %s5461_s5 = sld [smem:[#allocation15_spill]] }
  0x2e   :  { %v201_v20 = vld [vmem:[%s5456_s3 + $0x8] sm:$0xff]  ;;  %v4289_v48 = vld [vmem:[%s5457_s1] sm:$0xff]   ;;  %s5436_s3 = smov 48   ;;  %s5463_s6 = sld [smem:[#allocation14_spill]] }
  0x2f   :  { %v4288_v47 = vld [vmem:[%s5457_s1 + $0x8] sm:$0xff]   ;;  %v3725_v63 = vld [vmem:[%s5458_s30] ss:$0 sm:$0xff]  ;;  %s5438_s30 = smov 112   ;;  %s5432_s1 = smov 40  }
  0x30   :  { %3956 = vmatprep.subr.bf16.mxu1 %v4288_v47  ;;  %v3726_v4 = vld [vmem:[%s5459_s10] ss:$0 sm:$0xff]  ;;  %s5464_s10 = sld [smem:[#allocation17_spill]] }
  0x31   :  { %3957 = vmatpush3.bf16.msra.mxu1 %v4288_v47 }
  0x32   :  { %3958 = vmatprep.subr.bf16.mxu1 %v4289_v48 }
  0x35   :  { %3959 = vmatpush3.bf16.msra.mxu1 %v4289_v48 }
  0xe5   :  { %v3954_v7 = vpop.f32.mrf.mxu0 }
  0xe6   :  { %v194_v9 = vadd.f32 %v3954_v7, %v3716_v6 }
  0xe7   :  { %v185_v10 = vpop.f32.mrf.mxu0 }
  0xe8   :  { %v4694_v12 = vadd.f32 %v202_v8, %v194_v9  ;;  %v186_v13 = vadd.f32 %v3716_v6, %v185_v10 }
  0xe9   :  { %v3955_v14 = vpop.f32.mrf.mxu0 }
  0xea   :  { %v4699_v16 = vadd.f32 %v200_v11, %v186_v13  ;;  %v197_v17 = vadd.f32 %v3955_v14, %v3716_v6  ;;  %v217_v18 = vsel %vm210_vm1, %v4694_v12, 0.0 }
  0xeb   :  { %218 = vadd.xlane.f32.xlu1 %v217_v18  ;;  %v188_v19 = vpop.f32.mrf.mxu0 }
  0xec   :  { %v4706_v21 = vadd.f32 %v203_v15, %v197_v17  ;;  %v189_v22 = vadd.f32 %v3716_v6, %v188_v19  ;;  %v211_v23 = vsel %vm210_vm1, %v4699_v16, 0.0  ;;  %v4506_v19 = vmov 0.0  }
  0xed   :  { %212 = vadd.xlane.f32.xlu0 %v211_v23  ;;  %3970 = vmatprep.subr.bf16.mxu0 %v4506_v19 }
  0xee   :  { %v4710_v24 = vadd.f32 %v201_v20, %v189_v22  ;;  %v220_v25 = vsel %vm210_vm1, %v4706_v21, 0.0  ;;  %3964 = vmatprep.subr.bf16.mxu1 %v4506_v19  ;;  %3972 = vmatprep.mubr.msk.bf16.mxu0 %vm4507_vm2, %v4506_v19 }
  0xef   :  { %221 = vadd.xlane.f32.xlu1 %v220_v25 }
  0xf0   :  { %v214_v26 = vsel %vm210_vm1, %v4710_v24, 0.0 }
  0xf1   :  { %215 = vadd.xlane.f32.xlu0 %v214_v26 }
 0x174   :  { %v219_v27 = vpop.xlane.xlu1 %218 }
 0x175   :  { %v226_v28 = vmul.f32 0.03125, %v219_v27 }
 0x176   :  { %v213_v29 = vpop.xlane.xlu0 %212 }
 0x177   :  { %v224_v30 = vmul.f32 0.03125, %v213_v29  ;;  %v230_v32 = vsub.f32 %v4694_v12, %v226_v28 }
 0x178   :  { %v222_v31 = vpop.xlane.xlu1 %221 }
 0x179   :  { %v228_v33 = vsub.f32 %v4699_v16, %v224_v30  ;;  %v227_v34 = vmul.f32 0.03125, %v222_v31  ;;  %v234_v41 = vmul.f32 %v230_v32, %v230_v32  ;;  %v357_v31 = vld [vmem:[%s5460_s4] sm:$0xf] }
 0x17a   :  { %v216_v35 = vpop.xlane.xlu0 %215 }
 0x17b   :  { %v225_v36 = vmul.f32 0.03125, %v216_v35  ;;  %v232_v37 = vmul.f32 %v228_v33, %v228_v33  ;;  %v231_v38 = vsub.f32 %v4706_v21, %v227_v34  ;;  %v242_v43 = vsel %vm210_vm1, %v234_v41, 0.0 }
 0x17d   :  { %v229_v39 = vsub.f32 %v4710_v24, %v225_v36  ;;  %v236_v40 = vsel %vm210_vm1, %v232_v37, 0.0  ;;  %v235_v45 = vmul.f32 %v231_v38, %v231_v38  ;;  %v358_v36 = vld [vmem:[%s5460_s4 + $0x4] sm:$0xf] }
 0x17e   :  { %237 = vadd.xlane.f32.xlu0 %v236_v40  ;;  %v741_v41 = vsel %vm523_vm4, %v358_v36, 0 }
 0x17f   :  { %v233_v42 = vmul.f32 %v229_v39, %v229_v39  ;;  %v245_v46 = vsel %vm210_vm1, %v235_v45, 0.0 }
 0x181   :  { %v239_v44 = vsel %vm210_vm1, %v233_v42, 0.0 }
 0x182   :  { %243 = vadd.xlane.f32.xlu0 %v242_v43  ;;  %240 = vadd.xlane.f32.xlu1 %v239_v44 }
 0x186   :  { %246 = vadd.xlane.f32.xlu1 %v245_v46 }
 0x207   :  { %v238_v49 = vpop.xlane.xlu0 %237 }
 0x208   :  { %v248_v50 = vmul.f32 0.03125, %v238_v49 }
 0x20a   :  { %v252_v51 = vadd.f32 1e-05, %v248_v50 }
 0x20b   :  { %v241_v52 = vpop.xlane.xlu1 %240  ;;  %v244_v53 = vpop.xlane.xlu0 %243 }
 0x20c   :  { %4306 = vrsqrt.f32 %v252_v51  ;;  %v249_v54 = vmul.f32 0.03125, %v241_v52  ;;  %v250_v55 = vmul.f32 0.03125, %v244_v53 }
 0x20e   :  { %v253_v56 = vadd.f32 1e-05, %v249_v54  ;;  %v254_v57 = vadd.f32 1e-05, %v250_v55 }
 0x20f   :  { %v247_v58 = vpop.xlane.xlu1 %246 }
 0x210   :  { %4308 = vrsqrt.f32 %v253_v56  ;;  %v251_v59 = vmul.f32 0.03125, %v247_v58 }
 0x211   :  { %4310 = vrsqrt.f32 %v254_v57 }
 0x212   :  { %v255_v60 = vadd.f32 1e-05, %v251_v59 }
 0x214   :  { %4312 = vrsqrt.f32 %v255_v60 }
 0x219   :  { %v4307_v61 = vpop.eup %4306 }
 0x21a   :  { %v260_v62 = vmul.f32 %v4307_v61, %v228_v33 }
 0x21c   :  { %v270_v3 = vmul.f32 %v3725_v63, %v260_v62 }
 0x21d   :  { %v4309_v0 = vpop.eup %4308 }
 0x21e   :  { %v4311_v1 = vpop.eup %4310  ;;  %v261_v2 = vmul.f32 %v4309_v0, %v229_v39  ;;  %v280_v8 = vadd.f32 %v3726_v4, %v270_v3 }
 0x21f   :  { %v262_v5 = vmul.f32 %v4311_v1, %v230_v32 }
 0x220   :  { %v271_v6 = vmul.f32 %v3725_v63, %v261_v2 }
 0x221   :  { %v4313_v7 = vpop.eup %4312  ;;  %v272_v11 = vmul.f32 %v3725_v63, %v262_v5 }
 0x222   :  { %v281_v9 = vadd.f32 %v3726_v4, %v271_v6  ;;  %v263_v10 = vmul.f32 %v4313_v7, %v231_v38  ;;  %v525_v38 = vsel %vm523_vm4, %v357_v31, 0 }
 0x223   :  { %v282_v15 = vadd.f32 %v3726_v4, %v272_v11 }
 0x224   :  { %v284_v13 = vpack.c.bf16 %v281_v9, %v280_v8  ;;  %v273_v14 = vmul.f32 %v3725_v63, %v263_v10 }
 0x226   :  { %3960 = vmatprep.mubr.msk.bf16.mxu1 %vm210_vm1, %v284_v13  ;;  %v283_v17 = vadd.f32 %v3726_v4, %v273_v14 }
 0x228   :  { %v285_v18 = vpack.c.bf16 %v283_v17, %v282_v15 }
 0x22a   :  { %3961 = vmatmul.mubr.msk.bf16.vlgmr.msra.gmra.mxu1 %vm210_vm1, %v285_v18 }
 0x22b   :  { %3966 = vmatprep.mubr.msk.bf16.mxu1 %vm4507_vm2, %v4506_v19 }
 0x2ea   :  { %v3962_v20 = vpop.f32.mrf.mxu1 }
 0x2ec   :  { %v342_v22 = vpop.f32.mrf.mxu1 }
 0x2ee   :  { %v3963_v23 = vpop.f32.mrf.mxu1 }
 0x2ef   :  { %v4744_v25 = vpack.c.bf16 %v3963_v23, %v3962_v20 }
 0x2f0   :  { %v345_v26 = vpop.f32.mrf.mxu1 }
 0x2f1   :  { %v4746_v27 = vpack.c.bf16 %v345_v26, %v342_v22  ;;  %415 = vrot.lane.b32.xlu1 %v4744_v25, %s4508_s0 }
 0x2f3   :  { %364 = vrot.lane.b32.xlu0 %v4746_v27, %s4508_s0 }
 0x2f5   :  { %513 = vrot.lane.b32.xlu1 %v4746_v27, %s4509_s11 }
 0x2f7   :  { %515 = vrot.lane.b32.xlu0 %v4744_v25, %s4509_s11 }
 0x2f9   :  { %582 = vrot.lane.b32.xlu1 %v4746_v27, %s4510_s29 }
 0x2fb   :  { %580 = vrot.lane.b32.xlu0 %v4746_v27, %s4511_s2 }
 0x2fd   :  { %633 = vrot.lane.b32.xlu1 %v4744_v25, %s4510_s29 }
 0x2ff   :  { %730 = vrot.lane.b32.xlu0 %v4746_v27, %s4512_s7 }
 0x301   :  { %631 = vrot.lane.b32.xlu1 %v4744_v25, %s4511_s2 }
 0x305   :  { %732 = vrot.lane.b32.xlu1 %v4744_v25, %s4512_s7 }
 0x363   :  { %v416_v28 = vpop.permute.xlu1 %415 }
 0x364   :  { %v421_v29 = vsel %vm366_vm3, %v416_v28, 0 }
 0x365   :  { %3971 = vmatpush3.bf16.xpose.msra.mxu0 %v421_v29  ;;  %v365_v30 = vpop.permute.xlu0 %364 }
 0x366   :  { %v371_v32 = vsel %vm366_vm3, %v365_v30, 0  ;;  %3982 = vmatprep.subr.bf16.mxu0 %v4506_v19 }
 0x367   :  { %v514_v33 = vpop.permute.xlu1 %513  ;;  %3965 = vmatpush3.bf16.xpose.msra.mxu1 %v371_v32 }
 0x368   :  { %4260 = vmatprep.subr.msk.bf16.mxu1 %vm523_vm4, %v357_v31 }
 0x369   :  { %v516_v34 = vpop.permute.xlu0 %515 }
 0x36b   :  { %v583_v35 = vpop.permute.xlu1 %582 }
 0x36c   :  { %v588_v37 = vsel %vm366_vm3, %v583_v35, 0  ;;  %3973 = vmatmul.mubr.msk.bf16.vlgmr.msra.gmra.mxu0 %vm366_vm3, %v4744_v25 }
 0x36d   :  { %3983 = vmatpush3.bf16.xpose.msra.mxu0 %v588_v37  ;;  %3984 = vmatprep.mubr.msk.bf16.mxu0 %vm4507_vm2, %v4506_v19  ;;  %v581_v39 = vpop.permute.xlu0 %580 }
 0x36e   :  { %3967 = vmatmul.mubr.msk.bf16.vlgmr.msra.gmra.mxu1 %vm366_vm3, %v4746_v27  ;;  %4261 = vmatprep.subr.msk.bf16.mxu0 %vm523_vm4, %v358_v36 }
 0x36f   :  { %v634_v40 = vpop.permute.xlu1 %633  ;;  %3977 = vmatpush3.bf16.msra.mxu1 %v525_v38  ;;  %3978 = vmatprep.mubr.msk.bf16.mxu1 %vm366_vm3, %v514_v33 }
 0x370   :  { %3988 = vmatprep.subr.bf16.mxu1 %v4506_v19  ;;  %v639_v44 = vsel %vm366_vm3, %v634_v40, 0 }
 0x371   :  { %v731_v42 = vpop.permute.xlu0 %730 }
 0x373   :  { %v632_v43 = vpop.permute.xlu1 %631 }
 0x374   :  { %3985 = vmatmul.mubr.msk.bf16.vlgmr.msra.gmra.mxu0 %vm366_vm3, %v581_v39 }
 0x375   :  { %3996 = vmatprep.mubr.msk.bf16.mxu0 %vm366_vm3, %v731_v42  ;;  %3995 = vmatpush3.bf16.msra.mxu0 %v741_v41 }
 0x376   :  { %3979 = vmatmul.mubr.msk.bf16.vlgmr.msra.gmra.mxu1 %vm366_vm3, %v516_v34  ;;  %4006 = vmatprep.subr.bf16.mxu0 %v4506_v19 }
 0x377   :  { %3989 = vmatpush3.bf16.xpose.msra.mxu1 %v639_v44  ;;  %3990 = vmatprep.mubr.msk.bf16.mxu1 %vm4507_vm2, %v4506_v19  ;;  %v733_v45 = vpop.permute.xlu1 %732 }
 0x378   :  { %4000 = vmatprep.subr.bf16.mxu1 %v4506_v19 }
 0x37c   :  { %3997 = vmatmul.mubr.msk.bf16.vlgmr.msra.gmra.mxu0 %vm366_vm3, %v733_v45 }
 0x37d   :  { %4008 = vmatprep.mubr.msk.bf16.mxu0 %vm4507_vm2, %v4506_v19 }
 0x37e   :  { %3991 = vmatmul.mubr.msk.bf16.vlgmr.msra.gmra.mxu1 %vm366_vm3, %v632_v43 }
 0x37f   :  { %4002 = vmatprep.mubr.msk.bf16.mxu1 %vm4507_vm2, %v4506_v19 }
 0x42c   :  { %v457_v46 = vpop.f32.mrf.mxu0 }
 0x42d   :  { %v466_v30 = vmul.f32 0.35355338, %v457_v46 }
 0x42e   :  { %v407_v47 = vpop.f32.mrf.mxu1  ;;  %v3974_v48 = vpop.f32.mrf.mxu0 }
 0x42f   :  { %v464_v28 = vmul.f32 0.35355338, %v407_v47  ;;  %v475_v32 = vsel %vm468_vm5, %v466_v30, -inf }
 0x430   :  { %v3968_v49 = vpop.f32.mrf.mxu1  ;;  %v460_v50 = vpop.f32.mrf.mxu0 }
 0x431   :  { %v467_v8 = vmul.f32 0.35355338, %v460_v50  ;;  %v469_v31 = vsel %vm468_vm5, %v464_v28, -inf }
 0x432   :  { %v410_v51 = vpop.f32.mrf.mxu1  ;;  %v3975_v52 = vpop.f32.mrf.mxu0 }
 0x433   :  { %v465_v0 = vmul.f32 0.35355338, %v410_v51  ;;  %v478_v23 = vsel %vm468_vm5, %v467_v8, -inf }
 0x434   :  { %v3969_v53 = vpop.f32.mrf.mxu1  ;;  %v624_v54 = vpop.f32.mrf.mxu0 }
 0x435   :  { %v682_v55 = vmul.f32 0.35355338, %v624_v54  ;;  %v472_v10 = vsel %vm468_vm5, %v465_v0, -inf }
 0x436   :  { %v4804_v56 = vpop.f32.mrf.mxu1  ;;  %v3986_v57 = vpop.f32.mrf.mxu0 }
 0x437   :  { %v686_v58 = vsel %vm468_vm5, %v682_v55, -inf }
 0x438   :  { %v4807_v59 = vpop.f32.mrf.mxu1  ;;  %687 = vmax.xlane.f32.xlu0 %v686_v58  ;;  %v627_v60 = vpop.f32.mrf.mxu0 }
 0x439   :  { %v683_v61 = vmul.f32 0.35355338, %v627_v60 }
 0x43a   :  { %v4809_v62 = vpop.f32.mrf.mxu1  ;;  %v3987_v63 = vpop.f32.mrf.mxu0 }
 0x43b   :  { %v577_v1 = vpack.c.bf16 %v4809_v62, %v4804_v56  ;;  %v689_v2 = vsel %vm468_vm5, %v683_v61, -inf  ;;  %v359_v56 = vld [vmem:[%s5460_s4 + $0x8] sm:$0xf] }
 0x43c   :  { %v4814_v3 = vpop.f32.mrf.mxu1  ;;  %690 = vmax.xlane.f32.xlu1 %v689_v2  ;;  %v3998_v4 = vpop.f32.mrf.mxu0 }
 0x43d   :  { %v576_v5 = vpack.c.bf16 %v4814_v3, %v4807_v59 }
 0x43e   :  { %v675_v6 = vpop.f32.mrf.mxu1  ;;  %v777_v7 = vpop.f32.mrf.mxu0 }
 0x43f   :  { %v684_v9 = vmul.f32 0.35355338, %v675_v6 }
 0x440   :  { %v3992_v11 = vpop.f32.mrf.mxu1  ;;  %473 = vmax.xlane.f32.xlu1 %v472_v10  ;;  %v3999_v13 = vpop.f32.mrf.mxu0 }
 0x441   :  { %v793_v14 = vpack.c.bf16 %v3999_v13, %v3998_v4  ;;  %v692_v15 = vsel %vm468_vm5, %v684_v9, -inf }
 0x442   :  { %v678_v17 = vpop.f32.mrf.mxu1  ;;  %693 = vmax.xlane.f32.xlu0 %v692_v15  ;;  %v780_v18 = vpop.f32.mrf.mxu0 }
 0x443   :  { %v685_v20 = vmul.f32 0.35355338, %v678_v17  ;;  %v792_v22 = vpack.c.bf16 %v780_v18, %v777_v7  ;;  %4007 = vmatpush3.bf16.msra.mxu0 %v793_v14 }
 0x444   :  { %v3993_v26 = vpop.f32.mrf.mxu1  ;;  %479 = vmax.xlane.f32.xlu1 %v478_v23  ;;  %4018 = vmatprep.subr.bf16.mxu0 %v4506_v19 }
 0x445   :  { %4001 = vmatpush3.bf16.msra.mxu1 %v792_v22  ;;  %v695_v29 = vsel %vm468_vm5, %v685_v20, -inf }
 0x446   :  { %696 = vmax.xlane.f32.xlu0 %v695_v29  ;;  %4012 = vmatprep.subr.bf16.mxu1 %v4506_v19 }
 0x44a   :  { %470 = vmax.xlane.f32.xlu0 %v469_v31 }
 0x44e   :  { %476 = vmax.xlane.f32.xlu0 %v475_v32 }
 0x4c1   :  { %v688_v33 = vpop.xlane.xlu0 %687 }
 0x4c2   :  { %v698_v34 = vsub.f32 %v682_v55, %v688_v33 }
 0x4c4   :  { %v702_v35 = vmul.f32 1.442695, %v698_v34 }
 0x4c5   :  { %v691_v36 = vpop.xlane.xlu1 %690 }
 0x4c6   :  { %4314 = vpow2.f32 %v702_v35  ;;  %v699_v37 = vsub.f32 %v683_v61, %v691_v36 }
 0x4c8   :  { %v704_v38 = vmul.f32 1.442695, %v699_v37 }
 0x4c9   :  { %v474_v39 = vpop.xlane.xlu1 %473 }
 0x4ca   :  { %4316 = vpow2.f32 %v704_v38  ;;  %v482_v40 = vsub.f32 %v465_v0, %v474_v39 }
 0x4cb   :  { %v694_v41 = vpop.xlane.xlu0 %693 }
 0x4cc   :  { %v487_v42 = vmul.f32 1.442695, %v482_v40  ;;  %v700_v43 = vsub.f32 %v684_v9, %v694_v41 }
 0x4cd   :  { %v480_v44 = vpop.xlane.xlu1 %479 }
 0x4ce   :  { %4318 = vpow2.f32 %v487_v42  ;;  %v706_v45 = vmul.f32 1.442695, %v700_v43  ;;  %v484_v46 = vsub.f32 %v467_v8, %v480_v44 }
 0x4cf   :  { %v697_v47 = vpop.xlane.xlu0 %696 }
 0x4d0   :  { %4320 = vpow2.f32 %v706_v45  ;;  %v701_v48 = vsub.f32 %v685_v20, %v697_v47  ;;  %v491_v49 = vmul.f32 1.442695, %v484_v46 }
 0x4d2   :  { %v708_v50 = vmul.f32 1.442695, %v701_v48 }
 0x4d3   :  { %v4315_v51 = vpop.eup %4314  ;;  %v471_v52 = vpop.xlane.xlu0 %470 }
 0x4d4   :  { %4322 = vpow2.f32 %v708_v50  ;;  %v481_v53 = vsub.f32 %v464_v28, %v471_v52  ;;  %v710_v54 = vsel %vm468_vm5, %v4315_v51, 0.0  ;;  %v1133_v50 = vsel %vm523_vm4, %v359_v56, 0 }
 0x4d5   :  { %711 = vadd.xlane.f32.xlu0 %v710_v54  ;;  %4324 = vpow2.f32 %v491_v49 }
 0x4d6   :  { %v485_v55 = vmul.f32 1.442695, %v481_v53 }
 0x4d7   :  { %v4317_v57 = vpop.eup %4316  ;;  %v477_v58 = vpop.xlane.xlu0 %476 }
 0x4d8   :  { %4326 = vpow2.f32 %v485_v55  ;;  %v483_v60 = vsub.f32 %v466_v30, %v477_v58  ;;  %v713_v61 = vsel %vm468_vm5, %v4317_v57, 0.0 }
 0x4d9   :  { %714 = vadd.xlane.f32.xlu1 %v713_v61 }
 0x4da   :  { %v489_v63 = vmul.f32 1.442695, %v483_v60 }
 0x4db   :  { %v4828_v0 = vpop.eup %4318 }
 0x4dc   :  { %4328 = vpow2.f32 %v489_v63  ;;  %v496_v2 = vsel %vm468_vm5, %v4828_v0, 0.0 }
 0x4dd   :  { %v4321_v4 = vpop.eup %4320  ;;  %497 = vadd.xlane.f32.xlu1 %v496_v2 }
 0x4de   :  { %v716_v6 = vsel %vm468_vm5, %v4321_v4, 0.0 }
 0x4df   :  { %717 = vadd.xlane.f32.xlu0 %v716_v6 }
 0x4e1   :  { %v4323_v7 = vpop.eup %4322 }
 0x4e2   :  { %v719_v8 = vsel %vm468_vm5, %v4323_v7, 0.0  ;;  %v4834_v9 = vpop.eup %4324 }
 0x4e3   :  { %720 = vadd.xlane.f32.xlu1 %v719_v8  ;;  %v502_v11 = vsel %vm468_vm5, %v4834_v9, 0.0 }
 0x4e5   :  { %v4327_v10 = vpop.eup %4326 }
 0x4e6   :  { %v493_v13 = vsel %vm468_vm5, %v4327_v10, 0.0 }
 0x4e7   :  { %503 = vadd.xlane.f32.xlu1 %v502_v11  ;;  %494 = vadd.xlane.f32.xlu0 %v493_v13 }
 0x4e9   :  { %v4329_v14 = vpop.eup %4328 }
 0x4ea   :  { %v499_v15 = vsel %vm468_vm5, %v4329_v14, 0.0 }
 0x4eb   :  { %500 = vadd.xlane.f32.xlu0 %v499_v15 }
 0x4f8   :  { %1025 = vrot.lane.b32.xlu1 %v4744_v25, %s4513_s9 }
 0x4fc   :  { %972 = vrot.lane.b32.xlu1 %v4746_v27, %s5438_s30 }
 0x500   :  { %1023 = vrot.lane.b32.xlu1 %v4744_v25, %s5438_s30  ;;  %s5469_s30 = smov 40  }
 0x501   :  { %974 = vrot.lane.b32.xlu0 %v4746_v27, %s4513_s9 }
 0x504   :  { %1124 = vrot.lane.b32.xlu1 %v4744_v25, %s5436_s3 }
 0x505   :  { %1122 = vrot.lane.b32.xlu0 %v4746_v27, %s5436_s3  ;;  %s5470_s3 = smov 104  }
 0x55e   :  { %v712_v17 = vpop.xlane.xlu0 %711 }
 0x55f   :  { %4330 = vrcp.f32 %v712_v17 }
 0x562   :  { %v715_v18 = vpop.xlane.xlu1 %714 }
 0x563   :  { %4332 = vrcp.f32 %v715_v18 }
 0x566   :  { %v498_v20 = vpop.xlane.xlu1 %497 }
 0x568   :  { %v718_v22 = vpop.xlane.xlu0 %717 }
 0x569   :  { %4334 = vrcp.f32 %v718_v22 }
 0x56c   :  { %v721_v23 = vpop.xlane.xlu1 %720  ;;  %v4331_v26 = vpop.eup %4330 }
 0x56d   :  { %4336 = vrcp.f32 %v721_v23  ;;  %v726_v31 = vmul.f32 %v4331_v26, %v4315_v51 }
 0x56e   :  { %4338 = vrcp.f32 %v498_v20 }
 0x570   :  { %v4333_v28 = vpop.eup %4332  ;;  %v504_v29 = vpop.xlane.xlu1 %503 }
 0x571   :  { %v495_v30 = vpop.xlane.xlu0 %494  ;;  %v727_v32 = vmul.f32 %v4333_v28, %v4317_v57 }
 0x572   :  { %4340 = vrcp.f32 %v495_v30 }
 0x573   :  { %4342 = vrcp.f32 %v504_v29  ;;  %v794_v33 = vpack.c.bf16 %v727_v32, %v726_v31 }
 0x575   :  { %v501_v34 = vpop.xlane.xlu0 %500  ;;  %4003 = vmatmul.mubr.msk.bf16.vlgmr.msra.gmra.mxu1 %vm468_vm5, %v794_v33 }
 0x576   :  { %4344 = vrcp.f32 %v501_v34  ;;  %4013 = vmatpush3.bf16.msra.mxu1 %v576_v5  ;;  %4014 = vmatprep.mubr.msk.bf16.mxu1 %vm4507_vm2, %v4506_v19  ;;  %v4335_v35 = vpop.eup %4334  ;;  %v1026_v5 = vpop.permute.xlu1 %1025 }
 0x577   :  { %4024 = vmatprep.subr.bf16.mxu1 %v4506_v19  ;;  %v728_v37 = vmul.f32 %v4335_v35, %v4321_v4  ;;  %v1031_v48 = vsel %vm366_vm3, %v1026_v5, 0 }
 0x579   :  { %v975_v43 = vpop.permute.xlu0 %974 }
 0x57a   :  { %v4337_v36 = vpop.eup %4336  ;;  %v980_v62 = vsel %vm366_vm3, %v975_v43, 0  ;;  %v973_v49 = vpop.permute.xlu1 %972 }
 0x57b   :  { %v729_v38 = vmul.f32 %v4337_v36, %v4323_v7  ;;  %v4339_v39 = vpop.eup %4338 }
 0x57c   :  { %v510_v3 = vmul.f32 %v4339_v39, %v4828_v0 }
 0x57d   :  { %v795_v40 = vpack.c.bf16 %v729_v38, %v728_v37  ;;  %v1123_v51 = vpop.permute.xlu0 %1122 }
 0x57e   :  { %v1024_v52 = vpop.permute.xlu1 %1023 }
 0x57f   :  { %v4341_v41 = vpop.eup %4340  ;;  %4009 = vmatmul.mubr.msk.bf16.vlgmr.msra.gmra.mxu0 %vm468_vm5, %v795_v40 }
 0x580   :  { %v4343_v42 = vpop.eup %4342  ;;  %4019 = vmatpush3.bf16.msra.mxu0 %v577_v1  ;;  %v509_v59 = vmul.f32 %v4341_v41, %v4327_v10  ;;  %4020 = vmatprep.mubr.msk.bf16.mxu0 %vm4507_vm2, %v4506_v19 }
 0x581   :  { %4030 = vmatprep.subr.bf16.mxu0 %v4506_v19  ;;  %v512_v47 = vmul.f32 %v4343_v42, %v4834_v9 }
 0x582   :  { %v578_v45 = vpack.c.bf16 %v510_v3, %v509_v59  ;;  %v1125_v53 = vpop.permute.xlu1 %1124 }
 0x583   :  { %v4345_v44 = vpop.eup %4344 }
 0x584   :  { %v511_v46 = vmul.f32 %v4345_v44, %v4329_v14  ;;  %4015 = vmatmul.mubr.msk.bf16.vlgmr.msra.gmra.mxu1 %vm468_vm5, %v578_v45 }
 0x585   :  { %4025 = vmatpush3.bf16.xpose.msra.mxu1 %v980_v62  ;;  %4026 = vmatprep.mubr.msk.bf16.mxu1 %vm4507_vm2, %v4506_v19 }
 0x586   :  { %v579_v1 = vpack.c.bf16 %v512_v47, %v511_v46  ;;  %4262 = vmatprep.subr.msk.bf16.mxu1 %vm523_vm4, %v359_v56 }
 0x588   :  { %4021 = vmatmul.mubr.msk.bf16.vlgmr.msra.gmra.mxu0 %vm468_vm5, %v579_v1 }
 0x589   :  { %4031 = vmatpush3.bf16.xpose.msra.mxu0 %v1031_v48  ;;  %4032 = vmatprep.mubr.msk.bf16.mxu0 %vm4507_vm2, %v4506_v19 }
 0x58a   :  { %4042 = vmatprep.subr.bf16.mxu0 %v4506_v19 }
 0x58c   :  { %4027 = vmatmul.mubr.msk.bf16.vlgmr.msra.gmra.mxu1 %vm366_vm3, %v973_v49 }
 0x58d   :  { %4038 = vmatprep.mubr.msk.bf16.mxu1 %vm366_vm3, %v1123_v51  ;;  %4037 = vmatpush3.bf16.msra.mxu1 %v1133_v50 }
 0x58e   :  { %4048 = vmatprep.subr.bf16.mxu1 %v4506_v19 }
 0x590   :  { %4033 = vmatmul.mubr.msk.bf16.vlgmr.msra.gmra.mxu0 %vm366_vm3, %v1024_v52 }
 0x591   :  { %4044 = vmatprep.mubr.msk.bf16.mxu0 %vm4507_vm2, %v4506_v19 }
 0x594   :  { %4039 = vmatmul.mubr.msk.bf16.vlgmr.msra.gmra.mxu1 %vm366_vm3, %v1125_v53 }
 0x595   :  { %4050 = vmatprep.mubr.msk.bf16.mxu1 %vm4507_vm2, %v4506_v19 }
 0x635   :  { %v833_v54 = vpop.f32.mrf.mxu1 }
 0x637   :  { %v4004_v55 = vpop.f32.mrf.mxu1 }
 0x639   :  { %v836_v57 = vpop.f32.mrf.mxu1 }
 0x63b   :  { %v4005_v58 = vpop.f32.mrf.mxu1 }
 0x63f   :  { %v877_v60 = vpop.f32.mrf.mxu0 }
 0x641   :  { %v4010_v61 = vpop.f32.mrf.mxu0 }
 0x643   :  { %v880_v63 = vpop.f32.mrf.mxu0 }
 0x644   :  { %v921_v0 = vpop.f32.mrf.mxu1 }
 0x645   :  { %v4891_v2 = vadd.f32 %v921_v0, %v833_v54  ;;  %v4011_v4 = vpop.f32.mrf.mxu0 }
 0x646   :  { %v4016_v6 = vpop.f32.mrf.mxu1 }
 0x648   :  { %v965_v7 = vpop.f32.mrf.mxu0  ;;  %v924_v8 = vpop.f32.mrf.mxu1 }
 0x649   :  { %v4893_v9 = vadd.f32 %v965_v7, %v877_v60  ;;  %v4895_v10 = vadd.f32 %v924_v8, %v836_v57 }
 0x64a   :  { %v4022_v11 = vpop.f32.mrf.mxu0  ;;  %v4017_v13 = vpop.f32.mrf.mxu1 }
 0x64c   :  { %v968_v14 = vpop.f32.mrf.mxu0  ;;  %v1016_v17 = vpop.f32.mrf.mxu1 }
 0x64d   :  { %v4897_v15 = vadd.f32 %v968_v14, %v880_v63  ;;  %v1074_v18 = vmul.f32 0.35355338, %v1016_v17 }
 0x64e   :  { %v4023_v20 = vpop.f32.mrf.mxu0  ;;  %v4028_v22 = vpop.f32.mrf.mxu1 }
 0x64f   :  { %v1078_v26 = vsel %vm468_vm5, %v1074_v18, -inf }
 0x650   :  { %v1067_v23 = vpop.f32.mrf.mxu0  ;;  %1079 = vmax.xlane.f32.xlu0 %v1078_v26  ;;  %v1019_v29 = vpop.f32.mrf.mxu1 }
 0x651   :  { %v1076_v28 = vmul.f32 0.35355338, %v1067_v23  ;;  %v1075_v30 = vmul.f32 0.35355338, %v1019_v29 }
 0x652   :  { %v4034_v31 = vpop.f32.mrf.mxu0  ;;  %v4029_v32 = vpop.f32.mrf.mxu1 }
 0x653   :  { %v1084_v33 = vsel %vm468_vm5, %v1076_v28, -inf  ;;  %v1081_v35 = vsel %vm468_vm5, %v1075_v30, -inf }
 0x654   :  { %v1070_v34 = vpop.f32.mrf.mxu0  ;;  %1085 = vmax.xlane.f32.xlu0 %v1084_v33  ;;  %1082 = vmax.xlane.f32.xlu1 %v1081_v35  ;;  %v4040_v37 = vpop.f32.mrf.mxu1 }
 0x655   :  { %v1077_v36 = vmul.f32 0.35355338, %v1070_v34 }
 0x656   :  { %v4035_v38 = vpop.f32.mrf.mxu0  ;;  %v1169_v39 = vpop.f32.mrf.mxu1 }
 0x657   :  { %v1087_v40 = vsel %vm468_vm5, %v1077_v36, -inf }
 0x658   :  { %1088 = vmax.xlane.f32.xlu0 %v1087_v40  ;;  %v4041_v41 = vpop.f32.mrf.mxu1 }
 0x659   :  { %v1185_v42 = vpack.c.bf16 %v4041_v41, %v4040_v37 }
 0x65a   :  { %v1172_v59 = vpop.f32.mrf.mxu1 }
 0x65b   :  { %v1184_v3 = vpack.c.bf16 %v1172_v59, %v1169_v39  ;;  %4049 = vmatpush3.bf16.msra.mxu1 %v1185_v42 }
 0x65c   :  { %4060 = vmatprep.subr.bf16.mxu1 %v4506_v19 }
 0x65d   :  { %4043 = vmatpush3.bf16.msra.mxu0 %v1184_v3 }
 0x65e   :  { %4054 = vmatprep.subr.bf16.mxu0 %v4506_v19 }
 0x6d9   :  { %v1080_v5 = vpop.xlane.xlu0 %1079 }
 0x6da   :  { %v1090_v43 = vsub.f32 %v1074_v18, %v1080_v5 }
 0x6dc   :  { %v1094_v44 = vmul.f32 1.442695, %v1090_v43 }
 0x6dd   :  { %v1083_v45 = vpop.xlane.xlu1 %1082  ;;  %v1086_v46 = vpop.xlane.xlu0 %1085 }
 0x6de   :  { %4346 = vpow2.f32 %v1094_v44  ;;  %v1091_v47 = vsub.f32 %v1075_v30, %v1083_v45  ;;  %v1092_v56 = vsub.f32 %v1076_v28, %v1086_v46 }
 0x6e0   :  { %v1096_v62 = vmul.f32 1.442695, %v1091_v47  ;;  %v1098_v1 = vmul.f32 1.442695, %v1092_v56 }
 0x6e1   :  { %v1089_v54 = vpop.xlane.xlu0 %1088 }
 0x6e2   :  { %4348 = vpow2.f32 %v1096_v62  ;;  %v1093_v55 = vsub.f32 %v1077_v36, %v1089_v54 }
 0x6e3   :  { %4350 = vpow2.f32 %v1098_v1 }
 0x6e4   :  { %v1100_v57 = vmul.f32 1.442695, %v1093_v55 }
 0x6e6   :  { %4352 = vpow2.f32 %v1100_v57 }
 0x6eb   :  { %v4347_v48 = vpop.eup %4346 }
 0x6ec   :  { %v1102_v49 = vsel %vm468_vm5, %v4347_v48, 0.0 }
 0x6ed   :  { %1103 = vadd.xlane.f32.xlu0 %v1102_v49 }
 0x6ef   :  { %v4349_v50 = vpop.eup %4348 }
 0x6f0   :  { %v4351_v51 = vpop.eup %4350  ;;  %v1105_v52 = vsel %vm468_vm5, %v4349_v50, 0.0 }
 0x6f1   :  { %1106 = vadd.xlane.f32.xlu1 %v1105_v52  ;;  %v1108_v53 = vsel %vm468_vm5, %v4351_v51, 0.0 }
 0x6f2   :  { %1109 = vadd.xlane.f32.xlu0 %v1108_v53 }
 0x6f3   :  { %v4353_v58 = vpop.eup %4352 }
 0x6f4   :  { %v1111_v60 = vsel %vm468_vm5, %v4353_v58, 0.0 }
 0x702   :  { %1333 = vrot.lane.b32.xlu1 %v4744_v25, %s5434_s12 }
 0x708   :  { %1282 = vrot.lane.b32.xlu0 %v4746_v27, %s5434_s12 }
 0x70c   :  { %1430 = vrot.lane.b32.xlu0 %v4746_v27, %s5432_s1 }
 0x726   :  { %1112 = vadd.xlane.f32.xlu1 %v1111_v60 }
 0x737   :  { %1280 = vrot.lane.b32.xlu1 %v4746_v27, %s5430_s8  ;;  %v360_v27 = vld [vmem:[%s5460_s4 + $0xc] sm:$0xf] }
 0x738   :  { %v1441_v18 = vsel %vm523_vm4, %v360_v27, 0 }
 0x73b   :  { %1331 = vrot.lane.b32.xlu1 %v4744_v25, %s5430_s8  ;;  %s5465_s8 = sld [smem:[#allocation16_spill]] }
 0x73f   :  { %1432 = vrot.lane.b32.xlu1 %v4744_v25, %s5432_s1  ;;  %s5462_s1 = sld [smem:[#allocation13_spill]] }
 0x776   :  { %v1104_v61 = vpop.xlane.xlu0 %1103 }
 0x777   :  { %4354 = vrcp.f32 %v1104_v61 }
 0x77a   :  { %v1107_v63 = vpop.xlane.xlu1 %1106 }
 0x77b   :  { %4356 = vrcp.f32 %v1107_v63  ;;  %v1110_v0 = vpop.xlane.xlu0 %1109 }
 0x77c   :  { %4358 = vrcp.f32 %v1110_v0 }
 0x77e   :  { %v1334_v25 = vpop.permute.xlu1 %1333 }
 0x77f   :  { %v1283_v11 = vpop.permute.xlu0 %1282  ;;  %v1339_v33 = vsel %vm366_vm3, %v1334_v25, 0 }
 0x780   :  { %v1288_v14 = vsel %vm366_vm3, %v1283_v11, 0 }
 0x783   :  { %v1431_v22 = vpop.permute.xlu0 %1430 }
 0x784   :  { %v4355_v4 = vpop.eup %4354 }
 0x785   :  { %v1118_v7 = vmul.f32 %v4355_v4, %v4347_v48 }
 0x788   :  { %v4357_v6 = vpop.eup %4356 }
 0x789   :  { %v1119_v8 = vmul.f32 %v4357_v6, %v4349_v50  ;;  %v4359_v26 = vpop.eup %4358 }
 0x78a   :  { %v1120_v30 = vmul.f32 %v4359_v26, %v4351_v51 }
 0x78b   :  { %v1186_v13 = vpack.c.bf16 %v1119_v8, %v1118_v7 }
 0x78d   :  { %4045 = vmatmul.mubr.msk.bf16.vlgmr.msra.gmra.mxu0 %vm468_vm5, %v1186_v13 }
 0x78e   :  { %4055 = vmatpush3.bf16.xpose.msra.mxu0 %v1288_v14  ;;  %4056 = vmatprep.mubr.msk.bf16.mxu0 %vm4507_vm2, %v4506_v19 }
 0x78f   :  { %4263 = vmatprep.subr.msk.bf16.mxu0 %vm523_vm4, %v360_v27 }
 0x7af   :  { %v1113_v17 = vpop.xlane.xlu1 %1112 }
 0x7b0   :  { %4360 = vrcp.f32 %v1113_v17 }
 0x7b3   :  { %v1281_v20 = vpop.permute.xlu1 %1280 }
 0x7b4   :  { %4057 = vmatmul.mubr.msk.bf16.vlgmr.msra.gmra.mxu0 %vm366_vm3, %v1281_v20 }
 0x7b5   :  { %4068 = vmatprep.mubr.msk.bf16.mxu0 %vm366_vm3, %v1431_v22  ;;  %4067 = vmatpush3.bf16.msra.mxu0 %v1441_v18 }
 0x7b6   :  { %4078 = vmatprep.subr.bf16.mxu0 %v4506_v19 }
 0x7b7   :  { %v1332_v23 = vpop.permute.xlu1 %1331 }
 0x7bb   :  { %v1433_v28 = vpop.permute.xlu1 %1432 }
 0x7bc   :  { %4069 = vmatmul.mubr.msk.bf16.vlgmr.msra.gmra.mxu0 %vm366_vm3, %v1433_v28 }
 0x7bd   :  { %v4361_v29 = vpop.eup %4360  ;;  %4080 = vmatprep.mubr.msk.bf16.mxu0 %vm4507_vm2, %v4506_v19 }
 0x7be   :  { %v1121_v31 = vmul.f32 %v4361_v29, %v4353_v58 }
 0x7c0   :  { %v1187_v32 = vpack.c.bf16 %v1121_v31, %v1120_v30 }
 0x7c2   :  { %4051 = vmatmul.mubr.msk.bf16.vlgmr.msra.gmra.mxu1 %vm468_vm5, %v1187_v32 }
 0x7c3   :  { %4061 = vmatpush3.bf16.xpose.msra.mxu1 %v1339_v33  ;;  %4062 = vmatprep.mubr.msk.bf16.mxu1 %vm4507_vm2, %v4506_v19 }
 0x7c4   :  { %4072 = vmatprep.subr.bf16.mxu1 %v4506_v19 }
 0x7ca   :  { %4063 = vmatmul.mubr.msk.bf16.vlgmr.msra.gmra.mxu1 %vm366_vm3, %v1332_v23 }
 0x7cb   :  { %4074 = vmatprep.mubr.msk.bf16.mxu1 %vm4507_vm2, %v4506_v19 }
 0x84d   :  { %v1225_v34 = vpop.f32.mrf.mxu0 }
 0x84e   :  { %v4945_v35 = vadd.f32 %v1225_v34, %v4891_v2 }
 0x84f   :  { %v4046_v36 = vpop.f32.mrf.mxu0 }
 0x851   :  { %v1228_v37 = vpop.f32.mrf.mxu0 }
 0x852   :  { %v4948_v38 = vadd.f32 %v1228_v37, %v4895_v10 }
 0x853   :  { %v4047_v39 = vpop.f32.mrf.mxu0 }
 0x874   :  { %v1324_v40 = vpop.f32.mrf.mxu0 }
 0x875   :  { %v1382_v41 = vmul.f32 0.35355338, %v1324_v40 }
 0x876   :  { %v4058_v42 = vpop.f32.mrf.mxu0 }
 0x877   :  { %v1386_v59 = vsel %vm468_vm5, %v1382_v41, -inf }
 0x878   :  { %1387 = vmax.xlane.f32.xlu0 %v1386_v59  ;;  %v1327_v3 = vpop.f32.mrf.mxu0 }
 0x879   :  { %v1383_v5 = vmul.f32 0.35355338, %v1327_v3 }
 0x87a   :  { %v4059_v43 = vpop.f32.mrf.mxu0 }
 0x87b   :  { %v1389_v44 = vsel %vm468_vm5, %v1383_v5, -inf }
 0x87c   :  { %1390 = vmax.xlane.f32.xlu1 %v1389_v44  ;;  %v4070_v2 = vpop.f32.mrf.mxu0 }
 0x87e   :  { %v1477_v45 = vpop.f32.mrf.mxu0 }
 0x880   :  { %v4071_v46 = vpop.f32.mrf.mxu0 }
 0x881   :  { %v1493_v47 = vpack.c.bf16 %v4071_v46, %v4070_v2 }
 0x882   :  { %v1269_v56 = vpop.f32.mrf.mxu1  ;;  %v1480_v10 = vpop.f32.mrf.mxu0 }
 0x883   :  { %v4953_v62 = vadd.f32 %v1269_v56, %v4893_v9  ;;  %v1492_v1 = vpack.c.bf16 %v1480_v10, %v1477_v45  ;;  %4079 = vmatpush3.bf16.msra.mxu0 %v1493_v47 }
 0x884   :  { %v4052_v48 = vpop.f32.mrf.mxu1 }
 0x885   :  { %4073 = vmatpush3.bf16.msra.mxu1 %v1492_v1 }
 0x886   :  { %v1272_v49 = vpop.f32.mrf.mxu1 }
 0x887   :  { %v4956_v50 = vadd.f32 %v1272_v49, %v4897_v15 }
 0x888   :  { %v4053_v51 = vpop.f32.mrf.mxu1 }
 0x88a   :  { %v1375_v52 = vpop.f32.mrf.mxu1 }
 0x88b   :  { %v1384_v53 = vmul.f32 0.35355338, %v1375_v52 }
 0x88c   :  { %v4064_v54 = vpop.f32.mrf.mxu1 }
 0x88d   :  { %v1392_v55 = vsel %vm468_vm5, %v1384_v53, -inf }
 0x88e   :  { %v1378_v57 = vpop.f32.mrf.mxu1  ;;  %1393 = vmax.xlane.f32.xlu0 %v1392_v55 }
 0x88f   :  { %v1385_v58 = vmul.f32 0.35355338, %v1378_v57 }
 0x890   :  { %v4065_v60 = vpop.f32.mrf.mxu1 }
 0x891   :  { %v1395_v9 = vsel %vm468_vm5, %v1385_v58, -inf }
 0x892   :  { %1396 = vmax.xlane.f32.xlu0 %v1395_v9 }
 0x901   :  { %v1388_v61 = vpop.xlane.xlu0 %1387 }
 0x902   :  { %v1398_v63 = vsub.f32 %v1382_v41, %v1388_v61 }
 0x904   :  { %v1402_v0 = vmul.f32 1.442695, %v1398_v63 }
 0x905   :  { %v1391_v4 = vpop.xlane.xlu1 %1390 }
 0x906   :  { %4362 = vpow2.f32 %v1402_v0  ;;  %v1399_v15 = vsub.f32 %v1383_v5, %v1391_v4 }
 0x908   :  { %v1404_v6 = vmul.f32 1.442695, %v1399_v15 }
 0x90a   :  { %4364 = vpow2.f32 %v1404_v6 }
 0x913   :  { %v4363_v7 = vpop.eup %4362 }
 0x914   :  { %v1410_v8 = vsel %vm468_vm5, %v4363_v7, 0.0 }
 0x915   :  { %1411 = vadd.xlane.f32.xlu0 %v1410_v8 }
 0x917   :  { %v4365_v11 = vpop.eup %4364  ;;  %v1394_v13 = vpop.xlane.xlu0 %1393 }
 0x918   :  { %v1400_v27 = vsub.f32 %v1384_v53, %v1394_v13  ;;  %v1413_v14 = vsel %vm468_vm5, %v4365_v11, 0.0 }
 0x919   :  { %1414 = vadd.xlane.f32.xlu1 %v1413_v14  ;;  %v4290_v14 = vld [vmem:[%s5461_s5 + $0x8] sm:$0xff]  }
 0x91a   :  { %v1406_v25 = vmul.f32 1.442695, %v1400_v27  ;;  %4084 = vmatprep.subr.bf16.mxu1 %v4290_v14 }
 0x91b   :  { %v1397_v17 = vpop.xlane.xlu0 %1396 }
 0x91c   :  { %4366 = vpow2.f32 %v1406_v25  ;;  %v1401_v18 = vsub.f32 %v1385_v58, %v1397_v17  ;;  %v4291_v25 = vld [vmem:[%s5461_s5] sm:$0xff]  }
 0x91e   :  { %v1408_v20 = vmul.f32 1.442695, %v1401_v18 }
 0x920   :  { %4368 = vpow2.f32 %v1408_v20 }
 0x929   :  { %v4367_v22 = vpop.eup %4366 }
 0x92a   :  { %v1416_v23 = vsel %vm468_vm5, %v4367_v22, 0.0 }
 0x92b   :  { %1417 = vadd.xlane.f32.xlu0 %v1416_v23 }
 0x92d   :  { %v4369_v26 = vpop.eup %4368 }
 0x92e   :  { %v1419_v28 = vsel %vm468_vm5, %v4369_v26, 0.0 }
 0x92f   :  { %1420 = vadd.xlane.f32.xlu1 %v1419_v28 }
 0x99e   :  { %v1412_v29 = vpop.xlane.xlu0 %1411 }
 0x99f   :  { %4370 = vrcp.f32 %v1412_v29 }
 0x9a2   :  { %v1415_v30 = vpop.xlane.xlu1 %1414 }
 0x9a3   :  { %4372 = vrcp.f32 %v1415_v30  ;;  %v3755_v30 = vld [vmem:[%s5462_s1] ss:$0 sm:$0xff] }
 0x9ac   :  { %v4371_v31 = vpop.eup %4370 }
 0x9ad   :  { %v1426_v33 = vmul.f32 %v4371_v31, %v4363_v7 }
 0x9b0   :  { %v4373_v32 = vpop.eup %4372 }
 0x9b1   :  { %v1427_v34 = vmul.f32 %v4373_v32, %v4365_v11 }
 0x9b3   :  { %v1494_v36 = vpack.c.bf16 %v1427_v34, %v1426_v33 }
 0x9b4   :  { %v1418_v37 = vpop.xlane.xlu0 %1417 }
 0x9b5   :  { %4075 = vmatmul.mubr.msk.bf16.vlgmr.msra.gmra.mxu1 %vm468_vm5, %v1494_v36  ;;  %4374 = vrcp.f32 %v1418_v37  ;;  %v3756_v37 = vld [vmem:[%s5463_s6] ss:$0 sm:$0xff] }
 0x9b6   :  { %4085 = vmatpush3.bf16.msra.mxu1 %v4290_v14 }
 0x9b7   :  { %4086 = vmatprep.subr.bf16.mxu1 %v4291_v25 }
 0x9b8   :  { %v1421_v39 = vpop.xlane.xlu1 %1420 }
 0x9b9   :  { %4376 = vrcp.f32 %v1421_v39 }
 0x9ba   :  { %4087 = vmatpush3.bf16.msra.mxu1 %v4291_v25 }
 0x9c2   :  { %v4375_v40 = vpop.eup %4374 }
 0x9c3   :  { %v1428_v42 = vmul.f32 %v4375_v40, %v4367_v22 }
 0x9c6   :  { %v4377_v41 = vpop.eup %4376 }
 0x9c7   :  { %v1429_v59 = vmul.f32 %v4377_v41, %v4369_v26 }
 0x9c9   :  { %v1495_v3 = vpack.c.bf16 %v1429_v59, %v1428_v42 }
 0x9cb   :  { %4081 = vmatmul.mubr.msk.bf16.vlgmr.msra.gmra.mxu0 %vm468_vm5, %v1495_v3 }
 0xa75   :  { %v1533_v5 = vpop.f32.mrf.mxu1 }
 0xa76   :  { %v1584_v43 = vadd.f32 %v1533_v5, %v4945_v35 }
 0xa77   :  { %v4076_v44 = vpop.f32.mrf.mxu1 }
 0xa78   :  { %v4968_v2 = vadd.f32 %v1584_v43, %v4699_v16 }
 0xa79   :  { %v1536_v45 = vpop.f32.mrf.mxu1 }
 0xa7a   :  { %v1585_v46 = vadd.f32 %v1536_v45, %v4948_v38  ;;  %v1594_v47 = vsel %vm210_vm1, %v4968_v2, 0.0 }
 0xa7b   :  { %1595 = vadd.xlane.f32.xlu0 %v1594_v47  ;;  %v4077_v56 = vpop.f32.mrf.mxu1 }
 0xa7c   :  { %v4974_v10 = vadd.f32 %v1585_v46, %v4710_v24 }
 0xa7e   :  { %v1597_v1 = vsel %vm210_vm1, %v4974_v10, 0.0 }
 0xa7f   :  { %1598 = vadd.xlane.f32.xlu1 %v1597_v1 }
 0xa8b   :  { %v1577_v35 = vpop.f32.mrf.mxu0 }
 0xa8c   :  { %v1586_v48 = vadd.f32 %v1577_v35, %v4953_v62 }
 0xa8d   :  { %v4082_v16 = vpop.f32.mrf.mxu0 }
 0xa8e   :  { %v4980_v49 = vadd.f32 %v1586_v48, %v4694_v12 }
 0xa8f   :  { %v1580_v38 = vpop.f32.mrf.mxu0 }
 0xa90   :  { %v1587_v51 = vadd.f32 %v1580_v38, %v4956_v50  ;;  %v1600_v52 = vsel %vm210_vm1, %v4980_v49, 0.0  ;;  %v4292_v38 = vld [vmem:[%s5464_s10 + $0x18] sm:$0xff]  }
 0xa91   :  { %1601 = vadd.xlane.f32.xlu0 %v1600_v52  ;;  %v4083_v24 = vpop.f32.mrf.mxu0  ;;  %4092 = vmatprep.subr.bf16.mxu0 %v4292_v38  ;;  %v4294_v52 = vld [vmem:[%s5464_s10 + $0x8] sm:$0xff]  }
 0xa92   :  { %v4986_v53 = vadd.f32 %v1587_v51, %v4706_v21  ;;  %v4293_v51 = vld [vmem:[%s5464_s10 + $0x10] sm:$0xff]   ;;  %4093 = vmatpush3.bf16.msra.mxu0 %v4292_v38  ;;  %v4295_v24 = vld [vmem:[%s5464_s10] sm:$0xff]  }
 0xa93   :  { %4094 = vmatprep.subr.bf16.mxu0 %v4293_v51 }
 0xa94   :  { %v1603_v54 = vsel %vm210_vm1, %v4986_v53, 0.0 }
 0xa95   :  { %1604 = vadd.xlane.f32.xlu1 %v1603_v54  ;;  %v3757_v54 = vld [vmem:[%s5465_s8] ss:$0 sm:$0xff]  ;;  %s5468_s8 = smov 72  }
 0xa96   :  { %4095 = vmatpush3.bf16.msra.mxu0 %v4293_v51 }
 0xa97   :  { %4096 = vmatprep.subr.bf16.mxu0 %v4294_v52 }
 0xa9a   :  { %4097 = vmatpush3.bf16.msra.mxu0 %v4294_v52 }
 0xa9b   :  { %4098 = vmatprep.subr.bf16.mxu0 %v4295_v24 }
 0xa9e   :  { %4099 = vmatpush3.bf16.msra.mxu0 %v4295_v24 }
 0xa9f   :  { %4118 = vmatprep.subr.bf16.mxu0 %v4506_v19 }
 0xb04   :  { %v1596_v62 = vpop.xlane.xlu0 %1595 }
 0xb05   :  { %v1606_v55 = vmul.f32 0.03125, %v1596_v62 }
 0xb07   :  { %v1610_v12 = vsub.f32 %v4968_v2, %v1606_v55 }
 0xb08   :  { %v1599_v57 = vpop.xlane.xlu1 %1598 }
 0xb09   :  { %v1607_v58 = vmul.f32 0.03125, %v1599_v57  ;;  %v1614_v60 = vmul.f32 %v1610_v12, %v1610_v12 }
 0xb0b   :  { %v1611_v50 = vsub.f32 %v4974_v10, %v1607_v58  ;;  %v1618_v9 = vsel %vm210_vm1, %v1614_v60, 0.0 }
 0xb0c   :  { %1619 = vadd.xlane.f32.xlu0 %v1618_v9 }
 0xb0d   :  { %v1615_v61 = vmul.f32 %v1611_v50, %v1611_v50 }
 0xb0f   :  { %v1621_v21 = vsel %vm210_vm1, %v1615_v61, 0.0 }
 0xb10   :  { %1622 = vadd.xlane.f32.xlu1 %v1621_v21 }
 0xb1a   :  { %v1602_v63 = vpop.xlane.xlu0 %1601 }
 0xb1b   :  { %v1608_v0 = vmul.f32 0.03125, %v1602_v63 }
 0xb1d   :  { %v1612_v4 = vsub.f32 %v4980_v49, %v1608_v0 }
 0xb1e   :  { %v1605_v15 = vpop.xlane.xlu1 %1604 }
 0xb1f   :  { %v1609_v6 = vmul.f32 0.03125, %v1605_v15  ;;  %v1616_v7 = vmul.f32 %v1612_v4, %v1612_v4 }
 0xb21   :  { %v1613_v8 = vsub.f32 %v4986_v53, %v1609_v6  ;;  %v1624_v11 = vsel %vm210_vm1, %v1616_v7, 0.0 }
 0xb22   :  { %1625 = vadd.xlane.f32.xlu0 %v1624_v11 }
 0xb23   :  { %v1617_v13 = vmul.f32 %v1613_v8, %v1613_v8 }
 0xb25   :  { %v1627_v27 = vsel %vm210_vm1, %v1617_v13, 0.0 }
 0xb26   :  { %1628 = vadd.xlane.f32.xlu1 %v1627_v27 }
 0xb95   :  { %v1620_v17 = vpop.xlane.xlu0 %1619 }
 0xb96   :  { %v1630_v18 = vmul.f32 0.03125, %v1620_v17 }
 0xb98   :  { %v1634_v20 = vadd.f32 1e-05, %v1630_v18 }
 0xb99   :  { %v1623_v22 = vpop.xlane.xlu1 %1622 }
 0xb9a   :  { %4378 = vrsqrt.f32 %v1634_v20  ;;  %v1631_v23 = vmul.f32 0.03125, %v1623_v22 }
 0xb9c   :  { %v1635_v26 = vadd.f32 1e-05, %v1631_v23 }
 0xb9e   :  { %4380 = vrsqrt.f32 %v1635_v26 }
 0xba7   :  { %v4379_v28 = vpop.eup %4378 }
 0xba8   :  { %v1642_v29 = vmul.f32 %v4379_v28, %v1610_v12 }
 0xbaa   :  { %v1652_v36 = vmul.f32 %v3755_v30, %v1642_v29 }
 0xbab   :  { %v4381_v31 = vpop.eup %4380  ;;  %v1626_v32 = vpop.xlane.xlu0 %1625 }
 0xbac   :  { %v1632_v33 = vmul.f32 0.03125, %v1626_v32  ;;  %v1643_v34 = vmul.f32 %v4381_v31, %v1611_v50  ;;  %v1662_v59 = vadd.f32 %v3756_v37, %v1652_v36 }
 0xbae   :  { %v1636_v39 = vadd.f32 1e-05, %v1632_v33  ;;  %v1653_v40 = vmul.f32 %v3755_v30, %v1643_v34 }
 0xbaf   :  { %v1629_v41 = vpop.xlane.xlu1 %1628 }
 0xbb0   :  { %4382 = vrsqrt.f32 %v1636_v39  ;;  %v1633_v42 = vmul.f32 0.03125, %v1629_v41  ;;  %v1663_v3 = vadd.f32 %v3756_v37, %v1653_v40 }
 0xbb2   :  { %v1637_v5 = vadd.f32 1e-05, %v1633_v42  ;;  %v1666_v43 = vpack.c.bf16 %v1663_v3, %v1662_v59 }
 0xbb4   :  { %4384 = vrsqrt.f32 %v1637_v5  ;;  %4088 = vmatprep.mubr.msk.bf16.mxu1 %vm210_vm1, %v1666_v43 }
 0xbbd   :  { %v4383_v44 = vpop.eup %4382 }
 0xbbe   :  { %v1644_v45 = vmul.f32 %v4383_v44, %v1612_v4 }
 0xbc0   :  { %v1654_v56 = vmul.f32 %v3755_v30, %v1644_v45 }
 0xbc1   :  { %v4385_v46 = vpop.eup %4384 }
 0xbc2   :  { %v1645_v47 = vmul.f32 %v4385_v46, %v1613_v8  ;;  %v1664_v35 = vadd.f32 %v3756_v37, %v1654_v56  ;;  %v3762_v46 = vld [vmem:[%s5407_s13] ss:$0 sm:$0xff] }
 0xbc4   :  { %v1655_v1 = vmul.f32 %v3755_v30, %v1645_v47 }
 0xbc6   :  { %v1665_v48 = vadd.f32 %v3756_v37, %v1655_v1 }
 0xbc8   :  { %v1667_v16 = vpack.c.bf16 %v1665_v48, %v1664_v35 }
 0xbca   :  { %4089 = vmatmul.mubr.msk.bf16.vlgmr.msra.gmra.mxu1 %vm210_vm1, %v1667_v16 }
 0xc8a   :  { %v4090_v62 = vpop.f32.mrf.mxu1 }
 0xc8b   :  { %v1740_v55 = vadd.f32 %v4090_v62, %v3757_v54 }
 0xc8c   :  { %v1731_v12 = vpop.f32.mrf.mxu1 }
 0xc8d   :  { %v1752_v57 = vmul.f32 0.044715, %v1740_v55  ;;  %v1732_v58 = vadd.f32 %v3757_v54, %v1731_v12  ;;  %v1748_v41 = vmul.f32 0.5, %v1740_v55 }
 0xc8e   :  { %v4091_v60 = vpop.f32.mrf.mxu1 }
 0xc8f   :  { %v1756_v50 = vmul.f32 %v1752_v57, %v1740_v55  ;;  %v1750_v9 = vmul.f32 0.044715, %v1732_v58  ;;  %v1743_v61 = vadd.f32 %v4091_v60, %v3757_v54  ;;  %v1746_v37 = vmul.f32 0.5, %v1732_v58 }
 0xc90   :  { %v1734_v21 = vpop.f32.mrf.mxu1 }
 0xc91   :  { %v1760_v63 = vmul.f32 %v1756_v50, %v1740_v55  ;;  %v1754_v0 = vmul.f32 %v1750_v9, %v1732_v58  ;;  %v1753_v4 = vmul.f32 0.044715, %v1743_v61  ;;  %v1735_v15 = vadd.f32 %v3757_v54, %v1734_v21 }
 0xc92   :  { %v1749_v34 = vmul.f32 0.5, %v1743_v61 }
 0xc93   :  { %v1764_v6 = vadd.f32 %v1760_v63, %v1740_v55  ;;  %v1758_v7 = vmul.f32 %v1754_v0, %v1732_v58  ;;  %v1757_v8 = vmul.f32 %v1753_v4, %v1743_v61  ;;  %v1751_v11 = vmul.f32 0.044715, %v1735_v15 }
 0xc94   :  { %v1747_v39 = vmul.f32 0.5, %v1735_v15 }
 0xc95   :  { %v1768_v13 = vmul.f32 0.7978846, %v1764_v6  ;;  %v1762_v27 = vadd.f32 %v1758_v7, %v1732_v58  ;;  %v1761_v14 = vmul.f32 %v1757_v8, %v1743_v61  ;;  %v1755_v25 = vmul.f32 %v1751_v11, %v1735_v15 }
 0xc97   :  { %v1766_v17 = vmul.f32 0.7978846, %v1762_v27  ;;  %v1765_v18 = vadd.f32 %v1761_v14, %v1743_v61  ;;  %v1759_v20 = vmul.f32 %v1755_v25, %v1735_v15  ;;  %4386 = vtanh.f32 %v1768_v13  ;;  %v4296_v14 = vld [vmem:[%s5410_s16 + $0x8] sm:$0xff]   ;;  %v4297_v25 = vld [vmem:[%s5410_s16] sm:$0xff]  }
 0xc98   :  { %4104 = vmatprep.subr.bf16.mxu1 %v4296_v14 }
 0xc99   :  { %v1769_v22 = vmul.f32 0.7978846, %v1765_v18  ;;  %4388 = vtanh.f32 %v1766_v17  ;;  %v1763_v23 = vadd.f32 %v1759_v20, %v1735_v15  ;;  %4105 = vmatpush3.bf16.msra.mxu1 %v4296_v14 }
 0xc9a   :  { %4106 = vmatprep.subr.bf16.mxu1 %v4297_v25 }
 0xc9b   :  { %4390 = vtanh.f32 %v1769_v22  ;;  %v1767_v26 = vmul.f32 0.7978846, %v1763_v23 }
 0xc9d   :  { %4392 = vtanh.f32 %v1767_v26  ;;  %4107 = vmatpush3.bf16.msra.mxu1 %v4297_v25 }
 0xc9e   :  { %4112 = vmatprep.subr.bf16.mxu1 %v4506_v19 }
 0xca4   :  { %v4387_v28 = vpop.eup %4386 }
 0xca5   :  { %v1776_v36 = vadd.f32 1.0, %v4387_v28 }
 0xca6   :  { %v4389_v29 = vpop.eup %4388 }
 0xca7   :  { %v1774_v32 = vadd.f32 1.0, %v4389_v29  ;;  %v1780_v5 = vmul.f32 %v1776_v36, %v1748_v41 }
 0xca8   :  { %v4391_v30 = vpop.eup %4390 }
 0xca9   :  { %v1777_v31 = vadd.f32 1.0, %v4391_v30  ;;  %v1778_v59 = vmul.f32 %v1774_v32, %v1746_v37  ;;  %v3769_v37 = vld [vmem:[%s5408_s14] ss:$0 sm:$0xff] }
 0xcaa   :  { %v4393_v33 = vpop.eup %4392 }
 0xcab   :  { %v1775_v40 = vadd.f32 1.0, %v4393_v33  ;;  %v1781_v42 = vmul.f32 %v1777_v31, %v1749_v34 }
 0xcad   :  { %v1779_v3 = vmul.f32 %v1775_v40, %v1747_v39  ;;  %v1783_v44 = vpack.c.bf16 %v1781_v42, %v1780_v5 }
 0xcaf   :  { %v1782_v43 = vpack.c.bf16 %v1779_v3, %v1778_v59  ;;  %v3770_v3 = vld [vmem:[%s5409_s15] ss:$0 sm:$0xff] }
 0xcb1   :  { %4100 = vmatprep.mubr.msk.bf16.mxu0 %vm144_vm0, %v1782_v43 }
 0xcb2   :  { %4101 = vmatmul.mubr.msk.bf16.vlgmr.msra.gmra.mxu0 %vm144_vm0, %v1783_v44 }
 0xcb3   :  { %4120 = vmatprep.mubr.msk.bf16.mxu0 %vm4507_vm2, %v4506_v19 }
 0xd72   :  { %v4102_v45 = vpop.f32.mrf.mxu0 }
 0xd73   :  { %v1872_v56 = vadd.f32 %v4102_v45, %v3762_v46 }
 0xd74   :  { %v1863_v47 = vpop.f32.mrf.mxu0 }
 0xd75   :  { %v1864_v1 = vadd.f32 %v3762_v46, %v1863_v47  ;;  %v5039_v38 = vadd.f32 %v1872_v56, %v4980_v49 }
 0xd76   :  { %v4103_v35 = vpop.f32.mrf.mxu0 }
 0xd77   :  { %v5036_v48 = vadd.f32 %v1864_v1, %v4968_v2  ;;  %v1875_v51 = vadd.f32 %v4103_v35, %v3762_v46  ;;  %v1890_v55 = vsel %vm210_vm1, %v5039_v38, 0.0 }
 0xd78   :  { %v1866_v16 = vpop.f32.mrf.mxu0 }
 0xd79   :  { %v1867_v52 = vadd.f32 %v3762_v46, %v1866_v16  ;;  %v1884_v24 = vsel %vm210_vm1, %v5036_v48, 0.0  ;;  %v5047_v62 = vadd.f32 %v1875_v51, %v4986_v53 }
 0xd7a   :  { %1885 = vadd.xlane.f32.xlu0 %v1884_v24 }
 0xd7b   :  { %v5044_v54 = vadd.f32 %v1867_v52, %v4974_v10  ;;  %v1893_v49 = vsel %vm210_vm1, %v5047_v62, 0.0 }
 0xd7d   :  { %v1887_v2 = vsel %vm210_vm1, %v5044_v54, 0.0 }
 0xd7e   :  { %1888 = vadd.xlane.f32.xlu1 %v1887_v2  ;;  %1891 = vadd.xlane.f32.xlu0 %v1890_v55 }
 0xd82   :  { %1894 = vadd.xlane.f32.xlu1 %v1893_v49 }
 0xe03   :  { %v1886_v12 = vpop.xlane.xlu0 %1885 }
 0xe04   :  { %v1896_v57 = vmul.f32 0.03125, %v1886_v12 }
 0xe06   :  { %v1900_v10 = vsub.f32 %v5036_v48, %v1896_v57 }
 0xe07   :  { %v1889_v58 = vpop.xlane.xlu1 %1888  ;;  %v1892_v60 = vpop.xlane.xlu0 %1891 }
 0xe08   :  { %v1897_v53 = vmul.f32 0.03125, %v1889_v58  ;;  %v1898_v50 = vmul.f32 0.03125, %v1892_v60  ;;  %v1904_v9 = vmul.f32 %v1900_v10, %v1900_v10  ;;  %v2029_v60 = vld [vmem:[%s5411_s17] sm:$0xf] }
 0xe0a   :  { %v1901_v61 = vsub.f32 %v5044_v54, %v1897_v53  ;;  %v1902_v21 = vsub.f32 %v5039_v38, %v1898_v50  ;;  %v1908_v63 = vsel %vm210_vm1, %v1904_v9, 0.0 }
 0xe0b   :  { %v1895_v0 = vpop.xlane.xlu1 %1894  ;;  %1909 = vadd.xlane.f32.xlu0 %v1908_v63 }
 0xe0c   :  { %v1899_v4 = vmul.f32 0.03125, %v1895_v0  ;;  %v1905_v15 = vmul.f32 %v1901_v61, %v1901_v61  ;;  %v1906_v6 = vmul.f32 %v1902_v21, %v1902_v21  ;;  %v2194_v0 = vsel %vm523_vm4, %v2029_v60, 0 }
 0xe0e   :  { %v1903_v7 = vsub.f32 %v5047_v62, %v1899_v4  ;;  %v1911_v8 = vsel %vm210_vm1, %v1905_v15, 0.0  ;;  %v1914_v11 = vsel %vm210_vm1, %v1906_v6, 0.0 }
 0xe0f   :  { %1912 = vadd.xlane.f32.xlu1 %v1911_v8  ;;  %1915 = vadd.xlane.f32.xlu0 %v1914_v11 }
 0xe10   :  { %v1907_v13 = vmul.f32 %v1903_v7, %v1903_v7 }
 0xe12   :  { %v1917_v27 = vsel %vm210_vm1, %v1907_v13, 0.0 }
 0xe13   :  { %1918 = vadd.xlane.f32.xlu1 %v1917_v27 }
 0xe94   :  { %v1910_v17 = vpop.xlane.xlu0 %1909 }
 0xe95   :  { %v1920_v18 = vmul.f32 0.03125, %v1910_v17 }
 0xe97   :  { %v1924_v20 = vadd.f32 1e-05, %v1920_v18 }
 0xe98   :  { %v1913_v22 = vpop.xlane.xlu1 %1912  ;;  %v1916_v23 = vpop.xlane.xlu0 %1915 }
 0xe99   :  { %4394 = vrsqrt.f32 %v1924_v20  ;;  %v1921_v26 = vmul.f32 0.03125, %v1913_v22  ;;  %v1922_v28 = vmul.f32 0.03125, %v1916_v23 }
 0xe9b   :  { %v1925_v29 = vadd.f32 1e-05, %v1921_v26  ;;  %v1926_v30 = vadd.f32 1e-05, %v1922_v28 }
 0xe9c   :  { %v1919_v31 = vpop.xlane.xlu1 %1918 }
 0xe9d   :  { %4396 = vrsqrt.f32 %v1925_v29  ;;  %v1923_v32 = vmul.f32 0.03125, %v1919_v31 }
 0xe9e   :  { %4398 = vrsqrt.f32 %v1926_v30 }
 0xe9f   :  { %v1927_v33 = vadd.f32 1e-05, %v1923_v32 }
 0xea1   :  { %4400 = vrsqrt.f32 %v1927_v33 }
 0xea6   :  { %v4395_v34 = vpop.eup %4394 }
 0xea7   :  { %v1932_v36 = vmul.f32 %v4395_v34, %v1900_v10 }
 0xea9   :  { %v1942_v42 = vmul.f32 %v3769_v37, %v1932_v36 }
 0xeaa   :  { %v4397_v39 = vpop.eup %4396 }
 0xeab   :  { %v4399_v40 = vpop.eup %4398  ;;  %v1933_v41 = vmul.f32 %v4397_v39, %v1901_v61  ;;  %v1952_v45 = vadd.f32 %v3770_v3, %v1942_v42 }
 0xeac   :  { %v1934_v59 = vmul.f32 %v4399_v40, %v1902_v21  ;;  %v2030_v21 = vld [vmem:[%s5411_s17 + $0x4] sm:$0xf] }
 0xead   :  { %v1943_v5 = vmul.f32 %v3769_v37, %v1933_v41  ;;  %v2410_v6 = vsel %vm523_vm4, %v2030_v21, 0 }
 0xeae   :  { %v4401_v43 = vpop.eup %4400  ;;  %v1944_v47 = vmul.f32 %v3769_v37, %v1934_v59 }
 0xeaf   :  { %v1935_v44 = vmul.f32 %v4401_v43, %v1903_v7  ;;  %v1953_v46 = vadd.f32 %v3770_v3, %v1943_v5 }
 0xeb0   :  { %v1954_v35 = vadd.f32 %v3770_v3, %v1944_v47 }
 0xeb1   :  { %v1956_v56 = vpack.c.bf16 %v1953_v46, %v1952_v45  ;;  %v1945_v1 = vmul.f32 %v3769_v37, %v1935_v44 }
 0xeb3   :  { %4108 = vmatprep.mubr.msk.bf16.mxu1 %vm210_vm1, %v1956_v56  ;;  %v1955_v16 = vadd.f32 %v3770_v3, %v1945_v1 }
 0xeb5   :  { %v1957_v51 = vpack.c.bf16 %v1955_v16, %v1954_v35 }
 0xeb7   :  { %4109 = vmatmul.mubr.msk.bf16.vlgmr.msra.gmra.mxu1 %vm210_vm1, %v1957_v51 }
 0xeb8   :  { %4114 = vmatprep.mubr.msk.bf16.mxu1 %vm4507_vm2, %v4506_v19 }
 0xf77   :  { %v4110_v52 = vpop.f32.mrf.mxu1 }
 0xf79   :  { %v2014_v24 = vpop.f32.mrf.mxu1 }
 0xf7b   :  { %v4111_v2 = vpop.f32.mrf.mxu1 }
 0xf7c   :  { %v5080_v55 = vpack.c.bf16 %v4111_v2, %v4110_v52 }
 0xf7d   :  { %v2017_v49 = vpop.f32.mrf.mxu1 }
 0xf7e   :  { %v5082_v12 = vpack.c.bf16 %v2017_v49, %v2014_v24  ;;  %2086 = vrot.lane.b32.xlu1 %v5080_v55, %s4508_s0 }
 0xf80   :  { %2036 = vrot.lane.b32.xlu0 %v5082_v12, %s4508_s0 }
 0xf82   :  { %2183 = vrot.lane.b32.xlu1 %v5082_v12, %s4509_s11 }
 0xf84   :  { %2185 = vrot.lane.b32.xlu0 %v5080_v55, %s4509_s11 }
 0xf86   :  { %2251 = vrot.lane.b32.xlu1 %v5082_v12, %s4510_s29 }
 0xf88   :  { %2249 = vrot.lane.b32.xlu0 %v5082_v12, %s4511_s2 }
 0xf8a   :  { %2302 = vrot.lane.b32.xlu1 %v5080_v55, %s4510_s29  ;;  %s5466_s29 = smov 112  }
 0xf8c   :  { %2399 = vrot.lane.b32.xlu0 %v5082_v12, %s4512_s7 }
 0xf8e   :  { %2300 = vrot.lane.b32.xlu1 %v5080_v55, %s4511_s2  ;;  %s5467_s2 = smov 48  }
 0xf92   :  { %2401 = vrot.lane.b32.xlu1 %v5080_v55, %s4512_s7 }
 0xff0   :  { %v2087_v57 = vpop.permute.xlu1 %2086 }
 0xff1   :  { %v2092_v10 = vsel %vm366_vm3, %v2087_v57, 0 }
 0xff2   :  { %4119 = vmatpush3.bf16.xpose.msra.mxu0 %v2092_v10  ;;  %v2037_v58 = vpop.permute.xlu0 %2036 }
 0xff3   :  { %v2042_v53 = vsel %vm366_vm3, %v2037_v58, 0  ;;  %4130 = vmatprep.subr.bf16.mxu0 %v4506_v19 }
 0xff4   :  { %v2184_v50 = vpop.permute.xlu1 %2183  ;;  %4113 = vmatpush3.bf16.xpose.msra.mxu1 %v2042_v53 }
 0xff5   :  { %4264 = vmatprep.subr.msk.bf16.mxu1 %vm523_vm4, %v2029_v60 }
 0xff6   :  { %v2186_v9 = vpop.permute.xlu0 %2185 }
 0xff8   :  { %v2252_v61 = vpop.permute.xlu1 %2251 }
 0xff9   :  { %v2257_v63 = vsel %vm366_vm3, %v2252_v61, 0  ;;  %4121 = vmatmul.mubr.msk.bf16.vlgmr.msra.gmra.mxu0 %vm366_vm3, %v5080_v55 }
 0xffa   :  { %4131 = vmatpush3.bf16.xpose.msra.mxu0 %v2257_v63  ;;  %4132 = vmatprep.mubr.msk.bf16.mxu0 %vm4507_vm2, %v4506_v19  ;;  %v2250_v4 = vpop.permute.xlu0 %2249 }
 0xffb   :  { %4115 = vmatmul.mubr.msk.bf16.vlgmr.msra.gmra.mxu1 %vm366_vm3, %v5082_v12  ;;  %4265 = vmatprep.subr.msk.bf16.mxu0 %vm523_vm4, %v2030_v21 }
 0xffc   :  { %v2303_v15 = vpop.permute.xlu1 %2302  ;;  %4125 = vmatpush3.bf16.msra.mxu1 %v2194_v0  ;;  %4126 = vmatprep.mubr.msk.bf16.mxu1 %vm366_vm3, %v2184_v50 }
 0xffd   :  { %4136 = vmatprep.subr.bf16.mxu1 %v4506_v19  ;;  %v2308_v11 = vsel %vm366_vm3, %v2303_v15, 0 }
 0xffe   :  { %v2400_v7 = vpop.permute.xlu0 %2399 }
0x1000   :  { %v2301_v8 = vpop.permute.xlu1 %2300 }
0x1001   :  { %4133 = vmatmul.mubr.msk.bf16.vlgmr.msra.gmra.mxu0 %vm366_vm3, %v2250_v4 }
0x1002   :  { %4144 = vmatprep.mubr.msk.bf16.mxu0 %vm366_vm3, %v2400_v7  ;;  %4143 = vmatpush3.bf16.msra.mxu0 %v2410_v6 }
0x1003   :  { %4127 = vmatmul.mubr.msk.bf16.vlgmr.msra.gmra.mxu1 %vm366_vm3, %v2186_v9  ;;  %4154 = vmatprep.subr.bf16.mxu0 %v4506_v19 }
0x1004   :  { %4137 = vmatpush3.bf16.xpose.msra.mxu1 %v2308_v11  ;;  %4138 = vmatprep.mubr.msk.bf16.mxu1 %vm4507_vm2, %v4506_v19  ;;  %v2402_v13 = vpop.permute.xlu1 %2401 }
0x1005   :  { %4148 = vmatprep.subr.bf16.mxu1 %v4506_v19 }
0x1009   :  { %4145 = vmatmul.mubr.msk.bf16.vlgmr.msra.gmra.mxu0 %vm366_vm3, %v2402_v13 }
0x100a   :  { %4156 = vmatprep.mubr.msk.bf16.mxu0 %vm4507_vm2, %v4506_v19 }
0x100b   :  { %4139 = vmatmul.mubr.msk.bf16.vlgmr.msra.gmra.mxu1 %vm366_vm3, %v2301_v8 }
0x100c   :  { %4150 = vmatprep.mubr.msk.bf16.mxu1 %vm4507_vm2, %v4506_v19 }
0x10b9   :  { %v2128_v27 = vpop.f32.mrf.mxu0 }
0x10ba   :  { %v2137_v58 = vmul.f32 0.35355338, %v2128_v27 }
0x10bb   :  { %v2078_v14 = vpop.f32.mrf.mxu1  ;;  %v4122_v25 = vpop.f32.mrf.mxu0 }
0x10bc   :  { %v2135_v57 = vmul.f32 0.35355338, %v2078_v14  ;;  %v2145_v53 = vsel %vm468_vm5, %v2137_v58, -inf }
0x10bd   :  { %v4116_v17 = vpop.f32.mrf.mxu1  ;;  %v2131_v18 = vpop.f32.mrf.mxu0 }
0x10be   :  { %v2138_v44 = vmul.f32 0.35355338, %v2131_v18  ;;  %v2139_v60 = vsel %vm468_vm5, %v2135_v57, -inf }
0x10bf   :  { %v2081_v20 = vpop.f32.mrf.mxu1  ;;  %v4123_v22 = vpop.f32.mrf.mxu0 }
0x10c0   :  { %v2136_v39 = vmul.f32 0.35355338, %v2081_v20  ;;  %v2148_v2 = vsel %vm468_vm5, %v2138_v44, -inf }
0x10c1   :  { %v4117_v23 = vpop.f32.mrf.mxu1  ;;  %v2293_v26 = vpop.f32.mrf.mxu0 }
0x10c2   :  { %v2351_v28 = vmul.f32 0.35355338, %v2293_v26  ;;  %v2142_v46 = vsel %vm468_vm5, %v2136_v39, -inf }
0x10c3   :  { %v5140_v29 = vpop.f32.mrf.mxu1  ;;  %v4134_v30 = vpop.f32.mrf.mxu0 }
0x10c4   :  { %v2355_v31 = vsel %vm468_vm5, %v2351_v28, -inf }
0x10c5   :  { %v5143_v32 = vpop.f32.mrf.mxu1  ;;  %2356 = vmax.xlane.f32.xlu0 %v2355_v31  ;;  %v2296_v33 = vpop.f32.mrf.mxu0 }
0x10c6   :  { %v2352_v34 = vmul.f32 0.35355338, %v2296_v33 }
0x10c7   :  { %v5145_v36 = vpop.f32.mrf.mxu1  ;;  %v4135_v37 = vpop.f32.mrf.mxu0 }
0x10c8   :  { %v2246_v40 = vpack.c.bf16 %v5145_v36, %v5140_v29  ;;  %v2358_v41 = vsel %vm468_vm5, %v2352_v34, -inf }
0x10c9   :  { %v5150_v42 = vpop.f32.mrf.mxu1  ;;  %2359 = vmax.xlane.f32.xlu1 %v2358_v41  ;;  %v4146_v59 = vpop.f32.mrf.mxu0 }
0x10ca   :  { %v2245_v3 = vpack.c.bf16 %v5150_v42, %v5143_v32 }
0x10cb   :  { %v2344_v5 = vpop.f32.mrf.mxu1  ;;  %v2446_v43 = vpop.f32.mrf.mxu0 }
0x10cc   :  { %v2353_v45 = vmul.f32 0.35355338, %v2344_v5 }
0x10cd   :  { %v4140_v47 = vpop.f32.mrf.mxu1  ;;  %2143 = vmax.xlane.f32.xlu1 %v2142_v46  ;;  %v4147_v56 = vpop.f32.mrf.mxu0 }
0x10ce   :  { %v2462_v1 = vpack.c.bf16 %v4147_v56, %v4146_v59  ;;  %v2361_v35 = vsel %vm468_vm5, %v2353_v45, -inf }
0x10cf   :  { %v2347_v16 = vpop.f32.mrf.mxu1  ;;  %2362 = vmax.xlane.f32.xlu0 %v2361_v35  ;;  %v2449_v51 = vpop.f32.mrf.mxu0 }
0x10d0   :  { %v2354_v52 = vmul.f32 0.35355338, %v2347_v16  ;;  %v2461_v24 = vpack.c.bf16 %v2449_v51, %v2446_v43  ;;  %4155 = vmatpush3.bf16.msra.mxu0 %v2462_v1 }
0x10d1   :  { %v4141_v49 = vpop.f32.mrf.mxu1  ;;  %2149 = vmax.xlane.f32.xlu1 %v2148_v2  ;;  %4166 = vmatprep.subr.bf16.mxu0 %v4506_v19 }
0x10d2   :  { %4149 = vmatpush3.bf16.msra.mxu1 %v2461_v24  ;;  %v2364_v10 = vsel %vm468_vm5, %v2354_v52, -inf }
0x10d3   :  { %2365 = vmax.xlane.f32.xlu0 %v2364_v10  ;;  %4160 = vmatprep.subr.bf16.mxu1 %v4506_v19 }
0x10d7   :  { %2140 = vmax.xlane.f32.xlu0 %v2139_v60 }
0x10db   :  { %2146 = vmax.xlane.f32.xlu0 %v2145_v53 }
0x114e   :  { %v2357_v50 = vpop.xlane.xlu0 %2356 }
0x114f   :  { %v2367_v9 = vsub.f32 %v2351_v28, %v2357_v50 }
0x1151   :  { %v2371_v61 = vmul.f32 1.442695, %v2367_v9 }
0x1152   :  { %v2360_v21 = vpop.xlane.xlu1 %2359 }
0x1153   :  { %4402 = vpow2.f32 %v2371_v61  ;;  %v2368_v63 = vsub.f32 %v2352_v34, %v2360_v21 }
0x1155   :  { %v2373_v0 = vmul.f32 1.442695, %v2368_v63 }
0x1156   :  { %v2144_v4 = vpop.xlane.xlu1 %2143 }
0x1157   :  { %4404 = vpow2.f32 %v2373_v0  ;;  %v2152_v15 = vsub.f32 %v2136_v39, %v2144_v4 }
0x1158   :  { %v2363_v6 = vpop.xlane.xlu0 %2362 }
0x1159   :  { %v2157_v7 = vmul.f32 1.442695, %v2152_v15  ;;  %v2369_v8 = vsub.f32 %v2353_v45, %v2363_v6 }
0x115a   :  { %v2150_v11 = vpop.xlane.xlu1 %2149 }
0x115b   :  { %4406 = vpow2.f32 %v2157_v7  ;;  %v2375_v13 = vmul.f32 1.442695, %v2369_v8  ;;  %v2154_v27 = vsub.f32 %v2138_v44, %v2150_v11 }
0x115c   :  { %v2366_v14 = vpop.xlane.xlu0 %2365 }
0x115d   :  { %4408 = vpow2.f32 %v2375_v13  ;;  %v2370_v25 = vsub.f32 %v2354_v52, %v2366_v14  ;;  %v2161_v17 = vmul.f32 1.442695, %v2154_v27 }
0x115f   :  { %v2377_v18 = vmul.f32 1.442695, %v2370_v25  ;;  %v2031_v25 = vld [vmem:[%s5411_s17 + $0x8] sm:$0xf] }
0x1160   :  { %v4403_v20 = vpop.eup %4402  ;;  %v2141_v22 = vpop.xlane.xlu0 %2140 }
0x1161   :  { %4410 = vpow2.f32 %v2377_v18  ;;  %v2151_v23 = vsub.f32 %v2135_v57, %v2141_v22  ;;  %v2379_v26 = vsel %vm468_vm5, %v4403_v20, 0.0  ;;  %v2802_v18 = vsel %vm523_vm4, %v2031_v25, 0 }
0x1162   :  { %2380 = vadd.xlane.f32.xlu0 %v2379_v26  ;;  %4412 = vpow2.f32 %v2161_v17 }
0x1163   :  { %v2155_v28 = vmul.f32 1.442695, %v2151_v23 }
0x1164   :  { %v4405_v30 = vpop.eup %4404  ;;  %v2147_v31 = vpop.xlane.xlu0 %2146 }
0x1165   :  { %4414 = vpow2.f32 %v2155_v28  ;;  %v2153_v33 = vsub.f32 %v2137_v58, %v2147_v31  ;;  %v2382_v34 = vsel %vm468_vm5, %v4405_v30, 0.0 }
0x1166   :  { %2383 = vadd.xlane.f32.xlu1 %v2382_v34 }
0x1167   :  { %v2159_v37 = vmul.f32 1.442695, %v2153_v33 }
0x1168   :  { %v4407_v39 = vpop.eup %4406 }
0x1169   :  { %4416 = vpow2.f32 %v2159_v37  ;;  %v2166_v41 = vsel %vm468_vm5, %v4407_v39, 0.0 }
0x116a   :  { %v4409_v59 = vpop.eup %4408  ;;  %2167 = vadd.xlane.f32.xlu1 %v2166_v41 }
0x116b   :  { %v2385_v5 = vsel %vm468_vm5, %v4409_v59, 0.0 }
0x116c   :  { %2386 = vadd.xlane.f32.xlu0 %v2385_v5 }
0x116e   :  { %v4411_v43 = vpop.eup %4410 }
0x116f   :  { %v2388_v44 = vsel %vm468_vm5, %v4411_v43, 0.0  ;;  %v4413_v45 = vpop.eup %4412 }
0x1170   :  { %2389 = vadd.xlane.f32.xlu1 %v2388_v44  ;;  %v2172_v47 = vsel %vm468_vm5, %v4413_v45, 0.0 }
0x1172   :  { %v4415_v46 = vpop.eup %4414 }
0x1173   :  { %v2163_v56 = vsel %vm468_vm5, %v4415_v46, 0.0 }
0x1174   :  { %2173 = vadd.xlane.f32.xlu1 %v2172_v47  ;;  %2164 = vadd.xlane.f32.xlu0 %v2163_v56 }
0x1176   :  { %v4417_v1 = vpop.eup %4416 }
0x1177   :  { %v2169_v35 = vsel %vm468_vm5, %v4417_v1, 0.0 }
0x1178   :  { %2170 = vadd.xlane.f32.xlu0 %v2169_v35 }
0x1185   :  { %2694 = vrot.lane.b32.xlu1 %v5080_v55, %s4513_s9 }
0x1189   :  { %2641 = vrot.lane.b32.xlu1 %v5082_v12, %s5466_s29 }
0x118d   :  { %2692 = vrot.lane.b32.xlu1 %v5080_v55, %s5466_s29 }
0x118e   :  { %2643 = vrot.lane.b32.xlu0 %v5082_v12, %s4513_s9 }
0x1191   :  { %2793 = vrot.lane.b32.xlu1 %v5080_v55, %s5467_s2 }
0x1192   :  { %2791 = vrot.lane.b32.xlu0 %v5082_v12, %s5467_s2 }
0x11eb   :  { %v2381_v16 = vpop.xlane.xlu0 %2380 }
0x11ec   :  { %4418 = vrcp.f32 %v2381_v16 }
0x11ef   :  { %v2384_v51 = vpop.xlane.xlu1 %2383 }
0x11f0   :  { %4420 = vrcp.f32 %v2384_v51 }
0x11f3   :  { %v2168_v52 = vpop.xlane.xlu1 %2167 }
0x11f5   :  { %v2387_v24 = vpop.xlane.xlu0 %2386 }
0x11f6   :  { %4422 = vrcp.f32 %v2387_v24 }
0x11f9   :  { %v2390_v2 = vpop.xlane.xlu1 %2389  ;;  %v4419_v49 = vpop.eup %4418 }
0x11fa   :  { %4424 = vrcp.f32 %v2390_v2  ;;  %v2395_v60 = vmul.f32 %v4419_v49, %v4403_v20 }
0x11fb   :  { %4426 = vrcp.f32 %v2168_v52 }
0x11fd   :  { %v4421_v57 = vpop.eup %4420  ;;  %v2174_v10 = vpop.xlane.xlu1 %2173 }
0x11fe   :  { %v2165_v58 = vpop.xlane.xlu0 %2164  ;;  %v2396_v53 = vmul.f32 %v4421_v57, %v4405_v30 }
0x11ff   :  { %4428 = vrcp.f32 %v2165_v58 }
0x1200   :  { %4430 = vrcp.f32 %v2174_v10  ;;  %v2463_v50 = vpack.c.bf16 %v2396_v53, %v2395_v60 }
0x1202   :  { %v2171_v9 = vpop.xlane.xlu0 %2170  ;;  %4151 = vmatmul.mubr.msk.bf16.vlgmr.msra.gmra.mxu1 %vm468_vm5, %v2463_v50 }
0x1203   :  { %4432 = vrcp.f32 %v2171_v9  ;;  %4161 = vmatpush3.bf16.msra.mxu1 %v2245_v3  ;;  %4162 = vmatprep.mubr.msk.bf16.mxu1 %vm4507_vm2, %v4506_v19  ;;  %v4423_v61 = vpop.eup %4422  ;;  %v2695_v3 = vpop.permute.xlu1 %2694 }
0x1204   :  { %4172 = vmatprep.subr.bf16.mxu1 %v4506_v19  ;;  %v2397_v63 = vmul.f32 %v4423_v61, %v4409_v59 }
0x1206   :  { %v2644_v8 = vpop.permute.xlu0 %2643 }
0x1207   :  { %v4425_v21 = vpop.eup %4424  ;;  %v2649_v29 = vsel %vm366_vm3, %v2644_v8, 0  ;;  %v2642_v17 = vpop.permute.xlu1 %2641 }
0x1208   :  { %v2398_v0 = vmul.f32 %v4425_v21, %v4411_v43  ;;  %v4427_v4 = vpop.eup %4426 }
0x1209   :  { %v2180_v42 = vmul.f32 %v4427_v4, %v4407_v39 }
0x120a   :  { %v2464_v15 = vpack.c.bf16 %v2398_v0, %v2397_v63  ;;  %v2792_v20 = vpop.permute.xlu0 %2791 }
0x120b   :  { %v2693_v22 = vpop.permute.xlu1 %2692 }
0x120c   :  { %v4429_v6 = vpop.eup %4428  ;;  %4157 = vmatmul.mubr.msk.bf16.vlgmr.msra.gmra.mxu0 %vm468_vm5, %v2464_v15 }
0x120d   :  { %v4431_v7 = vpop.eup %4430  ;;  %4167 = vmatpush3.bf16.msra.mxu0 %v2246_v40  ;;  %v2179_v32 = vmul.f32 %v4429_v6, %v4415_v46  ;;  %4168 = vmatprep.mubr.msk.bf16.mxu0 %vm4507_vm2, %v4506_v19  ;;  %v2700_v40 = vsel %vm366_vm3, %v2695_v3, 0 }
0x120e   :  { %4178 = vmatprep.subr.bf16.mxu0 %v4506_v19  ;;  %v2182_v14 = vmul.f32 %v4431_v7, %v4413_v45 }
0x120f   :  { %v2247_v13 = vpack.c.bf16 %v2180_v42, %v2179_v32  ;;  %v2794_v23 = vpop.permute.xlu1 %2793 }
0x1210   :  { %v4433_v11 = vpop.eup %4432 }
0x1211   :  { %v2181_v27 = vmul.f32 %v4433_v11, %v4417_v1  ;;  %4163 = vmatmul.mubr.msk.bf16.vlgmr.msra.gmra.mxu1 %vm468_vm5, %v2247_v13 }
0x1212   :  { %4173 = vmatpush3.bf16.xpose.msra.mxu1 %v2649_v29  ;;  %4174 = vmatprep.mubr.msk.bf16.mxu1 %vm4507_vm2, %v4506_v19 }
0x1213   :  { %v2248_v36 = vpack.c.bf16 %v2182_v14, %v2181_v27  ;;  %4266 = vmatprep.subr.msk.bf16.mxu1 %vm523_vm4, %v2031_v25 }
0x1215   :  { %4169 = vmatmul.mubr.msk.bf16.vlgmr.msra.gmra.mxu0 %vm468_vm5, %v2248_v36 }
0x1216   :  { %4179 = vmatpush3.bf16.xpose.msra.mxu0 %v2700_v40  ;;  %4180 = vmatprep.mubr.msk.bf16.mxu0 %vm4507_vm2, %v4506_v19 }
0x1217   :  { %4190 = vmatprep.subr.bf16.mxu0 %v4506_v19 }
0x1219   :  { %4175 = vmatmul.mubr.msk.bf16.vlgmr.msra.gmra.mxu1 %vm366_vm3, %v2642_v17 }
0x121a   :  { %4186 = vmatprep.mubr.msk.bf16.mxu1 %vm366_vm3, %v2792_v20  ;;  %4185 = vmatpush3.bf16.msra.mxu1 %v2802_v18 }
0x121b   :  { %4196 = vmatprep.subr.bf16.mxu1 %v4506_v19 }
0x121d   :  { %4181 = vmatmul.mubr.msk.bf16.vlgmr.msra.gmra.mxu0 %vm366_vm3, %v2693_v22 }
0x121e   :  { %4192 = vmatprep.mubr.msk.bf16.mxu0 %vm4507_vm2, %v4506_v19 }
0x1221   :  { %4187 = vmatmul.mubr.msk.bf16.vlgmr.msra.gmra.mxu1 %vm366_vm3, %v2794_v23 }
0x1222   :  { %4198 = vmatprep.mubr.msk.bf16.mxu1 %vm4507_vm2, %v4506_v19 }
0x12c2   :  { %v2502_v26 = vpop.f32.mrf.mxu1 }
0x12c4   :  { %v4152_v28 = vpop.f32.mrf.mxu1 }
0x12c6   :  { %v2505_v30 = vpop.f32.mrf.mxu1 }
0x12c8   :  { %v4153_v31 = vpop.f32.mrf.mxu1 }
0x12cc   :  { %v2546_v33 = vpop.f32.mrf.mxu0 }
0x12ce   :  { %v4158_v34 = vpop.f32.mrf.mxu0 }
0x12d0   :  { %v2549_v37 = vpop.f32.mrf.mxu0 }
0x12d1   :  { %v2590_v39 = vpop.f32.mrf.mxu1 }
0x12d2   :  { %v5219_v41 = vadd.f32 %v2590_v39, %v2502_v26  ;;  %v4159_v59 = vpop.f32.mrf.mxu0 }
0x12d3   :  { %v4164_v5 = vpop.f32.mrf.mxu1 }
0x12d5   :  { %v2634_v43 = vpop.f32.mrf.mxu0  ;;  %v2593_v44 = vpop.f32.mrf.mxu1 }
0x12d6   :  { %v5221_v45 = vadd.f32 %v2634_v43, %v2546_v33  ;;  %v5223_v46 = vadd.f32 %v2593_v44, %v2505_v30 }
0x12d7   :  { %v4170_v47 = vpop.f32.mrf.mxu0  ;;  %v4165_v56 = vpop.f32.mrf.mxu1 }
0x12d9   :  { %v2637_v1 = vpop.f32.mrf.mxu0  ;;  %v2685_v16 = vpop.f32.mrf.mxu1 }
0x12da   :  { %v5225_v35 = vadd.f32 %v2637_v1, %v2549_v37  ;;  %v2743_v51 = vmul.f32 0.35355338, %v2685_v16 }
0x12db   :  { %v4171_v52 = vpop.f32.mrf.mxu0  ;;  %v4176_v24 = vpop.f32.mrf.mxu1 }
0x12dc   :  { %v2747_v49 = vsel %vm468_vm5, %v2743_v51, -inf }
0x12dd   :  { %v2736_v2 = vpop.f32.mrf.mxu0  ;;  %2748 = vmax.xlane.f32.xlu0 %v2747_v49  ;;  %v2688_v10 = vpop.f32.mrf.mxu1 }
0x12de   :  { %v2745_v57 = vmul.f32 0.35355338, %v2736_v2  ;;  %v2744_v58 = vmul.f32 0.35355338, %v2688_v10 }
0x12df   :  { %v4182_v60 = vpop.f32.mrf.mxu0  ;;  %v4177_v53 = vpop.f32.mrf.mxu1 }
0x12e0   :  { %v2753_v50 = vsel %vm468_vm5, %v2745_v57, -inf  ;;  %v2750_v61 = vsel %vm468_vm5, %v2744_v58, -inf }
0x12e1   :  { %v2739_v9 = vpop.f32.mrf.mxu0  ;;  %2754 = vmax.xlane.f32.xlu0 %v2753_v50  ;;  %2751 = vmax.xlane.f32.xlu1 %v2750_v61  ;;  %v4188_v63 = vpop.f32.mrf.mxu1 }
0x12e2   :  { %v2746_v21 = vmul.f32 0.35355338, %v2739_v9 }
0x12e3   :  { %v4183_v0 = vpop.f32.mrf.mxu0  ;;  %v2838_v4 = vpop.f32.mrf.mxu1 }
0x12e4   :  { %v2756_v15 = vsel %vm468_vm5, %v2746_v21, -inf }
0x12e5   :  { %2757 = vmax.xlane.f32.xlu0 %v2756_v15  ;;  %v4189_v6 = vpop.f32.mrf.mxu1 }
0x12e6   :  { %v2854_v7 = vpack.c.bf16 %v4189_v6, %v4188_v63 }
0x12e7   :  { %v2841_v32 = vpop.f32.mrf.mxu1 }
0x12e8   :  { %v2853_v42 = vpack.c.bf16 %v2841_v32, %v2838_v4  ;;  %4197 = vmatpush3.bf16.msra.mxu1 %v2854_v7 }
0x12e9   :  { %4208 = vmatprep.subr.bf16.mxu1 %v4506_v19 }
0x12ea   :  { %4191 = vmatpush3.bf16.msra.mxu0 %v2853_v42 }
0x12eb   :  { %4202 = vmatprep.subr.bf16.mxu0 %v4506_v19 }
0x1366   :  { %v2749_v3 = vpop.xlane.xlu0 %2748 }
0x1367   :  { %v2759_v8 = vsub.f32 %v2743_v51, %v2749_v3 }
0x1369   :  { %v2763_v11 = vmul.f32 1.442695, %v2759_v8 }
0x136a   :  { %v2752_v13 = vpop.xlane.xlu1 %2751  ;;  %v2755_v27 = vpop.xlane.xlu0 %2754 }
0x136b   :  { %4434 = vpow2.f32 %v2763_v11  ;;  %v2760_v14 = vsub.f32 %v2744_v58, %v2752_v13  ;;  %v2761_v25 = vsub.f32 %v2745_v57, %v2755_v27 }
0x136d   :  { %v2765_v29 = vmul.f32 1.442695, %v2760_v14  ;;  %v2767_v36 = vmul.f32 1.442695, %v2761_v25 }
0x136e   :  { %v2758_v26 = vpop.xlane.xlu0 %2757 }
0x136f   :  { %4436 = vpow2.f32 %v2765_v29  ;;  %v2762_v28 = vsub.f32 %v2746_v21, %v2758_v26 }
0x1370   :  { %4438 = vpow2.f32 %v2767_v36 }
0x1371   :  { %v2769_v30 = vmul.f32 1.442695, %v2762_v28 }
0x1373   :  { %4440 = vpow2.f32 %v2769_v30 }
0x1378   :  { %v4435_v40 = vpop.eup %4434 }
0x1379   :  { %v2771_v17 = vsel %vm468_vm5, %v4435_v40, 0.0 }
0x137a   :  { %2772 = vadd.xlane.f32.xlu0 %v2771_v17 }
0x137c   :  { %v4437_v18 = vpop.eup %4436 }
0x137d   :  { %v4439_v20 = vpop.eup %4438  ;;  %v2774_v22 = vsel %vm468_vm5, %v4437_v18, 0.0 }
0x137e   :  { %2775 = vadd.xlane.f32.xlu1 %v2774_v22  ;;  %v2777_v23 = vsel %vm468_vm5, %v4439_v20, 0.0 }
0x137f   :  { %2778 = vadd.xlane.f32.xlu0 %v2777_v23 }
0x1380   :  { %v4441_v31 = vpop.eup %4440 }
0x1381   :  { %v2780_v33 = vsel %vm468_vm5, %v4441_v31, 0.0 }
0x138f   :  { %3002 = vrot.lane.b32.xlu1 %v5080_v55, %s5468_s8 }
0x1395   :  { %2951 = vrot.lane.b32.xlu0 %v5082_v12, %s5468_s8 }
0x1399   :  { %3099 = vrot.lane.b32.xlu0 %v5082_v12, %s5469_s30 }
0x13b3   :  { %2781 = vadd.xlane.f32.xlu1 %v2780_v33 }
0x13c4   :  { %2949 = vrot.lane.b32.xlu1 %v5082_v12, %s5470_s3  ;;  %v2032_v12 = vld [vmem:[%s5411_s17 + $0xc] sm:$0xf] }
0x13c5   :  { %v3110_v51 = vsel %vm523_vm4, %v2032_v12, 0 }
0x13c8   :  { %3000 = vrot.lane.b32.xlu1 %v5080_v55, %s5470_s3 }
0x13cc   :  { %3101 = vrot.lane.b32.xlu1 %v5080_v55, %s5469_s30 }
0x1403   :  { %v2773_v34 = vpop.xlane.xlu0 %2772 }
0x1404   :  { %4442 = vrcp.f32 %v2773_v34 }
0x1407   :  { %v2776_v37 = vpop.xlane.xlu1 %2775 }
0x1408   :  { %4444 = vrcp.f32 %v2776_v37  ;;  %v2779_v39 = vpop.xlane.xlu0 %2778 }
0x1409   :  { %4446 = vrcp.f32 %v2779_v39 }
0x140b   :  { %v3003_v55 = vpop.permute.xlu1 %3002 }
0x140c   :  { %v2952_v47 = vpop.permute.xlu0 %2951  ;;  %v3008_v50 = vsel %vm366_vm3, %v3003_v55, 0 }
0x140d   :  { %v2957_v1 = vsel %vm366_vm3, %v2952_v47, 0 }
0x1410   :  { %v3100_v24 = vpop.permute.xlu0 %3099 }
0x1411   :  { %v4443_v59 = vpop.eup %4442 }
0x1412   :  { %v2787_v43 = vmul.f32 %v4443_v59, %v4435_v40 }
0x1415   :  { %v4445_v5 = vpop.eup %4444 }
0x1416   :  { %v2788_v44 = vmul.f32 %v4445_v5, %v4437_v18  ;;  %v4447_v49 = vpop.eup %4446 }
0x1417   :  { %v2789_v58 = vmul.f32 %v4447_v49, %v4439_v20 }
0x1418   :  { %v2855_v56 = vpack.c.bf16 %v2788_v44, %v2787_v43 }
0x141a   :  { %4193 = vmatmul.mubr.msk.bf16.vlgmr.msra.gmra.mxu0 %vm468_vm5, %v2855_v56 }
0x141b   :  { %4203 = vmatpush3.bf16.xpose.msra.mxu0 %v2957_v1  ;;  %4204 = vmatprep.mubr.msk.bf16.mxu0 %vm4507_vm2, %v4506_v19 }
0x141c   :  { %4267 = vmatprep.subr.msk.bf16.mxu0 %vm523_vm4, %v2032_v12 }
0x143c   :  { %v2782_v16 = vpop.xlane.xlu1 %2781 }
0x143d   :  { %4448 = vrcp.f32 %v2782_v16 }
0x1440   :  { %v2950_v52 = vpop.permute.xlu1 %2949 }
0x1441   :  { %4205 = vmatmul.mubr.msk.bf16.vlgmr.msra.gmra.mxu0 %vm366_vm3, %v2950_v52 }
0x1442   :  { %4216 = vmatprep.mubr.msk.bf16.mxu0 %vm366_vm3, %v3100_v24  ;;  %4215 = vmatpush3.bf16.msra.mxu0 %v3110_v51 }
0x1443   :  { %4226 = vmatprep.subr.bf16.mxu0 %v4506_v19 }
0x1444   :  { %v3001_v2 = vpop.permute.xlu1 %3000 }
0x1448   :  { %v3102_v57 = vpop.permute.xlu1 %3101 }
0x1449   :  { %4217 = vmatmul.mubr.msk.bf16.vlgmr.msra.gmra.mxu0 %vm366_vm3, %v3102_v57 }
0x144a   :  { %v4449_v10 = vpop.eup %4448  ;;  %4228 = vmatprep.mubr.msk.bf16.mxu0 %vm4507_vm2, %v4506_v19 }
0x144b   :  { %v2790_v60 = vmul.f32 %v4449_v10, %v4441_v31 }
0x144d   :  { %v2856_v53 = vpack.c.bf16 %v2790_v60, %v2789_v58 }
0x144f   :  { %4199 = vmatmul.mubr.msk.bf16.vlgmr.msra.gmra.mxu1 %vm468_vm5, %v2856_v53 }
0x1450   :  { %4209 = vmatpush3.bf16.xpose.msra.mxu1 %v3008_v50  ;;  %4210 = vmatprep.mubr.msk.bf16.mxu1 %vm4507_vm2, %v4506_v19 }
0x1451   :  { %4220 = vmatprep.subr.bf16.mxu1 %v4506_v19 }
0x1457   :  { %4211 = vmatmul.mubr.msk.bf16.vlgmr.msra.gmra.mxu1 %vm366_vm3, %v3001_v2 }
0x1458   :  { %4222 = vmatprep.mubr.msk.bf16.mxu1 %vm4507_vm2, %v4506_v19 }
0x14da   :  { %v2894_v9 = vpop.f32.mrf.mxu0 }
0x14db   :  { %v5273_v61 = vadd.f32 %v2894_v9, %v5219_v41 }
0x14dc   :  { %v4194_v21 = vpop.f32.mrf.mxu0 }
0x14de   :  { %v2897_v63 = vpop.f32.mrf.mxu0 }
0x14df   :  { %v5276_v0 = vadd.f32 %v2897_v63, %v5223_v46 }
0x14e0   :  { %v4195_v4 = vpop.f32.mrf.mxu0 }
0x1501   :  { %v2993_v15 = vpop.f32.mrf.mxu0 }
0x1502   :  { %v3051_v6 = vmul.f32 0.35355338, %v2993_v15 }
0x1503   :  { %v4206_v7 = vpop.f32.mrf.mxu0 }
0x1504   :  { %v3055_v32 = vsel %vm468_vm5, %v3051_v6, -inf }
0x1505   :  { %3056 = vmax.xlane.f32.xlu0 %v3055_v32  ;;  %v2996_v42 = vpop.f32.mrf.mxu0 }
0x1506   :  { %v3052_v3 = vmul.f32 0.35355338, %v2996_v42 }
0x1507   :  { %v4207_v8 = vpop.f32.mrf.mxu0 }
0x1508   :  { %v3058_v11 = vsel %vm468_vm5, %v3052_v3, -inf }
0x1509   :  { %3059 = vmax.xlane.f32.xlu1 %v3058_v11  ;;  %v4218_v41 = vpop.f32.mrf.mxu0 }
0x150b   :  { %v3146_v13 = vpop.f32.mrf.mxu0 }
0x150d   :  { %v4219_v27 = vpop.f32.mrf.mxu0 }
0x150e   :  { %v3162_v14 = vpack.c.bf16 %v4219_v27, %v4218_v41 }
0x150f   :  { %v2938_v25 = vpop.f32.mrf.mxu1  ;;  %v3149_v46 = vpop.f32.mrf.mxu0 }
0x1510   :  { %v5281_v29 = vadd.f32 %v2938_v25, %v5221_v45  ;;  %v3161_v36 = vpack.c.bf16 %v3149_v46, %v3146_v13  ;;  %4227 = vmatpush3.bf16.msra.mxu0 %v3162_v14 }
0x1511   :  { %v4200_v40 = vpop.f32.mrf.mxu1 }
0x1512   :  { %4221 = vmatpush3.bf16.msra.mxu1 %v3161_v36 }
0x1513   :  { %v2941_v17 = vpop.f32.mrf.mxu1 }
0x1514   :  { %v5284_v18 = vadd.f32 %v2941_v17, %v5225_v35 }
0x1515   :  { %v4201_v20 = vpop.f32.mrf.mxu1 }
0x1517   :  { %v3044_v22 = vpop.f32.mrf.mxu1 }
0x1518   :  { %v3053_v23 = vmul.f32 0.35355338, %v3044_v22 }
0x1519   :  { %v4212_v26 = vpop.f32.mrf.mxu1 }
0x151a   :  { %v3061_v28 = vsel %vm468_vm5, %v3053_v23, -inf }
0x151b   :  { %v3047_v30 = vpop.f32.mrf.mxu1  ;;  %3062 = vmax.xlane.f32.xlu0 %v3061_v28 }
0x151c   :  { %v3054_v31 = vmul.f32 0.35355338, %v3047_v30 }
0x151d   :  { %v4213_v33 = vpop.f32.mrf.mxu1 }
0x151e   :  { %v3064_v45 = vsel %vm468_vm5, %v3054_v31, -inf }
0x151f   :  { %3065 = vmax.xlane.f32.xlu0 %v3064_v45 }
0x158e   :  { %v3057_v34 = vpop.xlane.xlu0 %3056 }
0x158f   :  { %v3067_v37 = vsub.f32 %v3051_v6, %v3057_v34 }
0x1591   :  { %v3071_v39 = vmul.f32 1.442695, %v3067_v37 }
0x1592   :  { %v3060_v59 = vpop.xlane.xlu1 %3059 }
0x1593   :  { %4450 = vpow2.f32 %v3071_v39  ;;  %v3068_v35 = vsub.f32 %v3052_v3, %v3060_v59 }
0x1595   :  { %v3073_v5 = vmul.f32 1.442695, %v3068_v35 }
0x1597   :  { %4452 = vpow2.f32 %v3073_v5 }
0x15a0   :  { %v4451_v43 = vpop.eup %4450 }
0x15a1   :  { %v3079_v44 = vsel %vm468_vm5, %v4451_v43, 0.0 }
0x15a2   :  { %3080 = vadd.xlane.f32.xlu0 %v3079_v44 }
0x15a4   :  { %v4453_v47 = vpop.eup %4452  ;;  %v3063_v56 = vpop.xlane.xlu0 %3062 }
0x15a5   :  { %v3069_v12 = vsub.f32 %v3053_v23, %v3063_v56  ;;  %v3082_v1 = vsel %vm468_vm5, %v4453_v47, 0.0 }
0x15a6   :  { %3083 = vadd.xlane.f32.xlu1 %v3082_v1  ;;  %v4298_v1 = vld [vmem:[%s5414_s20 + $0x8] sm:$0xff]  }
0x15a7   :  { %v3075_v55 = vmul.f32 1.442695, %v3069_v12  ;;  %4232 = vmatprep.subr.bf16.mxu1 %v4298_v1 }
0x15a8   :  { %v3066_v16 = vpop.xlane.xlu0 %3065 }
0x15a9   :  { %4454 = vpow2.f32 %v3075_v55  ;;  %v3070_v51 = vsub.f32 %v3054_v31, %v3066_v16  ;;  %v4299_v55 = vld [vmem:[%s5414_s20] sm:$0xff]  }
0x15ab   :  { %v3077_v52 = vmul.f32 1.442695, %v3070_v51 }
0x15ad   :  { %4456 = vpow2.f32 %v3077_v52 }
0x15b6   :  { %v4455_v24 = vpop.eup %4454 }
0x15b7   :  { %v3085_v2 = vsel %vm468_vm5, %v4455_v24, 0.0 }
0x15b8   :  { %3086 = vadd.xlane.f32.xlu0 %v3085_v2 }
0x15ba   :  { %v4457_v49 = vpop.eup %4456 }
0x15bb   :  { %v3088_v57 = vsel %vm468_vm5, %v4457_v49, 0.0 }
0x15bc   :  { %3089 = vadd.xlane.f32.xlu1 %v3088_v57 }
0x162b   :  { %v3081_v10 = vpop.xlane.xlu0 %3080 }
0x162c   :  { %4458 = vrcp.f32 %v3081_v10 }
0x162f   :  { %v3084_v58 = vpop.xlane.xlu1 %3083 }
0x1630   :  { %4460 = vrcp.f32 %v3084_v58  ;;  %v3799_v58 = vld [vmem:[%s5412_s18] ss:$0 sm:$0xff] }
0x1639   :  { %v4459_v60 = vpop.eup %4458 }
0x163a   :  { %v3095_v50 = vmul.f32 %v4459_v60, %v4451_v43 }
0x163d   :  { %v4461_v53 = vpop.eup %4460 }
0x163e   :  { %v3096_v9 = vmul.f32 %v4461_v53, %v4453_v47 }
0x1640   :  { %v3163_v21 = vpack.c.bf16 %v3096_v9, %v3095_v50 }
0x1641   :  { %v3087_v63 = vpop.xlane.xlu0 %3086 }
0x1642   :  { %4223 = vmatmul.mubr.msk.bf16.vlgmr.msra.gmra.mxu1 %vm468_vm5, %v3163_v21  ;;  %4462 = vrcp.f32 %v3087_v63  ;;  %v3800_v63 = vld [vmem:[%s5413_s19] ss:$0 sm:$0xff] }
0x1643   :  { %4233 = vmatpush3.bf16.msra.mxu1 %v4298_v1 }
0x1644   :  { %4234 = vmatprep.subr.bf16.mxu1 %v4299_v55 }
0x1645   :  { %v3090_v4 = vpop.xlane.xlu1 %3089 }
0x1646   :  { %4464 = vrcp.f32 %v3090_v4 }
0x1647   :  { %4235 = vmatpush3.bf16.msra.mxu1 %v4299_v55 }
0x1648   :  { %4252 = vmatprep.subr.bf16.mxu1 %v4506_v19 }
0x164f   :  { %v4463_v15 = vpop.eup %4462 }
0x1650   :  { %v3097_v7 = vmul.f32 %v4463_v15, %v4455_v24 }
0x1653   :  { %v4465_v6 = vpop.eup %4464 }
0x1654   :  { %v3098_v32 = vmul.f32 %v4465_v6, %v4457_v49 }
0x1656   :  { %v3164_v42 = vpack.c.bf16 %v3098_v32, %v3097_v7 }
0x1658   :  { %4229 = vmatmul.mubr.msk.bf16.vlgmr.msra.gmra.mxu0 %vm468_vm5, %v3164_v42 }
0x1702   :  { %v3202_v3 = vpop.f32.mrf.mxu1 }
0x1703   :  { %v3253_v8 = vadd.f32 %v3202_v3, %v5273_v61 }
0x1704   :  { %v4224_v11 = vpop.f32.mrf.mxu1 }
0x1705   :  { %v5296_v41 = vadd.f32 %v3253_v8, %v5036_v48 }
0x1706   :  { %v3205_v13 = vpop.f32.mrf.mxu1 }
0x1707   :  { %v3254_v27 = vadd.f32 %v3205_v13, %v5276_v0  ;;  %v3263_v14 = vsel %vm210_vm1, %v5296_v41, 0.0 }
0x1708   :  { %3264 = vadd.xlane.f32.xlu0 %v3263_v14  ;;  %v4225_v25 = vpop.f32.mrf.mxu1 }
0x1709   :  { %v5302_v46 = vadd.f32 %v3254_v27, %v5044_v54 }
0x170b   :  { %v3266_v36 = vsel %vm210_vm1, %v5302_v46, 0.0 }
0x170c   :  { %3267 = vadd.xlane.f32.xlu1 %v3266_v36 }
0x1718   :  { %v3246_v61 = vpop.f32.mrf.mxu0 }
0x1719   :  { %v3255_v40 = vadd.f32 %v3246_v61, %v5281_v29 }
0x171a   :  { %v4230_v48 = vpop.f32.mrf.mxu0 }
0x171b   :  { %v5308_v17 = vadd.f32 %v3255_v40, %v5039_v38 }
0x171c   :  { %v3249_v0 = vpop.f32.mrf.mxu0 }
0x171d   :  { %v3256_v20 = vadd.f32 %v3249_v0, %v5284_v18  ;;  %v3269_v22 = vsel %vm210_vm1, %v5308_v17, 0.0  ;;  %v4300_v0 = vld [vmem:[%s5416_s22 + $0x18] sm:$0xff]  }
0x171e   :  { %3270 = vadd.xlane.f32.xlu0 %v3269_v22  ;;  %v4231_v54 = vpop.f32.mrf.mxu0  ;;  %4240 = vmatprep.subr.bf16.mxu0 %v4300_v0  ;;  %v4302_v22 = vld [vmem:[%s5416_s22 + $0x8] sm:$0xff]  }
0x171f   :  { %v5314_v23 = vadd.f32 %v3256_v20, %v5047_v62  ;;  %v4301_v20 = vld [vmem:[%s5416_s22 + $0x10] sm:$0xff]   ;;  %4241 = vmatpush3.bf16.msra.mxu0 %v4300_v0  ;;  %v4303_v54 = vld [vmem:[%s5416_s22] sm:$0xff]  }
0x1720   :  { %4242 = vmatprep.subr.bf16.mxu0 %v4301_v20 }
0x1721   :  { %v3272_v26 = vsel %vm210_vm1, %v5314_v23, 0.0 }
0x1722   :  { %3273 = vadd.xlane.f32.xlu1 %v3272_v26  ;;  %v3801_v26 = vld [vmem:[%s5415_s21] ss:$0 sm:$0xff] }
0x1723   :  { %4243 = vmatpush3.bf16.msra.mxu0 %v4301_v20 }
0x1724   :  { %4244 = vmatprep.subr.bf16.mxu0 %v4302_v22 }
0x1727   :  { %4245 = vmatpush3.bf16.msra.mxu0 %v4302_v22 }
0x1728   :  { %4246 = vmatprep.subr.bf16.mxu0 %v4303_v54 }
0x172b   :  { %4247 = vmatpush3.bf16.msra.mxu0 %v4303_v54 }
0x1791   :  { %v3265_v29 = vpop.xlane.xlu0 %3264 }
0x1792   :  { %v3275_v28 = vmul.f32 0.03125, %v3265_v29 }
0x1794   :  { %v3279_v38 = vsub.f32 %v5296_v41, %v3275_v28 }
0x1795   :  { %v3268_v30 = vpop.xlane.xlu1 %3267 }
0x1796   :  { %v3276_v31 = vmul.f32 0.03125, %v3268_v30  ;;  %v3283_v33 = vmul.f32 %v3279_v38, %v3279_v38 }
0x1798   :  { %v3280_v18 = vsub.f32 %v5302_v46, %v3276_v31  ;;  %v3287_v45 = vsel %vm210_vm1, %v3283_v33, 0.0 }
0x1799   :  { %3288 = vadd.xlane.f32.xlu0 %v3287_v45 }
0x179a   :  { %v3284_v34 = vmul.f32 %v3280_v18, %v3280_v18 }
0x179c   :  { %v3290_v62 = vsel %vm210_vm1, %v3284_v34, 0.0 }
0x179d   :  { %3291 = vadd.xlane.f32.xlu1 %v3290_v62 }
0x17a7   :  { %v3271_v37 = vpop.xlane.xlu0 %3270 }
0x17a8   :  { %v3277_v39 = vmul.f32 0.03125, %v3271_v37 }
0x17aa   :  { %v3281_v59 = vsub.f32 %v5308_v17, %v3277_v39 }
0x17ab   :  { %v3274_v35 = vpop.xlane.xlu1 %3273 }
0x17ac   :  { %v3278_v5 = vmul.f32 0.03125, %v3274_v35  ;;  %v3285_v43 = vmul.f32 %v3281_v59, %v3281_v59 }
0x17ae   :  { %v3282_v44 = vsub.f32 %v5314_v23, %v3278_v5  ;;  %v3293_v47 = vsel %vm210_vm1, %v3285_v43, 0.0 }
0x17af   :  { %3294 = vadd.xlane.f32.xlu0 %v3293_v47 }
0x17b0   :  { %v3286_v56 = vmul.f32 %v3282_v44, %v3282_v44 }
0x17b2   :  { %v3296_v12 = vsel %vm210_vm1, %v3286_v56, 0.0 }
0x17b3   :  { %3297 = vadd.xlane.f32.xlu1 %v3296_v12 }
0x1822   :  { %v3289_v16 = vpop.xlane.xlu0 %3288 }
0x1823   :  { %v3299_v51 = vmul.f32 0.03125, %v3289_v16 }
0x1825   :  { %v3303_v52 = vadd.f32 1e-05, %v3299_v51 }
0x1826   :  { %v3292_v24 = vpop.xlane.xlu1 %3291 }
0x1827   :  { %4466 = vrsqrt.f32 %v3303_v52  ;;  %v3300_v2 = vmul.f32 0.03125, %v3292_v24 }
0x1829   :  { %v3304_v49 = vadd.f32 1e-05, %v3300_v2 }
0x182b   :  { %4468 = vrsqrt.f32 %v3304_v49 }
0x1834   :  { %v4467_v57 = vpop.eup %4466 }
0x1835   :  { %v3311_v10 = vmul.f32 %v4467_v57, %v3279_v38 }
0x1837   :  { %v3321_v21 = vmul.f32 %v3799_v58, %v3311_v10 }
0x1838   :  { %v4469_v60 = vpop.eup %4468  ;;  %v3295_v53 = vpop.xlane.xlu0 %3294 }
0x1839   :  { %v3301_v50 = vmul.f32 0.03125, %v3295_v53  ;;  %v3312_v9 = vmul.f32 %v4469_v60, %v3280_v18  ;;  %v3331_v32 = vadd.f32 %v3800_v63, %v3321_v21 }
0x183b   :  { %v3305_v4 = vadd.f32 1e-05, %v3301_v50  ;;  %v3322_v15 = vmul.f32 %v3799_v58, %v3312_v9 }
0x183c   :  { %v3298_v6 = vpop.xlane.xlu1 %3297 }
0x183d   :  { %4470 = vrsqrt.f32 %v3305_v4  ;;  %v3302_v7 = vmul.f32 0.03125, %v3298_v6  ;;  %v3332_v42 = vadd.f32 %v3800_v63, %v3322_v15 }
0x183f   :  { %v3306_v3 = vadd.f32 1e-05, %v3302_v7  ;;  %v3335_v8 = vpack.c.bf16 %v3332_v42, %v3331_v32 }
0x1841   :  { %4472 = vrsqrt.f32 %v3306_v3  ;;  %4236 = vmatprep.mubr.msk.bf16.mxu1 %vm210_vm1, %v3335_v8 }
0x184a   :  { %v4471_v11 = vpop.eup %4470 }
0x184b   :  { %v3313_v13 = vmul.f32 %v4471_v11, %v3281_v59 }
0x184d   :  { %v3323_v25 = vmul.f32 %v3799_v58, %v3313_v13  ;;  %v3806_v13 = vld [vmem:[%s5417_s23] ss:$0 sm:$0xff] }
0x184e   :  { %v4473_v27 = vpop.eup %4472 }
0x184f   :  { %v3314_v14 = vmul.f32 %v4473_v27, %v3282_v44  ;;  %v3333_v61 = vadd.f32 %v3800_v63, %v3323_v25 }
0x1851   :  { %v3324_v36 = vmul.f32 %v3799_v58, %v3314_v14 }
0x1853   :  { %v3334_v40 = vadd.f32 %v3800_v63, %v3324_v36 }
0x1855   :  { %v3336_v48 = vpack.c.bf16 %v3334_v40, %v3333_v61 }
0x1857   :  { %4237 = vmatmul.mubr.msk.bf16.vlgmr.msra.gmra.mxu1 %vm210_vm1, %v3336_v48 }
0x1858   :  { %4256 = vmatprep.mubr.msk.bf16.mxu1 %vm4507_vm2, %v4506_v19 }
0x1917   :  { %v4238_v29 = vpop.f32.mrf.mxu1 }
0x1918   :  { %v3409_v28 = vadd.f32 %v4238_v29, %v3801_v26 }
0x1919   :  { %v3400_v38 = vpop.f32.mrf.mxu1 }
0x191a   :  { %v3421_v30 = vmul.f32 0.044715, %v3409_v28  ;;  %v3401_v31 = vadd.f32 %v3801_v26, %v3400_v38  ;;  %v3417_v6 = vmul.f32 0.5, %v3409_v28 }
0x191b   :  { %v4239_v33 = vpop.f32.mrf.mxu1 }
0x191c   :  { %v3425_v18 = vmul.f32 %v3421_v30, %v3409_v28  ;;  %v3419_v45 = vmul.f32 0.044715, %v3401_v31  ;;  %v3412_v34 = vadd.f32 %v4239_v33, %v3801_v26  ;;  %v3415_v63 = vmul.f32 0.5, %v3401_v31 }
0x191d   :  { %v3403_v62 = vpop.f32.mrf.mxu1 }
0x191e   :  { %v3429_v37 = vmul.f32 %v3425_v18, %v3409_v28  ;;  %v3423_v39 = vmul.f32 %v3419_v45, %v3401_v31  ;;  %v3422_v59 = vmul.f32 0.044715, %v3412_v34  ;;  %v3404_v35 = vadd.f32 %v3801_v26, %v3403_v62 }
0x191f   :  { %v3418_v9 = vmul.f32 0.5, %v3412_v34 }
0x1920   :  { %v3433_v5 = vadd.f32 %v3429_v37, %v3409_v28  ;;  %v3427_v43 = vmul.f32 %v3423_v39, %v3401_v31  ;;  %v3426_v44 = vmul.f32 %v3422_v59, %v3412_v34  ;;  %v3420_v47 = vmul.f32 0.044715, %v3404_v35 }
0x1921   :  { %v3416_v4 = vmul.f32 0.5, %v3404_v35 }
0x1922   :  { %v3437_v56 = vmul.f32 0.7978846, %v3433_v5  ;;  %v3431_v12 = vadd.f32 %v3427_v43, %v3401_v31  ;;  %v3430_v1 = vmul.f32 %v3426_v44, %v3412_v34  ;;  %v3424_v55 = vmul.f32 %v3420_v47, %v3404_v35 }
0x1924   :  { %v3435_v16 = vmul.f32 0.7978846, %v3431_v12  ;;  %v3434_v51 = vadd.f32 %v3430_v1, %v3412_v34  ;;  %v3428_v52 = vmul.f32 %v3424_v55, %v3404_v35  ;;  %4474 = vtanh.f32 %v3437_v56 }
0x1926   :  { %v3438_v24 = vmul.f32 0.7978846, %v3434_v51  ;;  %4476 = vtanh.f32 %v3435_v16  ;;  %v3432_v2 = vadd.f32 %v3428_v52, %v3404_v35 }
0x1928   :  { %4478 = vtanh.f32 %v3438_v24  ;;  %v3436_v49 = vmul.f32 0.7978846, %v3432_v2 }
0x192a   :  { %4480 = vtanh.f32 %v3436_v49 }
0x1931   :  { %v4475_v57 = vpop.eup %4474 }
0x1932   :  { %v3445_v21 = vadd.f32 1.0, %v4475_v57  ;;  %v4304_v57 = vld [vmem:[%s5420_s26 + $0x8] sm:$0xff]  }
0x1933   :  { %v4477_v10 = vpop.eup %4476  ;;  %4253 = vmatpush3.bf16.msra.mxu1 %v4304_v57 }
0x1934   :  { %v3443_v53 = vadd.f32 1.0, %v4477_v10  ;;  %v3449_v3 = vmul.f32 %v3445_v21, %v3417_v6  ;;  %v4305_v10 = vld [vmem:[%s5420_s26] sm:$0xff]   ;;  %4254 = vmatprep.subr.bf16.mxu1 %v4506_v19 }
0x1935   :  { %v4479_v58 = vpop.eup %4478 }
0x1936   :  { %v3446_v60 = vadd.f32 1.0, %v4479_v58  ;;  %v3447_v32 = vmul.f32 %v3443_v53, %v3415_v63 }
0x1937   :  { %v4481_v50 = vpop.eup %4480  ;;  %4255 = vmatpush3.bf16.msra.mxu1 %v4305_v10 }
0x1938   :  { %v3444_v15 = vadd.f32 1.0, %v4481_v50  ;;  %v3450_v7 = vmul.f32 %v3446_v60, %v3418_v9  ;;  %v3813_v9 = vld [vmem:[%s5418_s24] ss:$0 sm:$0xff] }
0x193a   :  { %v3448_v42 = vmul.f32 %v3444_v15, %v3416_v4  ;;  %v3452_v11 = vpack.c.bf16 %v3450_v7, %v3449_v3  ;;  %v3814_v4 = vld [vmem:[%s5419_s25] ss:$0 sm:$0xff]  ;;  %s4519_s25 = smov [#allocation2]  }
0x193b   :  { %s3708_s5 = sshll.u32 %s4519_s25, 4  ;;  %s3709_s5 = int_to_ptr.vmem [resolvable:$true] %s3708_s5 }
0x193c   :  { %v3451_v8 = vpack.c.bf16 %v3448_v42, %v3447_v32  ;;  %s4484_s16 = scalar_lea.vmem %s3709_s5, 32  ;;  %p4489_p1 = scmp.lt.s32.totalorder %s3709_s5, %s3709_s5 }
0x193d   :  { %p4485_p0 = scmp.ne.s32.totalorder %s3709_s5, %s4484_s16  ;;  %p4490_p2 = scmp.lt.s32.totalorder %s4484_s16, %s4484_s16 }
0x193e   :  { %4248 = vmatprep.mubr.msk.bf16.mxu0 %vm144_vm0, %v3451_v8 }
0x193f   :  { %4249 = vmatmul.mubr.msk.bf16.vlgmr.msra.gmra.mxu0 %vm144_vm0, %v3452_v11  ;;  %p4491_p3 = por %p4490_p2, %p4489_p1 }
0x1941   :  { %p4492_p4 = pnand %p4491_p3, %p4485_p0 }
0x19ff   :  { %v4250_v27 = vpop.f32.mrf.mxu0 }
0x1a00   :  { %v3541_v14 = vadd.f32 %v4250_v27, %v3806_v13 }
0x1a01   :  { %v3532_v25 = vpop.f32.mrf.mxu0 }
0x1a02   :  { %v3533_v36 = vadd.f32 %v3806_v13, %v3532_v25  ;;  %v3549_v40 = vadd.f32 %v3541_v14, %v5308_v17  ;;  %v3815_v25 = vld [vmem:[%s5421_s27] ss:$0 sm:$0xff] }
0x1a03   :  { %v4251_v61 = vpop.f32.mrf.mxu0 }
0x1a04   :  { %v3544_v48 = vadd.f32 %v4251_v61, %v3806_v13  ;;  %v3547_v20 = vadd.f32 %v3533_v36, %v5296_v41  ;;  %v3560_v26 = vsel %vm210_vm1, %v3549_v40, 0.0 }
0x1a05   :  { %v3535_v0 = vpop.f32.mrf.mxu0 }
0x1a06   :  { %v3550_v22 = vadd.f32 %v3544_v48, %v5314_v23  ;;  %v3536_v54 = vadd.f32 %v3806_v13, %v3535_v0  ;;  %v3551_v30 = vsel %vm210_vm1, %v3547_v20, 0.0 }
0x1a08   :  { %v3561_v29 = vsel %vm210_vm1, %v3550_v22, 0.0  ;;  %v3548_v28 = vadd.f32 %v3536_v54, %v5302_v46 }
0x1a09   :  { %v3562_v38 = vadd.f32 %v3561_v29, %v3560_v26 }
0x1a0a   :  { %v3552_v31 = vsel %vm210_vm1, %v3548_v28, 0.0 }
0x1a0b   :  { %v3563_v33 = vrot.slane %v3562_v38, 4  ;;  %v3553_v17 = vadd.f32 %v3552_v31, %v3551_v30 }
0x1a0d   :  { %v3564_v18 = vadd.f32 %v3563_v33, %v3562_v38  ;;  %v3554_v45 = vrot.slane %v3553_v17, 4 }
0x1a0f   :  { %v3565_v34 = vrot.slane %v3564_v18, 2  ;;  %v3555_v41 = vadd.f32 %v3554_v45, %v3553_v17 }
0x1a11   :  { %v3566_v62 = vadd.f32 %v3565_v34, %v3564_v18  ;;  %v3556_v23 = vrot.slane %v3555_v41, 2 }
0x1a13   :  { %v3557_v37 = vadd.f32 %v3556_v23, %v3555_v41  ;;  %v3567_v39 = vrot.slane %v3566_v62, 1 }
0x1a15   :  { %v3558_v59 = vrot.slane %v3557_v37, 1  ;;  %v3568_v35 = vadd.f32 %v3567_v39, %v3566_v62 }
0x1a17   :  { %v3559_v5 = vadd.f32 %v3558_v59, %v3557_v37  ;;  %v3571_v43 = vmul.f32 0.0625, %v3568_v35 }
0x1a19   :  { %v3570_v46 = vmul.f32 0.0625, %v3559_v5 }
0x1a1b   :  { %v3577_v44 = vsel %vm3576_vm6, %v3571_v43, %v3570_v46 }
0x1a1c   :  { %v3580_v47 = vsel %vm3579_vm7, %v3577_v44, 0.0 }
0x1a1d   :  { %3581 = vadd.xlane.f32.xlu0 %v3580_v47 }
0x1aa6   :  { %v3582_v56 = vpop.xlane.xlu0 %3581 }
0x1aa7   :  { %v3583_v12 = vmul.f32 0.03125, %v3582_v56 }
0x1aa9   :  { %v3585_v1 = vrot.slane %v3583_v12, 1  ;;  %v3588_v55 = vsub.f32 %v3570_v46, %v3583_v12 }
0x1aab   :  { %v3589_v16 = vsub.f32 %v3571_v43, %v3585_v1  ;;  %v3590_v52 = vmul.f32 %v3588_v55, %v3588_v55 }
0x1aad   :  { %v3591_v51 = vmul.f32 %v3589_v16, %v3589_v16 }
0x1aaf   :  { %v3594_v24 = vrot.slane %v3591_v51, 7 }
0x1ab1   :  { %v3595_v2 = vsel %vm3576_vm6, %v3594_v24, %v3590_v52 }
0x1ab2   :  { %v3597_v49 = vsel %vm3579_vm7, %v3595_v2, 0.0 }
0x1ab3   :  { %3598 = vadd.xlane.f32.xlu1 %v3597_v49 }
0x1b3c   :  { %v3599_v58 = vpop.xlane.xlu1 %3598 }
0x1b3d   :  { %v3600_v60 = vmul.f32 0.03125, %v3599_v58 }
0x1b3f   :  { %v3601_v53 = vadd.f32 1e-05, %v3600_v60 }
0x1b41   :  { %4482 = vrsqrt.f32 %v3601_v53 }
0x1b4e   :  { %v4483_v50 = vpop.eup %4482 }
0x1b4f   :  { %v3604_v21 = vrot.slane %v4483_v50, 1  ;;  %v3607_v63 = vmul.f32 %v4483_v50, %v3588_v55 }
0x1b51   :  { %v3608_v15 = vmul.f32 %v3604_v21, %v3589_v16  ;;  %v3615_v6 = vmul.f32 %v3813_v9, %v3607_v63 }
0x1b53   :  { %v3616_v7 = vmul.f32 %v3813_v9, %v3608_v15  ;;  %v3623_v19 = vadd.f32 %v3814_v4, %v3615_v6 }
0x1b55   :  { %v3624_v32 = vadd.f32 %v3814_v4, %v3616_v7  ;;  %v3625_v42 = vpack.c.bf16 %v3623_v19, %v3623_v19 }
0x1b57   :  { %v3626_v3 = vpack.c.bf16 %v3624_v32, %v3624_v32  ;;  %v3640_v11 = vunpack.c.l.b16 %v3625_v42 }
0x1b59   :  { %v3641_v8 = vunpack.c.l.b16 %v3626_v3 }
0x1b5b   :  { %v3642_v13 = vrot.slane %v3641_v8, 7 }
0x1b5d   :  { %v3643_v27 = vsel %vm3576_vm6, %v3642_v13, %v3640_v11 }
0x1b5e   :  { %v3644_v14 = vpack.c.b16 %v3643_v27, %v3643_v27 }
0x1b60   :  { %4257 = vmatmul.mubr.msk.bf16.vlgmr.msra.gmra.mxu1 %vm210_vm1, %v3644_v14 }
0x1c20   :  { %v3694_v36 = vpop.f32.mrf.mxu1 }
0x1c21   :  { %v3695_v61 = vadd.f32 %v3815_v25, %v3694_v36 }
0x1c22   :  { %v4258_v40 = vpop.f32.mrf.mxu1 }
0x1c23   :  { %3701 = vst.msk [vmem:[#allocation2] sm:$0x3] %vm3700_vm8, %v3695_v61 }
0x1c24   :  { %v3697_v48 = vpop.f32.mrf.mxu1 }
0x1c25   :  { %4495 = shalt.err (!%p4492_p4)
}
0x1c26   :  { %3711 = dma.vmem_to_hbm [thread:$0]  %s3709_s5, 32, %s5422_s28, [#allocation3]   ;;  %v4259_v0 = vpop.f32.mrf.mxu1 }
0x1c27   :  { %4504 = dma.done.wait [#allocation3], 32  }
0x1c28   :  { %4505 = vsyncadd [#allocation3], 4294967264 }
0x1c29   :  { %3715 = vsyncpa [#allocation3], 1 }

</bundles_post_ra>
